<compile_context>
chip_gen: v5e
topology: v5e:2x2
jax: 0.10.0
libtpu: 0.0.40
codegen_flags: <defaults>
</compile_context>

<pallas_src>
import functools

import jax
import jax.numpy as jnp
from jax.experimental import pallas as pl
from jax.experimental.pallas import tpu as pltpu

# ----------------------------- configuration ---------------------------------
BS = 2          # batch
T = 4           # sequence length
OUT_SIZE = 8    # channels of the BottleneckLSTMCell input / output
IN_C = 32       # bottleneck channels  (must equal HID, see note above)
HID = 32        # hidden channels      (multiple of 32 for GroupNorm(32, .))
H = 8           # spatial height
W = 8           # spatial width
GN_EPS = 1e-5
BN_EPS = 1e-5
P = BS * H * W           # flattened pixels = lane dimension (128 here)
C3 = IN_C + 2 * HID      # channels of cat([x, h, c]) = 96

assert IN_C == HID and HID % 32 == 0


# ------------------------------ kernel helpers --------------------------------
def _sigmoid(v):
    # exact identity sigmoid(x) = 0.5*(tanh(x/2)+1): EUP tanh, no divide, no exp overflow
    return 0.5 * (jnp.tanh(0.5 * v) + 1.0)


# --------------------- fused sequence kernel (one pallas_call) ----------------
def _fused_lstm_kernel(
        x_ref, h0_ref, c0_ref, mask_ref, bsel_ref, asel_ref,
        wd_ref, sd_ref, bd_ref,
        wbig_ref, ball_ref, w2c_ref,
        g1w_ref, g1b_ref, g2w_ref, g2b_ref, g3w_ref, g3b_ref,
        wu_ref, su_ref, bu_ref,
        out_ref, h_out_ref, c_out_ref,
        h_scr, c_scr):
    f32 = jnp.float32
    bf16 = jnp.bfloat16
    t = pl.program_id(0)

    @pl.when(t == 0)
    def _():
        h_scr[...] = h0_ref[...]
        c_scr[...] = c0_ref[...]

    h2d = h_scr[...]                     # (HID, P)
    c2d = c_scr[...]                     # (HID, P)
    bsel = bsel_ref[...]                 # (P, P)   same-batch averaging matrix (/HW)
    mask9 = mask_ref[...]                # (9,1,P)  per-tap zero-pad boundary masks

    # ---- downsample prologue: 1x1 conv (no bias) + folded eval BN + ReLU ----
    xd = jnp.dot(wd_ref[...], x_ref[t].astype(bf16), preferred_element_type=f32)
    xd = jnp.maximum(xd * sd_ref[...] + bd_ref[...], 0.0)        # (IN_C, P)

    # ---- 3x3 "same" conv via lane rolls + masks, ONE im2col matmul per conv ----
    def im2col9(v):                       # (C, P) f32 -> (9*C, P) bf16, tap-major
        parts = []
        for dy in (-1, 0, 1):
            for dx in (-1, 0, 1):
                off = dy * W + dx
                k = (dy + 1) * 3 + (dx + 1)
                sh = v if off == 0 else pltpu.roll(v, (-off) % P, axis=1)
                if off != 0:
                    sh = sh * mask9[k]                           # (1, P) broadcast
                parts.append(sh.astype(bf16))
        return jnp.concatenate(parts, axis=0)

    xhc = jnp.concatenate([xd, h2d, c2d], axis=0)                # (3*HID, P)
    # fused columns -> rows here: [conv1 (2*HID) | conv3 (HID) | conv2 x/h-part (HID)]
    y = jnp.dot(wbig_ref[...], im2col9(xhc),
                preferred_element_type=f32) + ball_ref[...]      # (4*HID, P)

    # ---- GroupNorm: two-pass stats via matmul broadcast (stays lane-dense) ----
    def gn_perchan(v, gw, gb):            # HID channels, 32 groups == per-channel stats
        mean = jnp.dot(v, bsel, preferred_element_type=f32)
        d = v - mean
        var = jnp.dot(d * d, bsel, preferred_element_type=f32)
        return d * (jax.lax.rsqrt(jnp.maximum(var, 0.0) + GN_EPS) * gw) + gb

    def gn_grouped(v, gw, gb):            # 2*HID channels, 32 groups of 2
        asel = asel_ref[...]              # (2*HID, 2*HID) same-group averaging (/cg)
        mean = jnp.dot(jnp.dot(asel, v, preferred_element_type=f32), bsel,
                       preferred_element_type=f32)
        d = v - mean
        var = jnp.dot(jnp.dot(asel, d * d, preferred_element_type=f32), bsel,
                      preferred_element_type=f32)
        return d * (jax.lax.rsqrt(jnp.maximum(var, 0.0) + GN_EPS) * gw) + gb

    # ---- gates ----
    y1 = gn_grouped(y[:2 * HID], g1w_ref[...], g1b_ref[...])
    i_t = _sigmoid(y1[:HID])
    f_t = _sigmoid(y1[HID:])
    g_t = jnp.tanh(gn_perchan(y[2 * HID:3 * HID], g3w_ref[...], g3b_ref[...]))

    c_t = f_t * c2d + i_t * g_t           # dropout(g_t) == g_t (p == 0)

    # conv2: one K=9*HID peephole matmul added to the precomputed x/h part (bias included)
    y2 = y[3 * HID:] + jnp.dot(w2c_ref[...], im2col9(c_t), preferred_element_type=f32)
    o_t = _sigmoid(gn_perchan(y2, g2w_ref[...], g2b_ref[...]))

    h_t = o_t * jnp.tanh(c_t)

    # ---- upsample finalize: 1x1 conv (no bias) + folded eval BN + ReLU ----
    up = jnp.dot(wu_ref[...], h_t.astype(bf16), preferred_element_type=f32)
    out_ref[t] = jnp.maximum(up * su_ref[...] + bu_ref[...], 0.0)    # (OUT_SIZE, P)

    # carry recurrent state; emit the final state only at the last step
    h_scr[...] = h_t
    c_scr[...] = c_t

    @pl.when(t == pl.num_programs(0) - 1)
    def _():
        h_out_ref[...] = h_t
        c_out_ref[...] = c_t


# --------------------- structural constants (masks / selectors) ----------------
def _conv_masks():
    """(9, 1, P) zero-pad validity masks per 3x3 tap (tap k = (dy+1)*3+(dx+1))."""
    hh = (jnp.arange(P) // W) % H
    ww = jnp.arange(P) % W
    ms = []
    for dy in (-1, 0, 1):
        for dx in (-1, 0, 1):
            valid = (hh + dy >= 0) & (hh + dy < H) & (ww + dx >= 0) & (ww + dx < W)
            ms.append(valid.astype(jnp.float32))
    return jnp.stack(ms).reshape(9, 1, P)


def _batch_mean_matrix():
    """(P, P) matrix averaging over the H*W pixels of the same batch element."""
    b = jnp.arange(P) // (H * W)
    return (b[:, None] == b[None, :]).astype(jnp.float32) / float(H * W)


def _group_mean_matrix(channels, groups):
    """(C, C) matrix averaging over channels of the same GroupNorm group."""
    cg = channels // groups
    g = jnp.arange(channels) // cg
    return (g[:, None] == g[None, :]).astype(jnp.float32) / float(cg)


# ------------------------------ forward wrapper --------------------------------
def bottleneck_lstm_forward(x, prev, params):
    """x: (bs, t, OUT_SIZE, H, W) float32 (NCHW per frame); prev: None or (h, c) in NCHW."""
    bs, t, c, hh, ww = x.shape
    assert (bs, c, hh, ww) == (BS, OUT_SIZE, H, W)

    # channels-major, pixels (b*H*W) in lanes
    x_seq = jnp.transpose(x, (1, 2, 0, 3, 4)).reshape(t, OUT_SIZE, P)
    if prev is None:
        h0 = jnp.zeros((HID, P), jnp.float32)
        c0 = jnp.zeros((HID, P), jnp.float32)
    else:
        h0 = jnp.transpose(prev[0], (1, 0, 2, 3)).reshape(HID, P)
        c0 = jnp.transpose(prev[1], (1, 0, 2, 3)).reshape(HID, P)

    mask9 = _conv_masks()
    bsel = _batch_mean_matrix()
    asel = _group_mean_matrix(2 * HID, 32)

    def full(shape):
        # whole array as one block, constant index map -> fetched once, VMEM-resident
        n = len(shape)
        return pl.BlockSpec(shape, lambda tt: (0,) * n)

    in_specs = [
        full((t, OUT_SIZE, P)),                                   # x_seq (resident)
        full((HID, P)), full((HID, P)),                           # h0, c0
        full((9, 1, P)),                                          # conv boundary masks
        full((P, P)), full((2 * HID, 2 * HID)),                   # bsel, asel
        full((IN_C, OUT_SIZE)), full((IN_C, 1)), full((IN_C, 1)),  # wd, sd, bd
        full((4 * HID, 9 * C3)), full((4 * HID, 1)),              # wbig, ball
        full((HID, 9 * HID)),                                     # w2c (peephole)
        full((2 * HID, 1)), full((2 * HID, 1)),                   # g1w, g1b
        full((HID, 1)), full((HID, 1)),                           # g2w, g2b
        full((HID, 1)), full((HID, 1)),                           # g3w, g3b
        full((OUT_SIZE, HID)), full((OUT_SIZE, 1)), full((OUT_SIZE, 1)),  # wu, su, bu
    ]
    out_specs = (
        full((t, OUT_SIZE, P)),                                   # out_seq (resident)
        full((HID, P)),                                           # h_last
        full((HID, P)),                                           # c_last
    )
    out_shape = (
        jax.ShapeDtypeStruct((t, OUT_SIZE, P), jnp.float32),
        jax.ShapeDtypeStruct((HID, P), jnp.float32),
        jax.ShapeDtypeStruct((HID, P), jnp.float32),
    )

    out_seq, h_last, c_last = pl.pallas_call(
        _fused_lstm_kernel,
        out_shape=out_shape,
        grid_spec=pltpu.PrefetchScalarGridSpec(
            num_scalar_prefetch=0,
            grid=(t,),
            in_specs=in_specs,
            out_specs=out_specs,
            scratch_shapes=[pltpu.VMEM((HID, P), jnp.float32),    # h state
                            pltpu.VMEM((HID, P), jnp.float32)],   # c state
        ),
        compiler_params=pltpu.CompilerParams(
            dimension_semantics=("arbitrary",),   # sequential: h/c carried across steps
        ),
    )(x_seq, h0, c0, mask9, bsel, asel,
      params["wd"], params["sd"], params["bd"],
      params["wbig"], params["ball"], params["w2c"],
      params["g1w"], params["g1b"], params["g2w"], params["g2b"],
      params["g3w"], params["g3b"],
      params["wu"], params["su"], params["bu"])

    out = jnp.transpose(out_seq.reshape(t, OUT_SIZE, bs, hh, ww), (2, 0, 1, 3, 4))
    h_last_nchw = jnp.transpose(h_last.reshape(HID, bs, hh, ww), (1, 0, 2, 3))
    c_last_nchw = jnp.transpose(c_last.reshape(HID, bs, hh, ww), (1, 0, 2, 3))
    return out, (h_last_nchw, c_last_nchw)


# --------------------------- deterministic parameters -------------------------
def init_params(key):
    ks = jax.random.split(key, 22)
    nrm = lambda k, s, sc=0.1: (jax.random.normal(k, s) * sc).astype(jnp.float32)
    p = {}

    # Raw ConvLSTMCellPeep conv weights, PyTorch layout (Cout, Cin, kh, kw).
    w1 = nrm(ks[0], (2 * HID, C3, 3, 3)); b1 = nrm(ks[1], (2 * HID,))
    w2 = nrm(ks[2], (HID, C3, 3, 3));     b2 = nrm(ks[3], (HID,))
    w3 = nrm(ks[4], (HID, IN_C + HID, 3, 3)); b3 = nrm(ks[5], (HID,))

    # Fused weight (4*HID, 9*C3): column block k = ky*3+kx holds tap (ky,kx); Cin order
    # within a tap is [x | h | c] (c columns zeroed for conv3 / conv2 x-h part);
    # row blocks = [conv1(2*HID) | conv3(HID) | conv2_xh(HID)].
    w3p = jnp.zeros((HID, C3, 3, 3), jnp.float32).at[:, :IN_C + HID].set(w3)
    w2xh = jnp.zeros((HID, C3, 3, 3), jnp.float32).at[:, :IN_C + HID].set(w2[:, :IN_C + HID])
    wbig = jnp.concatenate([w1, w3p, w2xh], axis=0)                 # (4*HID, C3, 3, 3)
    p["wbig"] = (jnp.transpose(wbig, (0, 2, 3, 1))
                 .reshape(4 * HID, 9 * C3).astype(jnp.bfloat16))
    p["w2c"] = (jnp.transpose(w2[:, IN_C + HID:], (0, 2, 3, 1))
                .reshape(HID, 9 * HID).astype(jnp.bfloat16))        # conv2 peephole part
    p["ball"] = jnp.concatenate([b1, b3, b2]).reshape(4 * HID, 1)

    # GroupNorm affine params as (C, 1) columns (broadcast over lanes).
    p["g1w"] = 1.0 + nrm(ks[6], (2 * HID, 1)); p["g1b"] = nrm(ks[7], (2 * HID, 1))
    p["g2w"] = 1.0 + nrm(ks[8], (HID, 1));     p["g2b"] = nrm(ks[9], (HID, 1))
    p["g3w"] = 1.0 + nrm(ks[10], (HID, 1));    p["g3b"] = nrm(ks[11], (HID, 1))

    # downsample: Conv2d(OUT_SIZE -> IN_C, 1x1, bias=False) + BatchNorm2d (eval, folded) + ReLU
    p["wd"] = nrm(ks[12], (IN_C, OUT_SIZE)).astype(jnp.bfloat16)
    gd, betad = 1.0 + nrm(ks[13], (IN_C, 1)), nrm(ks[14], (IN_C, 1))
    rmd = nrm(ks[15], (IN_C, 1))
    rvd = 1.0 + 0.1 * jnp.abs(nrm(ks[16], (IN_C, 1)))
    sd = gd * jax.lax.rsqrt(rvd + BN_EPS)
    p["sd"], p["bd"] = sd, betad - rmd * sd

    # upsample: Conv2d(IN_C -> OUT_SIZE, 1x1, bias=False) + BatchNorm2d (eval, folded) + ReLU
    p["wu"] = nrm(ks[17], (OUT_SIZE, HID)).astype(jnp.bfloat16)
    gu, betau = 1.0 + nrm(ks[18], (OUT_SIZE, 1)), nrm(ks[19], (OUT_SIZE, 1))
    rmu = nrm(ks[20], (OUT_SIZE, 1))
    rvu = 1.0 + 0.1 * jnp.abs(nrm(ks[21], (OUT_SIZE, 1)))
    su = gu * jax.lax.rsqrt(rvu + BN_EPS)
    p["su"], p["bu"] = su, betau - rmu * su
    return p


# ------------------------------------ main ------------------------------------
if __name__ == "__main__":
    key = jax.random.PRNGKey(0)
    k_x, k_p = jax.random.split(key)
    params = init_params(k_p)
    x = jax.random.normal(k_x, (BS, T, OUT_SIZE, H, W), jnp.float32)

    fwd = jax.jit(functools.partial(bottleneck_lstm_forward, prev=None, params=params))
    out, (h_last, c_last) = fwd(x)
    jax.block_until_ready((out, h_last, c_last))

    assert out.shape == (BS, T, OUT_SIZE, H, W)
    assert h_last.shape == (BS, HID, H, W) and c_last.shape == (BS, HID, H, W)
    assert bool(jnp.all(jnp.isfinite(out))) and bool(jnp.all(jnp.isfinite(c_last)))
    print("KERNEL_OK")
</pallas_src>

<mosaic_0001>
module attributes {stable_mosaic.version = 11 : i64} {
  func.func @_fused_lstm_kernel(%arg0: i32, %arg1: memref<4x8x128xf32, #tpu.memory_space<vmem>>, %arg2: memref<32x128xf32, #tpu.memory_space<vmem>>, %arg3: memref<32x128xf32, #tpu.memory_space<vmem>>, %arg4: memref<9x1x128xf32, #tpu.memory_space<vmem>>, %arg5: memref<128x128xf32, #tpu.memory_space<vmem>>, %arg6: memref<64x64xf32, #tpu.memory_space<vmem>>, %arg7: memref<32x8xbf16, #tpu.memory_space<vmem>>, %arg8: memref<32x1xf32, #tpu.memory_space<vmem>>, %arg9: memref<32x1xf32, #tpu.memory_space<vmem>>, %arg10: memref<128x864xbf16, #tpu.memory_space<vmem>>, %arg11: memref<128x1xf32, #tpu.memory_space<vmem>>, %arg12: memref<32x288xbf16, #tpu.memory_space<vmem>>, %arg13: memref<64x1xf32, #tpu.memory_space<vmem>>, %arg14: memref<64x1xf32, #tpu.memory_space<vmem>>, %arg15: memref<32x1xf32, #tpu.memory_space<vmem>>, %arg16: memref<32x1xf32, #tpu.memory_space<vmem>>, %arg17: memref<32x1xf32, #tpu.memory_space<vmem>>, %arg18: memref<32x1xf32, #tpu.memory_space<vmem>>, %arg19: memref<8x32xbf16, #tpu.memory_space<vmem>>, %arg20: memref<8x1xf32, #tpu.memory_space<vmem>>, %arg21: memref<8x1xf32, #tpu.memory_space<vmem>>, %arg22: memref<4x8x128xf32, #tpu.memory_space<vmem>>, %arg23: memref<32x128xf32, #tpu.memory_space<vmem>>, %arg24: memref<32x128xf32, #tpu.memory_space<vmem>>, %arg25: memref<32x128xf32, #tpu.memory_space<vmem>>, %arg26: memref<32x128xf32, #tpu.memory_space<vmem>>) attributes {dimension_semantics = [#tpu.dimension_semantics<arbitrary>], iteration_bounds = array<i64: 4>, scalar_prefetch = 0 : i64, scratch_operands = 2 : i64, tpu.core_type = #tpu.core_type<tc>, window_params = [{pipeline_mode = #tpu.pipeline_mode<synchronous>, transform_indices = @transform_0, window_bounds = array<i64: 4, 8, 128>}, {pipeline_mode = #tpu.pipeline_mode<synchronous>, transform_indices = @transform_1, window_bounds = array<i64: 32, 128>}, {pipeline_mode = #tpu.pipeline_mode<synchronous>, transform_indices = @transform_2, window_bounds = array<i64: 32, 128>}, {pipeline_mode = #tpu.pipeline_mode<synchronous>, transform_indices = @transform_3, window_bounds = array<i64: 9, 1, 128>}, {pipeline_mode = #tpu.pipeline_mode<synchronous>, transform_indices = @transform_4, window_bounds = array<i64: 128, 128>}, {pipeline_mode = #tpu.pipeline_mode<synchronous>, transform_indices = @transform_5, window_bounds = array<i64: 64, 64>}, {pipeline_mode = #tpu.pipeline_mode<synchronous>, transform_indices = @transform_6, window_bounds = array<i64: 32, 8>}, {pipeline_mode = #tpu.pipeline_mode<synchronous>, transform_indices = @transform_7, window_bounds = array<i64: 32, 1>}, {pipeline_mode = #tpu.pipeline_mode<synchronous>, transform_indices = @transform_8, window_bounds = array<i64: 32, 1>}, {pipeline_mode = #tpu.pipeline_mode<synchronous>, transform_indices = @transform_9, window_bounds = array<i64: 128, 864>}, {pipeline_mode = #tpu.pipeline_mode<synchronous>, transform_indices = @transform_10, window_bounds = array<i64: 128, 1>}, {pipeline_mode = #tpu.pipeline_mode<synchronous>, transform_indices = @transform_11, window_bounds = array<i64: 32, 288>}, {pipeline_mode = #tpu.pipeline_mode<synchronous>, transform_indices = @transform_12, window_bounds = array<i64: 64, 1>}, {pipeline_mode = #tpu.pipeline_mode<synchronous>, transform_indices = @transform_13, window_bounds = array<i64: 64, 1>}, {pipeline_mode = #tpu.pipeline_mode<synchronous>, transform_indices = @transform_14, window_bounds = array<i64: 32, 1>}, {pipeline_mode = #tpu.pipeline_mode<synchronous>, transform_indices = @transform_15, window_bounds = array<i64: 32, 1>}, {pipeline_mode = #tpu.pipeline_mode<synchronous>, transform_indices = @transform_16, window_bounds = array<i64: 32, 1>}, {pipeline_mode = #tpu.pipeline_mode<synchronous>, transform_indices = @transform_17, window_bounds = array<i64: 32, 1>}, {pipeline_mode = #tpu.pipeline_mode<synchronous>, transform_indices = @transform_18, window_bounds = array<i64: 8, 32>}, {pipeline_mode = #tpu.pipeline_mode<synchronous>, transform_indices = @transform_19, window_bounds = array<i64: 8, 1>}, {pipeline_mode = #tpu.pipeline_mode<synchronous>, transform_indices = @transform_20, window_bounds = array<i64: 8, 1>}, {pipeline_mode = #tpu.pipeline_mode<synchronous>, transform_indices = @transform_21, window_bounds = array<i64: 4, 8, 128>}, {pipeline_mode = #tpu.pipeline_mode<synchronous>, transform_indices = @transform_22, window_bounds = array<i64: 32, 128>}, {pipeline_mode = #tpu.pipeline_mode<synchronous>, transform_indices = @transform_23, window_bounds = array<i64: 32, 128>}]} {
    %c0_i32 = arith.constant 0 : i32
    %0 = arith.cmpi eq, %arg0, %c0_i32 : i32
    %1 = arith.extui %0 : i1 to i32
    %c0_i32_0 = arith.constant 0 : i32
    %2 = arith.cmpi ne, %1, %c0_i32_0 : i32
    scf.if %2 {
      %c0_86 = arith.constant 0 : index
      %c0_87 = arith.constant 0 : index
      %233 = vector.load %arg2[%c0_86, %c0_87] : memref<32x128xf32, #tpu.memory_space<vmem>>, vector<32x128xf32>
      %c0_88 = arith.constant 0 : index
      %c0_89 = arith.constant 0 : index
      %234 = vector.load %arg25[%c0_88, %c0_89] : memref<32x128xf32, #tpu.memory_space<vmem>>, vector<32x128xf32>
      tpu.vector_store %arg25[%c0_88, %c0_89], %233 {strides = array<i32>} : memref<32x128xf32, #tpu.memory_space<vmem>>, vector<32x128xf32>,
      %c0_90 = arith.constant 0 : index
      %c0_91 = arith.constant 0 : index
      %235 = vector.load %arg3[%c0_90, %c0_91] : memref<32x128xf32, #tpu.memory_space<vmem>>, vector<32x128xf32>
      %c0_92 = arith.constant 0 : index
      %c0_93 = arith.constant 0 : index
      %236 = vector.load %arg26[%c0_92, %c0_93] : memref<32x128xf32, #tpu.memory_space<vmem>>, vector<32x128xf32>
      tpu.vector_store %arg26[%c0_92, %c0_93], %235 {strides = array<i32>} : memref<32x128xf32, #tpu.memory_space<vmem>>, vector<32x128xf32>,
    } else {
    }
    %c0 = arith.constant 0 : index
    %c0_1 = arith.constant 0 : index
    %3 = vector.load %arg25[%c0, %c0_1] : memref<32x128xf32, #tpu.memory_space<vmem>>, vector<32x128xf32>
    %c0_2 = arith.constant 0 : index
    %c0_3 = arith.constant 0 : index
    %4 = vector.load %arg26[%c0_2, %c0_3] : memref<32x128xf32, #tpu.memory_space<vmem>>, vector<32x128xf32>
    %c0_4 = arith.constant 0 : index
    %c0_5 = arith.constant 0 : index
    %5 = vector.load %arg5[%c0_4, %c0_5] : memref<128x128xf32, #tpu.memory_space<vmem>>, vector<128x128xf32>
    %c0_6 = arith.constant 0 : index
    %c0_7 = arith.constant 0 : index
    %c0_8 = arith.constant 0 : index
    %6 = vector.load %arg4[%c0_6, %c0_7, %c0_8] : memref<9x1x128xf32, #tpu.memory_space<vmem>>, vector<9x1x128xf32>
    %c0_9 = arith.constant 0 : index
    %c0_10 = arith.constant 0 : index
    %7 = vector.load %arg7[%c0_9, %c0_10] : memref<32x8xbf16, #tpu.memory_space<vmem>>, vector<32x8xbf16>
    %8 = arith.index_cast %arg0 : i32 to index
    %c0_11 = arith.constant 0 : index
    %c0_12 = arith.constant 0 : index
    %9 = vector.load %arg1[%8, %c0_11, %c0_12] : memref<4x8x128xf32, #tpu.memory_space<vmem>>, vector<1x8x128xf32>
    %10 = vector.shape_cast %9 : vector<1x8x128xf32> to vector<8x128xf32>
    %11 = arith.truncf %10 : vector<8x128xf32> to vector<8x128xbf16>
    %cst = arith.constant dense<0.000000e+00> : vector<32x128xf32>
    %12 = tpu.matmul %7, %11, %cst {dimension_numbers = #tpu.dot_dimension_numbers<[1], [0], [0], [1], [0, 0, 1, 1], [], []>} : vector<32x8xbf16>, vector<8x128xbf16>, vector<32x128xf32> -> vector<32x128xf32>
    %c0_13 = arith.constant 0 : index
    %c0_14 = arith.constant 0 : index
    %13 = vector.load %arg8[%c0_13, %c0_14] : memref<32x1xf32, #tpu.memory_space<vmem>>, vector<32x1xf32>
    %14 = vector.broadcast %13 : vector<32x1xf32> to vector<32x128xf32>
    %15 = arith.mulf %12, %14 : vector<32x128xf32>
    %c0_15 = arith.constant 0 : index
    %c0_16 = arith.constant 0 : index
    %16 = vector.load %arg9[%c0_15, %c0_16] : memref<32x1xf32, #tpu.memory_space<vmem>>, vector<32x1xf32>
    %17 = vector.broadcast %16 : vector<32x1xf32> to vector<32x128xf32>
    %18 = arith.addf %15, %17 : vector<32x128xf32>
    %cst_17 = arith.constant 0.000000e+00 : f32
    %19 = vector.broadcast %cst_17 : f32 to vector<32x128xf32>
    %20 = arith.maximumf %18, %19 : vector<32x128xf32>
    %21 = tpu.concatenate %20, %3, %4 in 0 : vector<32x128xf32>, vector<32x128xf32>, vector<32x128xf32> -> vector<96x128xf32>
    %c0_18 = arith.constant 0 : index
    %c0_19 = arith.constant 0 : index
    %22 = vector.load %arg10[%c0_18, %c0_19] : memref<128x864xbf16, #tpu.memory_space<vmem>>, vector<128x864xbf16>
    %c9_i32 = arith.constant 9 : i32
    %23 = tpu.dynamic_rotate %21 by %c9_i32 dim 1 : vector<96x128xf32>, i32 -> vector<96x128xf32>
    %24 = vector.extract_strided_slice %6 {offsets = [0, 0, 0], sizes = [1, 1, 128], strides = [1, 1, 1]} : vector<9x1x128xf32> to vector<1x1x128xf32>
    %25 = vector.shape_cast %24 : vector<1x1x128xf32> to vector<1x128xf32>
    %26 = vector.broadcast %25 : vector<1x128xf32> to vector<96x128xf32>
    %27 = arith.mulf %23, %26 : vector<96x128xf32>
    %28 = arith.truncf %27 : vector<96x128xf32> to vector<96x128xbf16>
    %c8_i32 = arith.constant 8 : i32
    %29 = tpu.dynamic_rotate %21 by %c8_i32 dim 1 : vector<96x128xf32>, i32 -> vector<96x128xf32>
    %30 = vector.extract_strided_slice %6 {offsets = [1, 0, 0], sizes = [1, 1, 128], strides = [1, 1, 1]} : vector<9x1x128xf32> to vector<1x1x128xf32>
    %31 = vector.shape_cast %30 : vector<1x1x128xf32> to vector<1x128xf32>
    %32 = vector.broadcast %31 : vector<1x128xf32> to vector<96x128xf32>
    %33 = arith.mulf %29, %32 : vector<96x128xf32>
    %34 = arith.truncf %33 : vector<96x128xf32> to vector<96x128xbf16>
    %c7_i32 = arith.constant 7 : i32
    %35 = tpu.dynamic_rotate %21 by %c7_i32 dim 1 : vector<96x128xf32>, i32 -> vector<96x128xf32>
    %36 = vector.extract_strided_slice %6 {offsets = [2, 0, 0], sizes = [1, 1, 128], strides = [1, 1, 1]} : vector<9x1x128xf32> to vector<1x1x128xf32>
    %37 = vector.shape_cast %36 : vector<1x1x128xf32> to vector<1x128xf32>
    %38 = vector.broadcast %37 : vector<1x128xf32> to vector<96x128xf32>
    %39 = arith.mulf %35, %38 : vector<96x128xf32>
    %40 = arith.truncf %39 : vector<96x128xf32> to vector<96x128xbf16>
    %c1_i32 = arith.constant 1 : i32
    %41 = tpu.dynamic_rotate %21 by %c1_i32 dim 1 : vector<96x128xf32>, i32 -> vector<96x128xf32>
    %42 = vector.extract_strided_slice %6 {offsets = [3, 0, 0], sizes = [1, 1, 128], strides = [1, 1, 1]} : vector<9x1x128xf32> to vector<1x1x128xf32>
    %43 = vector.shape_cast %42 : vector<1x1x128xf32> to vector<1x128xf32>
    %44 = vector.broadcast %43 : vector<1x128xf32> to vector<96x128xf32>
    %45 = arith.mulf %41, %44 : vector<96x128xf32>
    %46 = arith.truncf %45 : vector<96x128xf32> to vector<96x128xbf16>
    %47 = arith.truncf %21 : vector<96x128xf32> to vector<96x128xbf16>
    %c127_i32 = arith.constant 127 : i32
    %48 = tpu.dynamic_rotate %21 by %c127_i32 dim 1 : vector<96x128xf32>, i32 -> vector<96x128xf32>
    %49 = vector.extract_strided_slice %6 {offsets = [5, 0, 0], sizes = [1, 1, 128], strides = [1, 1, 1]} : vector<9x1x128xf32> to vector<1x1x128xf32>
    %50 = vector.shape_cast %49 : vector<1x1x128xf32> to vector<1x128xf32>
    %51 = vector.broadcast %50 : vector<1x128xf32> to vector<96x128xf32>
    %52 = arith.mulf %48, %51 : vector<96x128xf32>
    %53 = arith.truncf %52 : vector<96x128xf32> to vector<96x128xbf16>
    %c121_i32 = arith.constant 121 : i32
    %54 = tpu.dynamic_rotate %21 by %c121_i32 dim 1 : vector<96x128xf32>, i32 -> vector<96x128xf32>
    %55 = vector.extract_strided_slice %6 {offsets = [6, 0, 0], sizes = [1, 1, 128], strides = [1, 1, 1]} : vector<9x1x128xf32> to vector<1x1x128xf32>
    %56 = vector.shape_cast %55 : vector<1x1x128xf32> to vector<1x128xf32>
    %57 = vector.broadcast %56 : vector<1x128xf32> to vector<96x128xf32>
    %58 = arith.mulf %54, %57 : vector<96x128xf32>
    %59 = arith.truncf %58 : vector<96x128xf32> to vector<96x128xbf16>
    %c120_i32 = arith.constant 120 : i32
    %60 = tpu.dynamic_rotate %21 by %c120_i32 dim 1 : vector<96x128xf32>, i32 -> vector<96x128xf32>
    %61 = vector.extract_strided_slice %6 {offsets = [7, 0, 0], sizes = [1, 1, 128], strides = [1, 1, 1]} : vector<9x1x128xf32> to vector<1x1x128xf32>
    %62 = vector.shape_cast %61 : vector<1x1x128xf32> to vector<1x128xf32>
    %63 = vector.broadcast %62 : vector<1x128xf32> to vector<96x128xf32>
    %64 = arith.mulf %60, %63 : vector<96x128xf32>
    %65 = arith.truncf %64 : vector<96x128xf32> to vector<96x128xbf16>
    %c119_i32 = arith.constant 119 : i32
    %66 = tpu.dynamic_rotate %21 by %c119_i32 dim 1 : vector<96x128xf32>, i32 -> vector<96x128xf32>
    %67 = vector.extract_strided_slice %6 {offsets = [8, 0, 0], sizes = [1, 1, 128], strides = [1, 1, 1]} : vector<9x1x128xf32> to vector<1x1x128xf32>
    %68 = vector.shape_cast %67 : vector<1x1x128xf32> to vector<1x128xf32>
    %69 = vector.broadcast %68 : vector<1x128xf32> to vector<96x128xf32>
    %70 = arith.mulf %66, %69 : vector<96x128xf32>
    %71 = arith.truncf %70 : vector<96x128xf32> to vector<96x128xbf16>
    %72 = tpu.concatenate %28, %34, %40, %46, %47, %53, %59, %65, %71 in 0 : vector<96x128xbf16>, vector<96x128xbf16>, vector<96x128xbf16>, vector<96x128xbf16>, vector<96x128xbf16>, vector<96x128xbf16>, vector<96x128xbf16>, vector<96x128xbf16>, vector<96x128xbf16> -> vector<864x128xbf16>
    %cst_20 = arith.constant dense<0.000000e+00> : vector<128x128xf32>
    %73 = tpu.matmul %22, %72, %cst_20 {dimension_numbers = #tpu.dot_dimension_numbers<[1], [0], [0], [1], [0, 0, 1, 1], [], []>} : vector<128x864xbf16>, vector<864x128xbf16>, vector<128x128xf32> -> vector<128x128xf32>
    %c0_21 = arith.constant 0 : index
    %c0_22 = arith.constant 0 : index
    %74 = vector.load %arg11[%c0_21, %c0_22] : memref<128x1xf32, #tpu.memory_space<vmem>>, vector<128x1xf32>
    %75 = vector.broadcast %74 : vector<128x1xf32> to vector<128x128xf32>
    %76 = arith.addf %73, %75 : vector<128x128xf32>
    %77 = vector.extract_strided_slice %76 {offsets = [0, 0], sizes = [64, 128], strides = [1, 1]} : vector<128x128xf32> to vector<64x128xf32>
    %c0_23 = arith.constant 0 : index
    %c0_24 = arith.constant 0 : index
    %78 = vector.load %arg13[%c0_23, %c0_24] : memref<64x1xf32, #tpu.memory_space<vmem>>, vector<64x1xf32>
    %c0_25 = arith.constant 0 : index
    %c0_26 = arith.constant 0 : index
    %79 = vector.load %arg14[%c0_25, %c0_26] : memref<64x1xf32, #tpu.memory_space<vmem>>, vector<64x1xf32>
    %c0_27 = arith.constant 0 : index
    %c0_28 = arith.constant 0 : index
    %80 = vector.load %arg6[%c0_27, %c0_28] : memref<64x64xf32, #tpu.memory_space<vmem>>, vector<64x64xf32>
    %cst_29 = arith.constant dense<0.000000e+00> : vector<64x128xf32>
    %81 = tpu.matmul %80, %77, %cst_29 {dimension_numbers = #tpu.dot_dimension_numbers<[1], [0], [0], [1], [0, 0, 1, 1], [], []>} : vector<64x64xf32>, vector<64x128xf32>, vector<64x128xf32> -> vector<64x128xf32>
    %cst_30 = arith.constant dense<0.000000e+00> : vector<64x128xf32>
    %82 = tpu.matmul %81, %5, %cst_30 {dimension_numbers = #tpu.dot_dimension_numbers<[1], [0], [0], [1], [0, 0, 1, 1], [], []>} : vector<64x128xf32>, vector<128x128xf32>, vector<64x128xf32> -> vector<64x128xf32>
    %83 = arith.subf %77, %82 : vector<64x128xf32>
    %84 = arith.mulf %83, %83 : vector<64x128xf32>
    %cst_31 = arith.constant dense<0.000000e+00> : vector<64x128xf32>
    %85 = tpu.matmul %80, %84, %cst_31 {dimension_numbers = #tpu.dot_dimension_numbers<[1], [0], [0], [1], [0, 0, 1, 1], [], []>} : vector<64x64xf32>, vector<64x128xf32>, vector<64x128xf32> -> vector<64x128xf32>
    %cst_32 = arith.constant dense<0.000000e+00> : vector<64x128xf32>
    %86 = tpu.matmul %85, %5, %cst_32 {dimension_numbers = #tpu.dot_dimension_numbers<[1], [0], [0], [1], [0, 0, 1, 1], [], []>} : vector<64x128xf32>, vector<128x128xf32>, vector<64x128xf32> -> vector<64x128xf32>
    %cst_33 = arith.constant 0.000000e+00 : f32
    %87 = vector.broadcast %cst_33 : f32 to vector<64x128xf32>
    %88 = arith.maximumf %86, %87 : vector<64x128xf32>
    %cst_34 = arith.constant 9.99999974E-6 : f32
    %89 = vector.broadcast %cst_34 : f32 to vector<64x128xf32>
    %90 = arith.addf %88, %89 : vector<64x128xf32>
    %91 = math.rsqrt %90 : vector<64x128xf32>
    %92 = vector.broadcast %78 : vector<64x1xf32> to vector<64x128xf32>
    %93 = arith.mulf %91, %92 : vector<64x128xf32>
    %94 = arith.mulf %83, %93 : vector<64x128xf32>
    %95 = vector.broadcast %79 : vector<64x1xf32> to vector<64x128xf32>
    %96 = arith.addf %94, %95 : vector<64x128xf32>
    %97 = vector.extract_strided_slice %96 {offsets = [0, 0], sizes = [32, 128], strides = [1, 1]} : vector<64x128xf32> to vector<32x128xf32>
    %cst_35 = arith.constant 5.000000e-01 : f32
    %98 = vector.broadcast %cst_35 : f32 to vector<32x128xf32>
    %99 = arith.mulf %98, %97 : vector<32x128xf32>
    %100 = math.tanh %99 : vector<32x128xf32>
    %cst_36 = arith.constant 1.000000e+00 : f32
    %101 = vector.broadcast %cst_36 : f32 to vector<32x128xf32>
    %102 = arith.addf %100, %101 : vector<32x128xf32>
    %cst_37 = arith.constant 5.000000e-01 : f32
    %103 = vector.broadcast %cst_37 : f32 to vector<32x128xf32>
    %104 = arith.mulf %103, %102 : vector<32x128xf32>
    %105 = vector.extract_strided_slice %96 {offsets = [32, 0], sizes = [32, 128], strides = [1, 1]} : vector<64x128xf32> to vector<32x128xf32>
    %cst_38 = arith.constant 5.000000e-01 : f32
    %106 = vector.broadcast %cst_38 : f32 to vector<32x128xf32>
    %107 = arith.mulf %106, %105 : vector<32x128xf32>
    %108 = math.tanh %107 : vector<32x128xf32>
    %cst_39 = arith.constant 1.000000e+00 : f32
    %109 = vector.broadcast %cst_39 : f32 to vector<32x128xf32>
    %110 = arith.addf %108, %109 : vector<32x128xf32>
    %cst_40 = arith.constant 5.000000e-01 : f32
    %111 = vector.broadcast %cst_40 : f32 to vector<32x128xf32>
    %112 = arith.mulf %111, %110 : vector<32x128xf32>
    %113 = vector.extract_strided_slice %76 {offsets = [64, 0], sizes = [32, 128], strides = [1, 1]} : vector<128x128xf32> to vector<32x128xf32>
    %c0_41 = arith.constant 0 : index
    %c0_42 = arith.constant 0 : index
    %114 = vector.load %arg17[%c0_41, %c0_42] : memref<32x1xf32, #tpu.memory_space<vmem>>, vector<32x1xf32>
    %c0_43 = arith.constant 0 : index
    %c0_44 = arith.constant 0 : index
    %115 = vector.load %arg18[%c0_43, %c0_44] : memref<32x1xf32, #tpu.memory_space<vmem>>, vector<32x1xf32>
    %cst_45 = arith.constant dense<0.000000e+00> : vector<32x128xf32>
    %116 = tpu.matmul %113, %5, %cst_45 {dimension_numbers = #tpu.dot_dimension_numbers<[1], [0], [0], [1], [0, 0, 1, 1], [], []>} : vector<32x128xf32>, vector<128x128xf32>, vector<32x128xf32> -> vector<32x128xf32>
    %117 = arith.subf %113, %116 : vector<32x128xf32>
    %118 = arith.mulf %117, %117 : vector<32x128xf32>
    %cst_46 = arith.constant dense<0.000000e+00> : vector<32x128xf32>
    %119 = tpu.matmul %118, %5, %cst_46 {dimension_numbers = #tpu.dot_dimension_numbers<[1], [0], [0], [1], [0, 0, 1, 1], [], []>} : vector<32x128xf32>, vector<128x128xf32>, vector<32x128xf32> -> vector<32x128xf32>
    %cst_47 = arith.constant 0.000000e+00 : f32
    %120 = vector.broadcast %cst_47 : f32 to vector<32x128xf32>
    %121 = arith.maximumf %119, %120 : vector<32x128xf32>
    %cst_48 = arith.constant 9.99999974E-6 : f32
    %122 = vector.broadcast %cst_48 : f32 to vector<32x128xf32>
    %123 = arith.addf %121, %122 : vector<32x128xf32>
    %124 = math.rsqrt %123 : vector<32x128xf32>
    %125 = vector.broadcast %114 : vector<32x1xf32> to vector<32x128xf32>
    %126 = arith.mulf %124, %125 : vector<32x128xf32>
    %127 = arith.mulf %117, %126 : vector<32x128xf32>
    %128 = vector.broadcast %115 : vector<32x1xf32> to vector<32x128xf32>
    %129 = arith.addf %127, %128 : vector<32x128xf32>
    %130 = math.tanh %129 : vector<32x128xf32>
    %131 = arith.mulf %112, %4 : vector<32x128xf32>
    %132 = arith.mulf %104, %130 : vector<32x128xf32>
    %133 = arith.addf %131, %132 : vector<32x128xf32>
    %134 = vector.extract_strided_slice %76 {offsets = [96, 0], sizes = [32, 128], strides = [1, 1]} : vector<128x128xf32> to vector<32x128xf32>
    %c0_49 = arith.constant 0 : index
    %c0_50 = arith.constant 0 : index
    %135 = vector.load %arg12[%c0_49, %c0_50] : memref<32x288xbf16, #tpu.memory_space<vmem>>, vector<32x288xbf16>
    %c9_i32_51 = arith.constant 9 : i32
    %136 = tpu.dynamic_rotate %133 by %c9_i32_51 dim 1 : vector<32x128xf32>, i32 -> vector<32x128xf32>
    %137 = vector.extract_strided_slice %6 {offsets = [0, 0, 0], sizes = [1, 1, 128], strides = [1, 1, 1]} : vector<9x1x128xf32> to vector<1x1x128xf32>
    %138 = vector.shape_cast %137 : vector<1x1x128xf32> to vector<1x128xf32>
    %139 = vector.broadcast %138 : vector<1x128xf32> to vector<32x128xf32>
    %140 = arith.mulf %136, %139 : vector<32x128xf32>
    %141 = arith.truncf %140 : vector<32x128xf32> to vector<32x128xbf16>
    %c8_i32_52 = arith.constant 8 : i32
    %142 = tpu.dynamic_rotate %133 by %c8_i32_52 dim 1 : vector<32x128xf32>, i32 -> vector<32x128xf32>
    %143 = vector.extract_strided_slice %6 {offsets = [1, 0, 0], sizes = [1, 1, 128], strides = [1, 1, 1]} : vector<9x1x128xf32> to vector<1x1x128xf32>
    %144 = vector.shape_cast %143 : vector<1x1x128xf32> to vector<1x128xf32>
    %145 = vector.broadcast %144 : vector<1x128xf32> to vector<32x128xf32>
    %146 = arith.mulf %142, %145 : vector<32x128xf32>
    %147 = arith.truncf %146 : vector<32x128xf32> to vector<32x128xbf16>
    %c7_i32_53 = arith.constant 7 : i32
    %148 = tpu.dynamic_rotate %133 by %c7_i32_53 dim 1 : vector<32x128xf32>, i32 -> vector<32x128xf32>
    %149 = vector.extract_strided_slice %6 {offsets = [2, 0, 0], sizes = [1, 1, 128], strides = [1, 1, 1]} : vector<9x1x128xf32> to vector<1x1x128xf32>
    %150 = vector.shape_cast %149 : vector<1x1x128xf32> to vector<1x128xf32>
    %151 = vector.broadcast %150 : vector<1x128xf32> to vector<32x128xf32>
    %152 = arith.mulf %148, %151 : vector<32x128xf32>
    %153 = arith.truncf %152 : vector<32x128xf32> to vector<32x128xbf16>
    %c1_i32_54 = arith.constant 1 : i32
    %154 = tpu.dynamic_rotate %133 by %c1_i32_54 dim 1 : vector<32x128xf32>, i32 -> vector<32x128xf32>
    %155 = vector.extract_strided_slice %6 {offsets = [3, 0, 0], sizes = [1, 1, 128], strides = [1, 1, 1]} : vector<9x1x128xf32> to vector<1x1x128xf32>
    %156 = vector.shape_cast %155 : vector<1x1x128xf32> to vector<1x128xf32>
    %157 = vector.broadcast %156 : vector<1x128xf32> to vector<32x128xf32>
    %158 = arith.mulf %154, %157 : vector<32x128xf32>
    %159 = arith.truncf %158 : vector<32x128xf32> to vector<32x128xbf16>
    %160 = arith.truncf %133 : vector<32x128xf32> to vector<32x128xbf16>
    %c127_i32_55 = arith.constant 127 : i32
    %161 = tpu.dynamic_rotate %133 by %c127_i32_55 dim 1 : vector<32x128xf32>, i32 -> vector<32x128xf32>
    %162 = vector.extract_strided_slice %6 {offsets = [5, 0, 0], sizes = [1, 1, 128], strides = [1, 1, 1]} : vector<9x1x128xf32> to vector<1x1x128xf32>
    %163 = vector.shape_cast %162 : vector<1x1x128xf32> to vector<1x128xf32>
    %164 = vector.broadcast %163 : vector<1x128xf32> to vector<32x128xf32>
    %165 = arith.mulf %161, %164 : vector<32x128xf32>
    %166 = arith.truncf %165 : vector<32x128xf32> to vector<32x128xbf16>
    %c121_i32_56 = arith.constant 121 : i32
    %167 = tpu.dynamic_rotate %133 by %c121_i32_56 dim 1 : vector<32x128xf32>, i32 -> vector<32x128xf32>
    %168 = vector.extract_strided_slice %6 {offsets = [6, 0, 0], sizes = [1, 1, 128], strides = [1, 1, 1]} : vector<9x1x128xf32> to vector<1x1x128xf32>
    %169 = vector.shape_cast %168 : vector<1x1x128xf32> to vector<1x128xf32>
    %170 = vector.broadcast %169 : vector<1x128xf32> to vector<32x128xf32>
    %171 = arith.mulf %167, %170 : vector<32x128xf32>
    %172 = arith.truncf %171 : vector<32x128xf32> to vector<32x128xbf16>
    %c120_i32_57 = arith.constant 120 : i32
    %173 = tpu.dynamic_rotate %133 by %c120_i32_57 dim 1 : vector<32x128xf32>, i32 -> vector<32x128xf32>
    %174 = vector.extract_strided_slice %6 {offsets = [7, 0, 0], sizes = [1, 1, 128], strides = [1, 1, 1]} : vector<9x1x128xf32> to vector<1x1x128xf32>
    %175 = vector.shape_cast %174 : vector<1x1x128xf32> to vector<1x128xf32>
    %176 = vector.broadcast %175 : vector<1x128xf32> to vector<32x128xf32>
    %177 = arith.mulf %173, %176 : vector<32x128xf32>
    %178 = arith.truncf %177 : vector<32x128xf32> to vector<32x128xbf16>
    %c119_i32_58 = arith.constant 119 : i32
    %179 = tpu.dynamic_rotate %133 by %c119_i32_58 dim 1 : vector<32x128xf32>, i32 -> vector<32x128xf32>
    %180 = vector.extract_strided_slice %6 {offsets = [8, 0, 0], sizes = [1, 1, 128], strides = [1, 1, 1]} : vector<9x1x128xf32> to vector<1x1x128xf32>
    %181 = vector.shape_cast %180 : vector<1x1x128xf32> to vector<1x128xf32>
    %182 = vector.broadcast %181 : vector<1x128xf32> to vector<32x128xf32>
    %183 = arith.mulf %179, %182 : vector<32x128xf32>
    %184 = arith.truncf %183 : vector<32x128xf32> to vector<32x128xbf16>
    %185 = tpu.concatenate %141, %147, %153, %159, %160, %166, %172, %178, %184 in 0 : vector<32x128xbf16>, vector<32x128xbf16>, vector<32x128xbf16>, vector<32x128xbf16>, vector<32x128xbf16>, vector<32x128xbf16>, vector<32x128xbf16>, vector<32x128xbf16>, vector<32x128xbf16> -> vector<288x128xbf16>
    %cst_59 = arith.constant dense<0.000000e+00> : vector<32x128xf32>
    %186 = tpu.matmul %135, %185, %cst_59 {dimension_numbers = #tpu.dot_dimension_numbers<[1], [0], [0], [1], [0, 0, 1, 1], [], []>} : vector<32x288xbf16>, vector<288x128xbf16>, vector<32x128xf32> -> vector<32x128xf32>
    %187 = arith.addf %134, %186 : vector<32x128xf32>
    %c0_60 = arith.constant 0 : index
    %c0_61 = arith.constant 0 : index
    %188 = vector.load %arg15[%c0_60, %c0_61] : memref<32x1xf32, #tpu.memory_space<vmem>>, vector<32x1xf32>
    %c0_62 = arith.constant 0 : index
    %c0_63 = arith.constant 0 : index
    %189 = vector.load %arg16[%c0_62, %c0_63] : memref<32x1xf32, #tpu.memory_space<vmem>>, vector<32x1xf32>
    %cst_64 = arith.constant dense<0.000000e+00> : vector<32x128xf32>
    %190 = tpu.matmul %187, %5, %cst_64 {dimension_numbers = #tpu.dot_dimension_numbers<[1], [0], [0], [1], [0, 0, 1, 1], [], []>} : vector<32x128xf32>, vector<128x128xf32>, vector<32x128xf32> -> vector<32x128xf32>
    %191 = arith.subf %187, %190 : vector<32x128xf32>
    %192 = arith.mulf %191, %191 : vector<32x128xf32>
    %cst_65 = arith.constant dense<0.000000e+00> : vector<32x128xf32>
    %193 = tpu.matmul %192, %5, %cst_65 {dimension_numbers = #tpu.dot_dimension_numbers<[1], [0], [0], [1], [0, 0, 1, 1], [], []>} : vector<32x128xf32>, vector<128x128xf32>, vector<32x128xf32> -> vector<32x128xf32>
    %cst_66 = arith.constant 0.000000e+00 : f32
    %194 = vector.broadcast %cst_66 : f32 to vector<32x128xf32>
    %195 = arith.maximumf %193, %194 : vector<32x128xf32>
    %cst_67 = arith.constant 9.99999974E-6 : f32
    %196 = vector.broadcast %cst_67 : f32 to vector<32x128xf32>
    %197 = arith.addf %195, %196 : vector<32x128xf32>
    %198 = math.rsqrt %197 : vector<32x128xf32>
    %199 = vector.broadcast %188 : vector<32x1xf32> to vector<32x128xf32>
    %200 = arith.mulf %198, %199 : vector<32x128xf32>
    %201 = arith.mulf %191, %200 : vector<32x128xf32>
    %202 = vector.broadcast %189 : vector<32x1xf32> to vector<32x128xf32>
    %203 = arith.addf %201, %202 : vector<32x128xf32>
    %cst_68 = arith.constant 5.000000e-01 : f32
    %204 = vector.broadcast %cst_68 : f32 to vector<32x128xf32>
    %205 = arith.mulf %204, %203 : vector<32x128xf32>
    %206 = math.tanh %205 : vector<32x128xf32>
    %cst_69 = arith.constant 1.000000e+00 : f32
    %207 = vector.broadcast %cst_69 : f32 to vector<32x128xf32>
    %208 = arith.addf %206, %207 : vector<32x128xf32>
    %cst_70 = arith.constant 5.000000e-01 : f32
    %209 = vector.broadcast %cst_70 : f32 to vector<32x128xf32>
    %210 = arith.mulf %209, %208 : vector<32x128xf32>
    %211 = math.tanh %133 : vector<32x128xf32>
    %212 = arith.mulf %210, %211 : vector<32x128xf32>
    %c0_71 = arith.constant 0 : index
    %c0_72 = arith.constant 0 : index
    %213 = vector.load %arg19[%c0_71, %c0_72] : memref<8x32xbf16, #tpu.memory_space<vmem>>, vector<8x32xbf16>
    %214 = arith.truncf %212 : vector<32x128xf32> to vector<32x128xbf16>
    %cst_73 = arith.constant dense<0.000000e+00> : vector<8x128xf32>
    %215 = tpu.matmul %213, %214, %cst_73 {dimension_numbers = #tpu.dot_dimension_numbers<[1], [0], [0], [1], [0, 0, 1, 1], [], []>} : vector<8x32xbf16>, vector<32x128xbf16>, vector<8x128xf32> -> vector<8x128xf32>
    %c0_74 = arith.constant 0 : index
    %c0_75 = arith.constant 0 : index
    %216 = vector.load %arg20[%c0_74, %c0_75] : memref<8x1xf32, #tpu.memory_space<vmem>>, vector<8x1xf32>
    %217 = vector.broadcast %216 : vector<8x1xf32> to vector<8x128xf32>
    %218 = arith.mulf %215, %217 : vector<8x128xf32>
    %c0_76 = arith.constant 0 : index
    %c0_77 = arith.constant 0 : index
    %219 = vector.load %arg21[%c0_76, %c0_77] : memref<8x1xf32, #tpu.memory_space<vmem>>, vector<8x1xf32>
    %220 = vector.broadcast %219 : vector<8x1xf32> to vector<8x128xf32>
    %221 = arith.addf %218, %220 : vector<8x128xf32>
    %cst_78 = arith.constant 0.000000e+00 : f32
    %222 = vector.broadcast %cst_78 : f32 to vector<8x128xf32>
    %223 = arith.maximumf %221, %222 : vector<8x128xf32>
    %224 = arith.index_cast %arg0 : i32 to index
    %c0_79 = arith.constant 0 : index
    %c0_80 = arith.constant 0 : index
    %225 = vector.load %arg22[%224, %c0_79, %c0_80] : memref<4x8x128xf32, #tpu.memory_space<vmem>>, vector<1x8x128xf32>
    %226 = vector.shape_cast %225 : vector<1x8x128xf32> to vector<8x128xf32>
    %227 = vector.shape_cast %223 : vector<8x128xf32> to vector<1x8x128xf32>
    tpu.vector_store %arg22[%224, %c0_79, %c0_80], %227 {strides = array<i32>} : memref<4x8x128xf32, #tpu.memory_space<vmem>>, vector<1x8x128xf32>,
    %c0_81 = arith.constant 0 : index
    %c0_82 = arith.constant 0 : index
    %228 = vector.load %arg25[%c0_81, %c0_82] : memref<32x128xf32, #tpu.memory_space<vmem>>, vector<32x128xf32>
    tpu.vector_store %arg25[%c0_81, %c0_82], %212 {strides = array<i32>} : memref<32x128xf32, #tpu.memory_space<vmem>>, vector<32x128xf32>,
    %c0_83 = arith.constant 0 : index
    %c0_84 = arith.constant 0 : index
    %229 = vector.load %arg26[%c0_83, %c0_84] : memref<32x128xf32, #tpu.memory_space<vmem>>, vector<32x128xf32>
    tpu.vector_store %arg26[%c0_83, %c0_84], %133 {strides = array<i32>} : memref<32x128xf32, #tpu.memory_space<vmem>>, vector<32x128xf32>,
    %c3_i32 = arith.constant 3 : i32
    %230 = arith.cmpi eq, %arg0, %c3_i32 : i32
    %231 = arith.extui %230 : i1 to i32
    %c0_i32_85 = arith.constant 0 : i32
    %232 = arith.cmpi ne, %231, %c0_i32_85 : i32
    scf.if %232 {
      %c0_86 = arith.constant 0 : index
      %c0_87 = arith.constant 0 : index
      %233 = vector.load %arg23[%c0_86, %c0_87] : memref<32x128xf32, #tpu.memory_space<vmem>>, vector<32x128xf32>
      tpu.vector_store %arg23[%c0_86, %c0_87], %212 {strides = array<i32>} : memref<32x128xf32, #tpu.memory_space<vmem>>, vector<32x128xf32>,
      %c0_88 = arith.constant 0 : index
      %c0_89 = arith.constant 0 : index
      %234 = vector.load %arg24[%c0_88, %c0_89] : memref<32x128xf32, #tpu.memory_space<vmem>>, vector<32x128xf32>
      tpu.vector_store %arg24[%c0_88, %c0_89], %133 {strides = array<i32>} : memref<32x128xf32, #tpu.memory_space<vmem>>, vector<32x128xf32>,
    } else {
    }
    return
  }
  func.func @transform_0(%arg0: i32) -> (i32, i32, i32) {
    %c0_i32 = arith.constant 0 : i32
    %c0_i32_0 = arith.constant 0 : i32
    %c0_i32_1 = arith.constant 0 : i32
    %c0_i32_2 = arith.constant 0 : i32
    return %c0_i32, %c0_i32_0, %c0_i32_1 : i32, i32, i32
  }
  func.func @transform_1(%arg0: i32) -> (i32, i32) {
    %c0_i32 = arith.constant 0 : i32
    %c0_i32_0 = arith.constant 0 : i32
    %c0_i32_1 = arith.constant 0 : i32
    return %c0_i32, %c0_i32_0 : i32, i32
  }
  func.func @transform_2(%arg0: i32) -> (i32, i32) {
    %c0_i32 = arith.constant 0 : i32
    %c0_i32_0 = arith.constant 0 : i32
    %c0_i32_1 = arith.constant 0 : i32
    return %c0_i32, %c0_i32_0 : i32, i32
  }
  func.func @transform_3(%arg0: i32) -> (i32, i32, i32) {
    %c0_i32 = arith.constant 0 : i32
    %c0_i32_0 = arith.constant 0 : i32
    %c0_i32_1 = arith.constant 0 : i32
    %c0_i32_2 = arith.constant 0 : i32
    return %c0_i32, %c0_i32_0, %c0_i32_1 : i32, i32, i32
  }
  func.func @transform_4(%arg0: i32) -> (i32, i32) {
    %c0_i32 = arith.constant 0 : i32
    %c0_i32_0 = arith.constant 0 : i32
    %c0_i32_1 = arith.constant 0 : i32
    return %c0_i32, %c0_i32_0 : i32, i32
  }
  func.func @transform_5(%arg0: i32) -> (i32, i32) {
    %c0_i32 = arith.constant 0 : i32
    %c0_i32_0 = arith.constant 0 : i32
    %c0_i32_1 = arith.constant 0 : i32
    return %c0_i32, %c0_i32_0 : i32, i32
  }
  func.func @transform_6(%arg0: i32) -> (i32, i32) {
    %c0_i32 = arith.constant 0 : i32
    %c0_i32_0 = arith.constant 0 : i32
    %c0_i32_1 = arith.constant 0 : i32
    return %c0_i32, %c0_i32_0 : i32, i32
  }
  func.func @transform_7(%arg0: i32) -> (i32, i32) {
    %c0_i32 = arith.constant 0 : i32
    %c0_i32_0 = arith.constant 0 : i32
    %c0_i32_1 = arith.constant 0 : i32
    return %c0_i32, %c0_i32_0 : i32, i32
  }
  func.func @transform_8(%arg0: i32) -> (i32, i32) {
    %c0_i32 = arith.constant 0 : i32
    %c0_i32_0 = arith.constant 0 : i32
    %c0_i32_1 = arith.constant 0 : i32
    return %c0_i32, %c0_i32_0 : i32, i32
  }
  func.func @transform_9(%arg0: i32) -> (i32, i32) {
    %c0_i32 = arith.constant 0 : i32
    %c0_i32_0 = arith.constant 0 : i32
    %c0_i32_1 = arith.constant 0 : i32
    return %c0_i32, %c0_i32_0 : i32, i32
  }
  func.func @transform_10(%arg0: i32) -> (i32, i32) {
    %c0_i32 = arith.constant 0 : i32
    %c0_i32_0 = arith.constant 0 : i32
    %c0_i32_1 = arith.constant 0 : i32
    return %c0_i32, %c0_i32_0 : i32, i32
  }
  func.func @transform_11(%arg0: i32) -> (i32, i32) {
    %c0_i32 = arith.constant 0 : i32
    %c0_i32_0 = arith.constant 0 : i32
    %c0_i32_1 = arith.constant 0 : i32
    return %c0_i32, %c0_i32_0 : i32, i32
  }
  func.func @transform_12(%arg0: i32) -> (i32, i32) {
    %c0_i32 = arith.constant 0 : i32
    %c0_i32_0 = arith.constant 0 : i32
    %c0_i32_1 = arith.constant 0 : i32
    return %c0_i32, %c0_i32_0 : i32, i32
  }
  func.func @transform_13(%arg0: i32) -> (i32, i32) {
    %c0_i32 = arith.constant 0 : i32
    %c0_i32_0 = arith.constant 0 : i32
    %c0_i32_1 = arith.constant 0 : i32
    return %c0_i32, %c0_i32_0 : i32, i32
  }
  func.func @transform_14(%arg0: i32) -> (i32, i32) {
    %c0_i32 = arith.constant 0 : i32
    %c0_i32_0 = arith.constant 0 : i32
    %c0_i32_1 = arith.constant 0 : i32
    return %c0_i32, %c0_i32_0 : i32, i32
  }
  func.func @transform_15(%arg0: i32) -> (i32, i32) {
    %c0_i32 = arith.constant 0 : i32
    %c0_i32_0 = arith.constant 0 : i32
    %c0_i32_1 = arith.constant 0 : i32
    return %c0_i32, %c0_i32_0 : i32, i32
  }
  func.func @transform_16(%arg0: i32) -> (i32, i32) {
    %c0_i32 = arith.constant 0 : i32
    %c0_i32_0 = arith.constant 0 : i32
    %c0_i32_1 = arith.constant 0 : i32
    return %c0_i32, %c0_i32_0 : i32, i32
  }
  func.func @transform_17(%arg0: i32) -> (i32, i32) {
    %c0_i32 = arith.constant 0 : i32
    %c0_i32_0 = arith.constant 0 : i32
    %c0_i32_1 = arith.constant 0 : i32
    return %c0_i32, %c0_i32_0 : i32, i32
  }
  func.func @transform_18(%arg0: i32) -> (i32, i32) {
    %c0_i32 = arith.constant 0 : i32
    %c0_i32_0 = arith.constant 0 : i32
    %c0_i32_1 = arith.constant 0 : i32
    return %c0_i32, %c0_i32_0 : i32, i32
  }
  func.func @transform_19(%arg0: i32) -> (i32, i32) {
    %c0_i32 = arith.constant 0 : i32
    %c0_i32_0 = arith.constant 0 : i32
    %c0_i32_1 = arith.constant 0 : i32
    return %c0_i32, %c0_i32_0 : i32, i32
  }
  func.func @transform_20(%arg0: i32) -> (i32, i32) {
    %c0_i32 = arith.constant 0 : i32
    %c0_i32_0 = arith.constant 0 : i32
    %c0_i32_1 = arith.constant 0 : i32
    return %c0_i32, %c0_i32_0 : i32, i32
  }
  func.func @transform_21(%arg0: i32) -> (i32, i32, i32) {
    %c0_i32 = arith.constant 0 : i32
    %c0_i32_0 = arith.constant 0 : i32
    %c0_i32_1 = arith.constant 0 : i32
    %c0_i32_2 = arith.constant 0 : i32
    return %c0_i32, %c0_i32_0, %c0_i32_1 : i32, i32, i32
  }
  func.func @transform_22(%arg0: i32) -> (i32, i32) {
    %c0_i32 = arith.constant 0 : i32
    %c0_i32_0 = arith.constant 0 : i32
    %c0_i32_1 = arith.constant 0 : i32
    return %c0_i32, %c0_i32_0 : i32, i32
  }
  func.func @transform_23(%arg0: i32) -> (i32, i32) {
    %c0_i32 = arith.constant 0 : i32
    %c0_i32_0 = arith.constant 0 : i32
    %c0_i32_1 = arith.constant 0 : i32
    return %c0_i32, %c0_i32_0 : i32, i32
  }
}

</mosaic_0001>

<bundles_post_ra>
// kernel: bottleneck_lstm_forward.1
= control target key start
LH: loop header
LB: loop body
LE: loop exit
PB: predicated region body
PF: predicated region fallthrough
CT: control target
= control target key end

     0   :  { %s6379_s0 = inlined_call_operand.vmem [shape: f32[4,8,128], index: 0, kind: input, shape index: {}]   ;;  %s6380_s1 = inlined_call_operand.vmem [shape: f32[32,128], index: 1, kind: input, shape index: {}, may-alias: {1,2}]   ;;  %s6381_s2 = inlined_call_operand.vmem [shape: f32[32,128], index: 2, kind: input, shape index: {}, may-alias: {1,2}]   ;;  %s6382_s3 = inlined_call_operand.vmem [shape: f32[9,1,128], index: 3, kind: input, shape index: {}]   ;;  %s6383_s4 = inlined_call_operand.vmem [shape: f32[128,128], index: 4, kind: input, shape index: {}]   ;;  %s6384_s5 = inlined_call_operand.vmem [shape: f32[64,64], index: 5, kind: input, shape index: {}]   ;;  %s6385_s6 = inlined_call_operand.vmem [shape: bf16[32,8], index: 6, kind: input, shape index: {}]   ;;  %s6386_s7 = inlined_call_operand.vmem [shape: f32[32,1], index: 7, kind: input, shape index: {}]   ;;  %s6387_s8 = inlined_call_operand.vmem [shape: f32[32,1], index: 8, kind: input, shape index: {}]   ;;  %s6388_s9 = inlined_call_operand.vmem [shape: bf16[128,864], index: 9, kind: input, shape index: {}]   ;;  %s6389_s10 = inlined_call_operand.vmem [shape: f32[128,1], index: 10, kind: input, shape index: {}]   ;;  %s6390_s11 = inlined_call_operand.vmem [shape: bf16[32,288], index: 11, kind: input, shape index: {}]   ;;  %s6391_s12 = inlined_call_operand.vmem [shape: f32[64,1], index: 12, kind: input, shape index: {}]   ;;  %s6392_s13 = inlined_call_operand.vmem [shape: f32[64,1], index: 13, kind: input, shape index: {}]   ;;  %s6393_s14 = inlined_call_operand.vmem [shape: f32[32,1], index: 14, kind: input, shape index: {}]   ;;  %s6394_s15 = inlined_call_operand.vmem [shape: f32[32,1], index: 15, kind: input, shape index: {}]   ;;  %s6395_s16 = inlined_call_operand.vmem [shape: f32[32,1], index: 16, kind: input, shape index: {}]   ;;  %s6396_s17 = inlined_call_operand.vmem [shape: f32[32,1], index: 17, kind: input, shape index: {}]   ;;  %s6397_s18 = inlined_call_operand.vmem [shape: bf16[8,32], index: 18, kind: input, shape index: {}]   ;;  %s6398_s19 = inlined_call_operand.vmem [shape: f32[8,1], index: 19, kind: input, shape index: {}]   ;;  %s6399_s20 = inlined_call_operand.vmem [shape: f32[8,1], index: 20, kind: input, shape index: {}]   ;;  %s6400_s21 = inlined_call_operand.vmem [shape: f32[4,8,128], index: 21, kind: output, shape index: {0}]   ;;  %s6401_s22 = inlined_call_operand.vmem [shape: f32[32,128], index: 22, kind: output, shape index: {1}]   ;;  %s6402_s23 = inlined_call_operand.vmem [shape: f32[32,128], index: 23, kind: output, shape index: {2}]  }
   0x1   :  { %6441 = sst [smem:[#allocation30_spill]] %s6379_s0 }
   0x2   :  { %6442 = sst [smem:[#allocation31_spill]] %s6380_s1 }
   0x3   :  { %6443 = sst [smem:[#allocation32_spill]] %s6381_s2 }
   0x4   :  { %6444 = sst [smem:[#allocation33_spill]] %s6382_s3 }
   0x5   :  { %6445 = sst [smem:[#allocation34_spill]] %s6383_s4  ;;  %s4290_s4 = smov 0  }
   0x6   :  { %6446 = sst [smem:[#allocation35_spill]] %s6384_s5 }
   0x7   :  { %6447 = sst [smem:[#allocation36_spill]] %s6385_s6 }
   0x8   :  { %6448 = sst [smem:[#allocation37_spill]] %s6386_s7 }
   0x9   :  { %6449 = sst [smem:[#allocation38_spill]] %s6387_s8 }
   0xa   :  { %6450 = sst [smem:[#allocation39_spill]] %s6391_s12 }
   0xb LB: > { %s4296_s30 = sadd.s32 4294967295, %s4159_s4   ;;  %p3669_p0 = scmp.ge.s32.totalorder %s4159_s4, 1  ;;  %s4159_s4 = sphi %s4290_s4, %s34_s4  }
   0xc   : > { %p617_p1 = scmp.lt.s32.totalorder %s4159_s4, 5 }
   0xe   : > { %p618_p2 = pnand %p3669_p0, %p617_p1 }
  0x10   : > { %621 = sbr.rel (%p618_p2) target bundleno = 2182 (0x886), region = 104 }
  0x15   : > { %p3670_p3 = scmp.ne.s32.totalorder %s4296_s30, 0 }
  0x16   : > { %s6451_s5 = sld [smem:[#allocation31_spill]] (!%p3670_p3) }
  0x17   : > { %675 = sbr.rel (%p3670_p3) target bundleno = 37 (0x25), region = 108  ;;  %s6452_s3 = sld [smem:[#allocation32_spill]] (!%p3670_p3) }
  0x1c   : > { %v676_v0 = vld [vmem:[%s6451_s5] sm:$0xff]  ;;  %v677_v1 = vld [vmem:[%s6451_s5 + $0x8] sm:$0xff]  ;;  %v678_v2 = vld [vmem:[%s6451_s5 + $0x10] sm:$0xff] }
  0x1d   : > { %680 = vst [vmem:[#allocation2 + $0x10] sm:$0xff] %v676_v0  ;;  %v679_v3 = vld [vmem:[%s6451_s5 + $0x18] sm:$0xff]  ;;  %v684_v4 = vld [vmem:[%s6452_s3] sm:$0xff]  ;;  %v685_v5 = vld [vmem:[%s6452_s3 + $0x8] sm:$0xff] }
  0x1e   : > { %681 = vst [vmem:[#allocation2] sm:$0xff] %v677_v1  ;;  %v686_v6 = vld [vmem:[%s6452_s3 + $0x10] sm:$0xff]  ;;  %v687_v7 = vld [vmem:[%s6452_s3 + $0x18] sm:$0xff] }
  0x1f   : > { %682 = vst [vmem:[#allocation2 + $0x18] sm:$0xff] %v678_v2 }
  0x20   : > { %683 = vst [vmem:[#allocation2 + $0x8] sm:$0xff] %v679_v3 }
  0x21   : > { %688 = vst [vmem:[#allocation3] sm:$0xff] %v684_v4 }
  0x22   : > { %689 = vst [vmem:[#allocation3 + $0x18] sm:$0xff] %v685_v5 }
  0x23   : > { %690 = vst [vmem:[#allocation3 + $0x8] sm:$0xff] %v686_v6 }
  0x24   : > { %691 = vst [vmem:[#allocation3 + $0x10] sm:$0xff] %v687_v7 }
  0x25 PF: > { %s6453_s8 = sld [smem:[#allocation38_spill]]  ;;  %s6411_s0 = sshll.u32 %s4296_s30, 3  ;;  %v4161_v10 = vmov 0   ;;  %vm749_vm0 = vcmask 1043456   ;;  %vm742_vm1 = vcmask 64512   ;;  %v4381_v27 = vld [vmem:[#allocation2] sm:$0xff] }
  0x26   : > { %s6454_s29 = sld [smem:[#allocation37_spill]]  ;;  %4042 = vset.pattern.permute.xlu1 %v4161_v10  ;;  %4041 = vset.pattern.permute.xlu0 %v4161_v10  ;;  %v4359_v21 = vld [vmem:[#allocation2 + $0x18] sm:$0xff]  ;;  %s6418_s24 = smov 7   ;;  %v4383_v28 = vld [vmem:[#allocation2 + $0x10] sm:$0xff]  ;;  %vm2016_vm2 = vcmask 785408   ;;  %vm2408_vm3 = vcmask 523264  }
  0x27   : > { %s6455_s1 = sld [smem:[#allocation30_spill]]  ;;  %4043 = vset.pattern.permute.xlu2 %v4161_v10  ;;  %v4368_v24 = vld [vmem:[#allocation2 + $0x8] sm:$0xff]  ;;  %s6412_s2 = smov 9  }
  0x28   : > { %s6456_s28 = sld [smem:[#allocation36_spill]]  ;;  %v4379_v26 = vld [vmem:[#allocation3] sm:$0xff]  ;;  %s6420_s6 = smov 8  }
  0x29   : > { %v4391_v29 = vld [vmem:[#allocation3 + $0x18] sm:$0xff]  ;;  %s6457_s7 = sld [smem:[#allocation33_spill]]  ;;  %s6414_s27 = smov 120  }
  0x2a   : > { %v4366_v23 = vld [vmem:[#allocation3 + $0x8] sm:$0xff]  ;;  %s6426_s3 = smov 121   ;;  %s6424_s25 = smov 127  }
  0x2b   : > { %v802_v8 = vld [vmem:[%s6453_s8 + $0x10] sm:$0xff]  ;;  %v803_v16 = vld [vmem:[%s6453_s8 + $0x18] sm:$0xff]  ;;  %v801_v19 = vld [vmem:[%s6453_s8 + $0x8] sm:$0xff]  ;;  %s6460_s12 = sld [smem:[#allocation39_spill]]  ;;  %s6531_s5 = smov 9  }
  0x2c   : > { %v774_v9 = vld [vmem:[%s6454_s29 + $0x10] sm:$0xff]  ;;  %816 = vperm.xlu1 %4042, %v802_v8   ;;  %v772_v13 = vld [vmem:[%s6454_s29] sm:$0xff]  ;;  %v775_v17 = vld [vmem:[%s6454_s29 + $0x18] sm:$0xff]  ;;  %p3957_p4 = scmp.ne.s32.totalorder %s4296_s30, 3 }
  0x2d   : > { %s729_s26 = scalar_lea.vmem %s6455_s1, %s6411_s0  ;;  %788 = vperm.xlu0 %4041, %v774_v9   ;;  %778 = vperm.xlu2 %4043, %v772_v13   ;;  %v773_v18 = vld [vmem:[%s6454_s29 + $0x8] sm:$0xff]  ;;  %v800_v20 = vld [vmem:[%s6453_s8] sm:$0xff]  ;;  %v4371_v25 = vld [vmem:[#allocation3 + $0x10] sm:$0xff]  ;;  %s6422_s1 = smov 119  }
  0x2e   : > { %v730_v11 = vld [vmem:[%s729_s26] sm:$0xff]  ;;  %v3961_v22 = vld [vmem:[%s6456_s28 + $0x8] sm:$0xff]  ;;  %s6416_s26 = smov 1   ;;  %s6492_s8 = sld [smem:[#allocation35_spill]] }
  0x2f   : > { %v731_v12 = vpack.c.bf16 %v730_v11, %v730_v11  ;;  %v3960_v14 = vld [vmem:[%s6456_s28] sm:$0xff]  ;;  %s6530_s0 = smov 120  }
  0x30   : > { %v4450_v52 = vld [vmem:[%s6457_s7 + $0x2] ss:$0 sm:$0xff]  ;;  %v4455_v54 = vld [vmem:[%s6457_s7 + $0x3] ss:$0 sm:$0xff] }
  0x31   : > { %v751_v15 = vsel %vm749_vm0, %v731_v12, 0 }
  0x32   : > { %760 = vmatpush.bf16.msra.mxu0 %v751_v15 }
  0x34   : > { %821 = vperm.xlu1 %4042, %v803_v16  }
  0x35   : > { %3680 = vmatmul.msk.bf16.vlgmr.msra.gmra.mxu0 %vm742_vm1, %v3960_v14  ;;  %793 = vperm.xlu0 %4041, %v775_v17  }
  0x36   : > { %783 = vperm.xlu2 %4043, %v773_v18  }
  0x3c   : > { %811 = vperm.xlu1 %4042, %v801_v19  }
  0x3d   : > { %806 = vperm.xlu0 %4041, %v800_v20  }
  0x3e   : > { %1010 = vrot.lane.b32.xlu2 %v4359_v21, %s6418_s24 }
  0x44   : > { %1069 = vrot.lane.b32.xlu1 %v4366_v23, %s6416_s26 }
  0x45   : > { %3681 = vmatmul.msk.bf16.gmra.mxu0 %vm742_vm1, %v3961_v22  ;;  %1012 = vrot.lane.b32.xlu0 %v4368_v24, %s6418_s24 }
  0x46   : > { %1071 = vrot.lane.b32.xlu2 %v4371_v25, %s6416_s26 }
  0x4c   : > { %1065 = vrot.lane.b32.xlu1 %v4379_v26, %s6416_s26 }
  0x4d   : > { %1008 = vrot.lane.b32.xlu0 %v4381_v27, %s6418_s24 }
  0x4e   : > { %1006 = vrot.lane.b32.xlu2 %v4383_v28, %s6418_s24 }
  0x54   : > { %1061 = vrot.lane.b32.xlu1 %v4359_v21, %s6416_s26 }
  0x55   : > { %916 = vrot.lane.b32.xlu0 %v4366_v23, %s6412_s2 }
  0x56   : > { %1067 = vrot.lane.b32.xlu2 %v4391_v29, %s6416_s26 }
  0x5c   : > { %918 = vrot.lane.b32.xlu1 %v4371_v25, %s6412_s2 }
  0x5d   : > { %912 = vrot.lane.b32.xlu0 %v4379_v26, %s6412_s2 }
  0x5e   : > { %1063 = vrot.lane.b32.xlu2 %v4368_v24, %s6416_s26 }
  0x64   : > { %1057 = vrot.lane.b32.xlu1 %v4383_v28, %s6416_s26 }
  0x65   : > { %969 = vrot.lane.b32.xlu0 %v4371_v25, %s6420_s6 }
  0x66   : > { %1059 = vrot.lane.b32.xlu2 %v4381_v27, %s6416_s26 }
  0x6c   : > { %914 = vrot.lane.b32.xlu1 %v4391_v29, %s6412_s2 }
  0x6d   : > { %908 = vrot.lane.b32.xlu0 %v4359_v21, %s6412_s2 }
  0x6e   : > { %967 = vrot.lane.b32.xlu2 %v4366_v23, %s6420_s6 }
  0x74   : > { %910 = vrot.lane.b32.xlu1 %v4368_v24, %s6412_s2 }
  0x75   : > { %965 = vrot.lane.b32.xlu0 %v4391_v29, %s6420_s6 }
  0x76   : > { %963 = vrot.lane.b32.xlu2 %v4379_v26, %s6420_s6 }
  0x7c   : > { %906 = vrot.lane.b32.xlu1 %v4381_v27, %s6412_s2 }
  0x7d   : > { %904 = vrot.lane.b32.xlu0 %v4383_v28, %s6412_s2 }
  0x7e   : > { %959 = vrot.lane.b32.xlu2 %v4359_v21, %s6420_s6 }
  0x85   : > { %961 = vrot.lane.b32.xlu0 %v4368_v24, %s6420_s6 }
  0x87   : > { %v779_v30 = vpop.permute.xlu2 %778 }
  0x90   : > { %v784_v33 = vpop.permute.xlu2 %783 }
  0x98   : > { %v1011_v36 = vpop.permute.xlu2 %1010 }
  0x99   : > { %v1031_v57 = vmul.f32 %v4450_v52, %v1011_v36 }
  0x9b   : > { %v1043_v0 = vpack.c.bf16 %v1031_v57, %v1031_v57 }
  0x9d   : > { %v1406_v12 = vunpack.c.l.b16 %v1043_v0 }
  0x9e   : > { %v817_v32 = vpop.permute.xlu1 %816 }
  0x9f   : > { %v789_v31 = vpop.permute.xlu0 %788 }
  0xa0   : > { %v1072_v43 = vpop.permute.xlu2 %1071 }
  0xa1   : > { %v1087_v58 = vmul.f32 %v4455_v54, %v1072_v43 }
  0xa3   : > { %v1099_v2 = vpack.c.bf16 %v1087_v58, %v1087_v58 }
  0xa5   : > { %v1447_v17 = vunpack.c.l.b16 %v1099_v2 }
  0xa6   : > { %v822_v35 = vpop.permute.xlu1 %821 }
  0xa7   : > { %v794_v34 = vpop.permute.xlu0 %793 }
  0xa8   : > { %v1007_v49 = vpop.permute.xlu2 %1006 }
  0xa9   : > { %v1029_v6 = vmul.f32 %v4450_v52, %v1007_v49 }
  0xab   : > { %v1041_v14 = vpack.c.bf16 %v1029_v6, %v1029_v6 }
  0xae   : > { %v812_v41 = vpop.permute.xlu1 %811 }
  0xaf   : > { %v807_v39 = vpop.permute.xlu0 %806 }
  0xb0   : > { %v1068_v1 = vpop.permute.xlu2 %1067 }
  0xb1   : > { %v1085_v9 = vmul.f32 %v4455_v54, %v1068_v1 }
  0xb2   : > { %v762_v37 = vpop.f32.mrf.mxu0 }
  0xb3   : > { %v796_v38 = vmul.f32 %v779_v30, %v762_v37  ;;  %v1097_v18 = vpack.c.bf16 %v1085_v9, %v1085_v9 }
  0xb5   : > { %v824_v40 = vadd.f32 %v807_v39, %v796_v38 }
  0xb6   : > { %v1070_v47 = vpop.permute.xlu1 %1069 }
  0xb7   : > { %v4431_v42 = vmax.f32 %v824_v40, 0.0  ;;  %v1013_v53 = vpop.permute.xlu0 %1012  ;;  %v1086_v61 = vmul.f32 %v4455_v54, %v1070_v47 }
  0xb8   : > { %v1032_v60 = vmul.f32 %v4450_v52, %v1013_v53 }
  0xb9   : > { %947 = vrot.lane.b32.xlu0 %v4431_v42, %s6420_s6  ;;  %1049 = vrot.lane.b32.xlu1 %v4431_v42, %s6416_s26  ;;  %v1098_v5 = vpack.c.bf16 %v1086_v61, %v1086_v61 }
  0xba   : > { %998 = vrot.lane.b32.xlu2 %v4431_v42, %s6418_s24  ;;  %v764_v44 = vpop.f32.mrf.mxu0  ;;  %v1044_v3 = vpack.c.bf16 %v1032_v60, %v1032_v60 }
  0xbb   : > { %v797_v45 = vmul.f32 %v784_v33, %v764_v44  ;;  %v1446_v16 = vunpack.c.l.b16 %v1098_v5  ;;  %v1064_v33 = vpop.permute.xlu2 %1063 }
  0xbc   : > { %v1407_v13 = vunpack.c.l.b16 %v1044_v3  ;;  %v1083_v37 = vmul.f32 %v4455_v54, %v1064_v33 }
  0xbd   : > { %v825_v46 = vadd.f32 %v812_v41, %v797_v45  ;;  %v1453_v30 = vpack.c.b16 %v1447_v17, %v1446_v16 }
  0xbe   : > { %v1066_v59 = vpop.permute.xlu1 %1065  ;;  %v1415_v22 = vpack.c.b16 %v1407_v13, %v1406_v12  ;;  %v1095_v39 = vpack.c.bf16 %v1083_v37, %v1083_v37 }
  0xbf   : > { %v4439_v48 = vmax.f32 %v825_v46, 0.0  ;;  %v1084_v7 = vmul.f32 %v4455_v54, %v1066_v59  ;;  %v1009_v8 = vpop.permute.xlu0 %1008  ;;  %2139 = vmatpush.bf16.msra.mxu3 %v1453_v30 }
  0xc0   : > { %v1030_v10 = vmul.f32 %v4450_v52, %v1009_v8  ;;  %2090 = vmatpush.bf16.msra.mxu2 %v1415_v22  ;;  %v1443_v45 = vunpack.c.l.b16 %v1095_v39  ;;  %v4611_v39 = vld [vmem:[%s6457_s7 + $0x1] ss:$0 sm:$0xff] }
  0xc1   : > { %1000 = vrot.lane.b32.xlu0 %v4439_v48, %s6418_s24  ;;  %949 = vrot.lane.b32.xlu1 %v4439_v48, %s6420_s6  ;;  %v1096_v15 = vpack.c.bf16 %v1084_v7, %v1084_v7 }
  0xc2   : > { %1051 = vrot.lane.b32.xlu2 %v4439_v48, %s6416_s26  ;;  %v767_v50 = vpop.f32.mrf.mxu0  ;;  %v1042_v20 = vpack.c.bf16 %v1030_v10, %v1030_v10 }
  0xc3   : > { %v798_v51 = vmul.f32 %v789_v31, %v767_v50  ;;  %v1404_v31 = vunpack.c.l.b16 %v1041_v14  ;;  %v1060_v49 = vpop.permute.xlu2 %1059 }
  0xc4   : > { %v1405_v36 = vunpack.c.l.b16 %v1042_v20 }
  0xc5   : > { %v826_v55 = vadd.f32 %v817_v32, %v798_v51  ;;  %v1444_v32 = vunpack.c.l.b16 %v1096_v15  ;;  %v1081_v51 = vmul.f32 %v4455_v54, %v1060_v49 }
  0xc6   : > { %v1062_v19 = vpop.permute.xlu1 %1061  ;;  %v1414_v40 = vpack.c.b16 %v1405_v36, %v1404_v31 }
  0xc7   : > { %v4457_v56 = vmax.f32 %v826_v55, 0.0  ;;  %v4497_v47 = vpop.permute.xlu0 %916  ;;  %v1093_v55 = vpack.c.bf16 %v1081_v51, %v1081_v51 }
  0xc8   : > { %2091 = vmatpush.bf16.msra.mxu2 %v1414_v40 }
  0xc9   : > { %951 = vrot.lane.b32.xlu0 %v4457_v56, %s6420_s6  ;;  %1053 = vrot.lane.b32.xlu1 %v4457_v56, %s6416_s26  ;;  %v1441_v58 = vunpack.c.l.b16 %v1093_v55 }
  0xca   : > { %1002 = vrot.lane.b32.xlu2 %v4457_v56, %s6418_s24  ;;  %v769_v62 = vpop.f32.mrf.mxu0 }
  0xcb   : > { %v799_v63 = vmul.f32 %v794_v34, %v769_v62  ;;  %v1445_v34 = vunpack.c.l.b16 %v1097_v18  ;;  %v4515_v62 = vpop.permute.xlu2 %967 }
  0xcc   : > { %v984_v51 = vmul.f32 %v4611_v39, %v4515_v62 }
  0xcd   : > { %v827_v4 = vadd.f32 %v822_v35, %v799_v63  ;;  %v1082_v35 = vmul.f32 %v4455_v54, %v1062_v19  ;;  %v1452_v41 = vpack.c.b16 %v1445_v34, %v1444_v32  ;;  %v4590_v19 = vld [vmem:[%s6457_s7] ss:$0 sm:$0xff] }
  0xce   : > { %v4489_v43 = vpop.permute.xlu1 %918  ;;  %v933_v31 = vmul.f32 %v4590_v19, %v4497_v47 }
  0xcf   : > { %v4473_v11 = vmax.f32 %v827_v4, 0.0  ;;  %v1094_v38 = vpack.c.bf16 %v1082_v35, %v1082_v35  ;;  %2140 = vmatpush.bf16.msra.mxu3 %v1452_v41  ;;  %v4507_v59 = vpop.permute.xlu0 %912  ;;  %v934_v22 = vmul.f32 %v4590_v19, %v4489_v43 }
  0xd0   : > { %v945_v41 = vpack.c.bf16 %v933_v31, %v933_v31 }
  0xd1   : > { %1004 = vrot.lane.b32.xlu0 %v4473_v11, %s6418_s24  ;;  %953 = vrot.lane.b32.xlu1 %v4473_v11, %s6420_s6  ;;  %v1442_v44 = vunpack.c.l.b16 %v1094_v38  ;;  %v946_v38 = vpack.c.bf16 %v934_v22, %v934_v22 }
  0xd2   : > { %1020 = vrot.lane.b32.xlu2 %v4371_v25, %s6418_s24  ;;  %v4625_v55 = vunpack.c.l.b16 %v945_v41 }
  0xd3   : > { %v1451_v46 = vpack.c.b16 %v1443_v45, %v1442_v44  ;;  %v4525_v0 = vpop.permute.xlu2 %963  ;;  %v931_v44 = vmul.f32 %v4590_v19, %v4507_v59 }
  0xd5   : > { %2141 = vmatpush.bf16.msra.mxu3 %v1451_v46 }
  0xd6   : > { %v1058_v50 = vpop.permute.xlu1 %1057 }
  0xd7   : > { %v1080_v53 = vmul.f32 %v4455_v54, %v1058_v50  ;;  %v4521_v63 = vpop.permute.xlu0 %969  ;;  %v4617_v50 = vunpack.c.l.b16 %v946_v38 }
  0xd8   : > { %v985_v31 = vmul.f32 %v4611_v39, %v4521_v63 }
  0xd9   : > { %900 = vrot.lane.b32.xlu0 %v4457_v56, %s6412_s2  ;;  %1018 = vrot.lane.b32.xlu1 %v4366_v23, %s6418_s24  ;;  %v1092_v57 = vpack.c.bf16 %v1080_v53, %v1080_v53 }
  0xda   : > { %1055 = vrot.lane.b32.xlu2 %v4473_v11, %s6416_s26 }
  0xdb   : > { %v1440_v60 = vunpack.c.l.b16 %v1092_v57  ;;  %v4541_v2 = vpop.permute.xlu2 %959 }
  0xdd   : > { %v1450_v61 = vpack.c.b16 %v1441_v58, %v1440_v60  ;;  %v943_v60 = vpack.c.bf16 %v931_v44, %v931_v44 }
  0xde   : > { %v4545_v4 = vpop.permute.xlu1 %914 }
  0xdf   : > { %2142 = vmatpush.bf16.msra.mxu3 %v1450_v61  ;;  %v4533_v1 = vpop.permute.xlu0 %908 }
  0xe1   : > { %957 = vrot.lane.b32.xlu0 %v4381_v27, %s6420_s6  ;;  %1014 = vrot.lane.b32.xlu1 %v4379_v26, %s6418_s24 }
  0xe2   : > { %955 = vrot.lane.b32.xlu2 %v4383_v28, %s6420_s6  ;;  %s6526_s6 = smov 8  }
  0xe6   : > { %v4555_v7 = vpop.permute.xlu1 %910 }
  0xe7   : > { %v4543_v3 = vpop.permute.xlu0 %965 }
  0xe9   : > { %896 = vrot.lane.b32.xlu0 %v4431_v42, %s6412_s2  ;;  %902 = vrot.lane.b32.xlu1 %v4473_v11, %s6412_s2 }
  0xea   : > { %1016 = vrot.lane.b32.xlu2 %v4391_v29, %s6418_s24  ;;  %s6458_s24 = smov 127  }
  0xee   : > { %v4569_v10 = vpop.permute.xlu1 %906 }
  0xef   : > { %v4553_v6 = vpop.permute.xlu0 %904 }
  0xf1   : > { %1236 = vrot.lane.b32.xlu0 %v4371_v25, %s6414_s27  ;;  %898 = vrot.lane.b32.xlu1 %v4439_v48, %s6412_s2  ;;  %s6459_s2 = smov 119  }
  0xf2   : > { %1234 = vrot.lane.b32.xlu2 %v4366_v23, %s6414_s27 }
  0xf7   : > { %v4567_v9 = vpop.permute.xlu0 %961 }
  0xf9   : > { %1175 = vrot.lane.b32.xlu0 %v4359_v21, %s6426_s3  ;;  %1116 = vrot.lane.b32.xlu1 %v4457_v56, %s6424_s25 }
  0xfa   : > { %1230 = vrot.lane.b32.xlu2 %v4379_v26, %s6414_s27 }
 0x101   : > { %1232 = vrot.lane.b32.xlu0 %v4391_v29, %s6414_s27  ;;  %1177 = vrot.lane.b32.xlu1 %v4368_v24, %s6426_s3 }
 0x102   : > { %1118 = vrot.lane.b32.xlu2 %v4473_v11, %s6424_s25 }
 0x109   : > { %1171 = vrot.lane.b32.xlu0 %v4383_v28, %s6426_s3  ;;  %1112 = vrot.lane.b32.xlu1 %v4431_v42, %s6424_s25 }
 0x10a   : > { %1114 = vrot.lane.b32.xlu2 %v4439_v48, %s6424_s25 }
 0x111   : > { %1228 = vrot.lane.b32.xlu0 %v4368_v24, %s6414_s27  ;;  %1173 = vrot.lane.b32.xlu1 %v4381_v27, %s6426_s3 }
 0x112   : > { %1226 = vrot.lane.b32.xlu2 %v4359_v21, %s6414_s27 }
 0x114   : > { %v999_v5 = vpop.permute.xlu2 %998 }
 0x115   : > { %v1025_v61 = vmul.f32 %v4450_v52, %v999_v5  ;;  %v932_v5 = vmul.f32 %v4590_v19, %v4545_v4 }
 0x117   : > { %v1037_v38 = vpack.c.bf16 %v1025_v61, %v1025_v61 }
 0x119   : > { %1167 = vrot.lane.b32.xlu0 %v4457_v56, %s6426_s3  ;;  %1285 = vrot.lane.b32.xlu1 %v4366_v23, %s6422_s1  ;;  %v1400_v61 = vunpack.c.l.b16 %v1037_v38 }
 0x11a   : > { %1287 = vrot.lane.b32.xlu2 %v4371_v25, %s6422_s1 }
 0x11c   : > { %v1052_v8 = vpop.permute.xlu2 %1051 }
 0x11d   : > { %v1077_v32 = vmul.f32 %v4455_v54, %v1052_v8 }
 0x11f   : > { %v1089_v45 = vpack.c.bf16 %v1077_v32, %v1077_v32 }
 0x121   : > { %1224 = vrot.lane.b32.xlu0 %v4381_v27, %s6414_s27  ;;  %1169 = vrot.lane.b32.xlu1 %v4473_v11, %s6426_s3  ;;  %v1437_v62 = vunpack.c.l.b16 %v1089_v45 }
 0x122   : > { %1222 = vrot.lane.b32.xlu2 %v4383_v28, %s6414_s27 }
 0x124   : > { %v1003_v12 = vpop.permute.xlu2 %1002 }
 0x125   : > { %v1027_v46 = vmul.f32 %v4450_v52, %v1003_v12 }
 0x127   : > { %v1039_v8 = vpack.c.bf16 %v1027_v46, %v1027_v46  ;;  %v4643_v46 = vunpack.c.l.b16 %v943_v60 }
 0x129   : > { %1163 = vrot.lane.b32.xlu0 %v4431_v42, %s6426_s3  ;;  %1281 = vrot.lane.b32.xlu1 %v4379_v26, %s6422_s1 }
 0x12a   : > { %1283 = vrot.lane.b32.xlu2 %v4391_v29, %s6422_s1 }
 0x12b   : > { %v948_v13 = vpop.permute.xlu0 %947  ;;  %v1050_v14 = vpop.permute.xlu1 %1049 }
 0x12c   : > { %v4579_v15 = vpop.permute.xlu2 %1020  ;;  %v1076_v30 = vmul.f32 %v4455_v54, %v1050_v14 }
 0x12d   : > { %v1036_v41 = vmul.f32 %v4450_v52, %v4579_v15 }
 0x12e   : > { %v1088_v40 = vpack.c.bf16 %v1076_v30, %v1076_v30 }
 0x130   : > { %v1436_v53 = vunpack.c.l.b16 %v1088_v40  ;;  %v1402_v40 = vunpack.c.l.b16 %v1039_v8  ;;  %v1048_v8 = vpack.c.bf16 %v1036_v41, %v1036_v41 }
 0x131   : > { %1220 = vrot.lane.b32.xlu0 %v4473_v11, %s6414_s27  ;;  %1165 = vrot.lane.b32.xlu1 %v4439_v48, %s6426_s3 }
 0x132   : > { %1218 = vrot.lane.b32.xlu2 %v4457_v56, %s6414_s27  ;;  %v1448_v32 = vpack.c.b16 %v1437_v62, %v1436_v53  ;;  %v944_v53 = vpack.c.bf16 %v932_v5, %v932_v5 }
 0x133   : > { %v1001_v16 = vpop.permute.xlu0 %1000  ;;  %v950_v17 = vpop.permute.xlu1 %949 }
 0x134   : > { %v1056_v18 = vpop.permute.xlu2 %1055  ;;  %v1026_v57 = vmul.f32 %v4450_v52, %v1001_v16  ;;  %v975_v58 = vmul.f32 %v4611_v39, %v950_v17  ;;  %v996_v17 = vpack.c.bf16 %v984_v51, %v984_v51  ;;  %v1337_v5 = vunpack.c.l.b16 %v944_v53 }
 0x135   : > { %v1079_v20 = vmul.f32 %v4455_v54, %v1056_v18  ;;  %v974_v18 = vmul.f32 %v4611_v39, %v948_v13  ;;  %v982_v13 = vmul.f32 %v4611_v39, %v4525_v0 }
 0x136   : > { %v1374_v4 = vunpack.c.l.b16 %v996_v17 }
 0x137   : > { %v1091_v35 = vpack.c.bf16 %v1079_v20, %v1079_v20 }
 0x139   : > { %1132 = vrot.lane.b32.xlu0 %v4366_v23, %s6424_s25  ;;  %1277 = vrot.lane.b32.xlu1 %v4359_v21, %s6422_s1  ;;  %v1439_v47 = vunpack.c.l.b16 %v1091_v35 }
 0x13a   : > { %1279 = vrot.lane.b32.xlu2 %v4368_v24, %s6422_s1 }
 0x13b   : > { %v952_v33 = vpop.permute.xlu0 %951  ;;  %v1054_v34 = vpop.permute.xlu1 %1053 }
 0x13c   : > { %v1078_v36 = vmul.f32 %v4455_v54, %v1054_v34  ;;  %v4606_v37 = vpop.permute.xlu2 %955  ;;  %v976_v54 = vmul.f32 %v4611_v39, %v952_v33  ;;  %v1038_v33 = vpack.c.bf16 %v1026_v57, %v1026_v57  ;;  %v987_v34 = vpack.c.bf16 %v975_v58, %v975_v58 }
 0x13d   : > { %v994_v57 = vpack.c.bf16 %v982_v13, %v982_v13  ;;  %v929_v58 = vmul.f32 %v4590_v19, %v4533_v1  ;;  %v981_v1 = vmul.f32 %v4611_v39, %v4567_v9  ;;  %v978_v13 = vmul.f32 %v4611_v39, %v4606_v37 }
 0x13e   : > { %v1090_v43 = vpack.c.bf16 %v1078_v36, %v1078_v36  ;;  %v988_v20 = vpack.c.bf16 %v976_v54, %v976_v54  ;;  %v983_v54 = vmul.f32 %v4611_v39, %v4543_v3  ;;  %v1401_v0 = vunpack.c.l.b16 %v1038_v33 }
 0x13f   : > { %v1365_v15 = vunpack.c.l.b16 %v987_v34  ;;  %v980_v3 = vmul.f32 %v4611_v39, %v4541_v2  ;;  %v941_v33 = vpack.c.bf16 %v929_v58, %v929_v58  ;;  %v1345_v34 = vpack.c.b16 %v4617_v50, %v4625_v55 }
 0x140   : > { %v1438_v49 = vunpack.c.l.b16 %v1090_v43  ;;  %v986_v43 = vpack.c.bf16 %v974_v18, %v974_v18  ;;  %v1366_v44 = vunpack.c.l.b16 %v988_v20  ;;  %v995_v20 = vpack.c.bf16 %v983_v54, %v983_v54 }
 0x141   : > { %1216 = vrot.lane.b32.xlu0 %v4439_v48, %s6414_s27  ;;  %1134 = vrot.lane.b32.xlu1 %v4371_v25, %s6424_s25  ;;  %v993_v50 = vpack.c.bf16 %v981_v1, %v981_v1  ;;  %v3692_v1 = vld [vmem:[%s6388_s9 + $0x8] sm:$0xf] }
 0x142   : > { %1214 = vrot.lane.b32.xlu2 %v4431_v42, %s6414_s27  ;;  %v1449_v59 = vpack.c.b16 %v1439_v47, %v1438_v49  ;;  %v997_v47 = vpack.c.bf16 %v985_v31, %v985_v31  ;;  %v1364_v62 = vunpack.c.l.b16 %v986_v43  ;;  %v1412_v31 = vpack.c.b16 %v1401_v0, %v1400_v61  ;;  %s6527_s27 = smov 7  }
 0x143   : > { %v1005_v12 = vpop.permute.xlu0 %1004  ;;  %v954_v14 = vpop.permute.xlu1 %953  ;;  %v1373_v9 = vunpack.c.l.b16 %v995_v20  ;;  %v1334_v43 = vunpack.c.l.b16 %v941_v33  ;;  %v1371_v53 = vunpack.c.l.b16 %v993_v50  ;;  %v3686_v33 = vld [vmem:[%s6388_s9 + $0x1c] sm:$0xf0] }
 0x144   : > { %v1028_v22 = vmul.f32 %v4450_v52, %v1005_v12  ;;  %v977_v16 = vmul.f32 %v4611_v39, %v954_v14  ;;  %v1017_v30 = vpop.permute.xlu2 %1016  ;;  %2143 = vmatpush.bf16.msra.mxu3 %v1449_v59  ;;  %v1375_v18 = vunpack.c.l.b16 %v997_v47  ;;  %v1376_v17 = vpack.c.b16 %v1365_v15, %v1364_v62 }
 0x145   : > { %v1034_v2 = vmul.f32 %v4450_v52, %v1017_v30  ;;  %v927_v30 = vmul.f32 %v4590_v19, %v4553_v6  ;;  %v1344_v6 = vpack.c.b16 %v1337_v5, %v4643_v46 }
 0x146   : > { %v1040_v35 = vpack.c.bf16 %v1028_v22, %v1028_v22  ;;  %v989_v36 = vpack.c.bf16 %v977_v16, %v977_v16  ;;  %v930_v22 = vmul.f32 %v4590_v19, %v4555_v7  ;;  %v1381_v37 = vpack.c.b16 %v1375_v18, %v1374_v4 }
 0x147   : > { %v1046_v55 = vpack.c.bf16 %v1034_v2, %v1034_v2  ;;  %v3966_v2 = vld [vmem:[%s6388_s9 + $0x20] sm:$0xf0] }
 0x148   : > { %v1403_v45 = vunpack.c.l.b16 %v1040_v35  ;;  %v1367_v63 = vunpack.c.l.b16 %v989_v36  ;;  %2144 = vmatpush.bf16.msra.mxu3 %v1448_v32  ;;  %v1372_v32 = vunpack.c.l.b16 %v994_v57  ;;  %v992_v35 = vpack.c.bf16 %v980_v3, %v980_v3 }
 0x149   : > { %1128 = vrot.lane.b32.xlu0 %v4379_v26, %s6424_s25  ;;  %1273 = vrot.lane.b32.xlu1 %v4383_v28, %s6422_s1  ;;  %v1411_v36 = vunpack.c.l.b16 %v1048_v8  ;;  %v942_v38 = vpack.c.bf16 %v930_v22, %v930_v22  ;;  %v1409_v57 = vunpack.c.l.b16 %v1046_v55 }
 0x14a   : > { %1275 = vrot.lane.b32.xlu2 %v4381_v27, %s6422_s1  ;;  %v1377_v49 = vpack.c.b16 %v1367_v63, %v1366_v44  ;;  %v1413_v51 = vpack.c.b16 %v1403_v45, %v1402_v40  ;;  %v928_v40 = vmul.f32 %v4590_v19, %v4569_v10  ;;  %v1370_v63 = vunpack.c.l.b16 %v992_v35 }
 0x14b   : > { %v901_v59 = vpop.permute.xlu0 %900  ;;  %v1019_v60 = vpop.permute.xlu1 %1018  ;;  %v990_v10 = vpack.c.bf16 %v978_v13, %v978_v13  ;;  %v1335_v15 = vunpack.c.l.b16 %v942_v38  ;;  %v1380_v4 = vpack.c.b16 %v1373_v9, %v1372_v32  ;;  %v3962_v32 = vld [vmem:[%s6388_s9 + $0x4] sm:$0xf]  ;;  %v3693_v13 = vor.u32 %v3966_v2, %v3692_v1  ;;  %v1647_v2 = vld [vmem:[%s6389_s10 + $0x38] sm:$0xff] }
 0x14c   : > { %v1035_v12 = vmul.f32 %v4450_v52, %v1019_v60  ;;  %v4658_v14 = vpop.permute.xlu2 %1234  ;;  %2041 = vmatpush.bf16.msra.mxu1 %v1377_v49  ;;  %2092 = vmatpush.bf16.msra.mxu2 %v1413_v51  ;;  %v939_v49 = vpack.c.bf16 %v927_v30, %v927_v30  ;;  %v940_v51 = vpack.c.bf16 %v928_v40, %v928_v40 }
 0x14d   : > { %v1368_v46 = vunpack.c.l.b16 %v990_v10  ;;  %v925_v60 = vmul.f32 %v4590_v19, %v901_v59  ;;  %v1379_v59 = vpack.c.b16 %v1371_v53, %v1370_v63 }
 0x14e   : > { %v1047_v16 = vpack.c.bf16 %v1035_v12, %v1035_v12  ;;  %v1332_v62 = vunpack.c.l.b16 %v939_v49  ;;  %v1333_v8 = vunpack.c.l.b16 %v940_v51  ;;  %v4692_v12 = vld [vmem:[%s6457_s7 + $0x7] ss:$0 sm:$0xff]  ;;  %v3684_v51 = vld [vmem:[%s6388_s9] sm:$0xf] }
 0x150   : > { %v1410_v7 = vunpack.c.l.b16 %v1047_v16  ;;  %2042 = vmatpush.bf16.msra.mxu1 %v1376_v17  ;;  %2093 = vmatpush.bf16.msra.mxu2 %v1412_v31  ;;  %v937_v16 = vpack.c.bf16 %v925_v60, %v925_v60  ;;  %v3720_v60 = vld [vmem:[%s6388_s9 + $0x40] sm:$0xf] }
 0x151   : > { %1185 = vrot.lane.b32.xlu0 %v4371_v25, %s6426_s3  ;;  %1130 = vrot.lane.b32.xlu1 %v4391_v29, %s6424_s25 }
 0x152   : > { %1183 = vrot.lane.b32.xlu2 %v4366_v23, %s6426_s3  ;;  %v1417_v41 = vpack.c.b16 %v1411_v36, %v1410_v7  ;;  %v1342_v36 = vpack.c.b16 %v1333_v8, %v1332_v62  ;;  %v3689_v7 = vor.u32 %v3962_v32, %v3686_v33  ;;  %v1330_v9 = vunpack.c.l.b16 %v937_v16  ;;  %v3969_v8 = vld [vmem:[%s6388_s9 + $0x3c] sm:$0xf] }
 0x153   : > { %v958_v44 = vpop.permute.xlu0 %957  ;;  %v1015_v45 = vpop.permute.xlu1 %1014 }
 0x154   : > { %v979_v47 = vmul.f32 %v4611_v39, %v958_v44  ;;  %v1033_v54 = vmul.f32 %v4450_v52, %v1015_v45  ;;  %v4682_v0 = vpop.permute.xlu2 %1230  ;;  %2043 = vmatpush.bf16.msra.mxu1 %v1345_v34  ;;  %2094 = vmatpush.bf16.msra.mxu2 %v1381_v37  ;;  %v1343_v52 = vpack.c.b16 %v1335_v15, %v1334_v43 }
 0x155   : > { %2145 = vmatpush.bf16.msra.mxu3 %v1417_v41  ;;  %v1251_v34 = vmul.f32 %v4692_v12, %v4658_v14  ;;  %v4721_v41 = vld [vmem:[%s6457_s7 + $0x5] ss:$0 sm:$0xff] }
 0x156   : > { %v991_v58 = vpack.c.bf16 %v979_v47, %v979_v47  ;;  %v1045_v3 = vpack.c.bf16 %v1033_v54, %v1033_v54 }
 0x157   : > { %v1263_v40 = vpack.c.bf16 %v1251_v34, %v1251_v34 }
 0x158   : > { %v1369_v61 = vunpack.c.l.b16 %v991_v58  ;;  %v1408_v39 = vunpack.c.l.b16 %v1045_v3  ;;  %2044 = vmatpush.bf16.msra.mxu1 %v1344_v6  ;;  %2095 = vmatpush.bf16.msra.mxu2 %v1380_v4  ;;  %v3965_v4 = vld [vmem:[%s6388_s9 + $0x18] sm:$0xf0] }
 0x159   : > { %1124 = vrot.lane.b32.xlu0 %v4359_v21, %s6424_s25  ;;  %1269 = vrot.lane.b32.xlu1 %v4457_v56, %s6422_s1  ;;  %v1590_v6 = vunpack.c.l.b16 %v1263_v40  ;;  %v1645_v40 = vld [vmem:[%s6389_s10 + $0x28] sm:$0xff]  ;;  %s6528_s25 = smov 1  }
 0x15a   : > { %1271 = vrot.lane.b32.xlu2 %v4473_v11, %s6422_s1  ;;  %v1416_v18 = vpack.c.b16 %v1409_v57, %v1408_v39  ;;  %v1378_v5 = vpack.c.b16 %v1369_v61, %v1368_v46  ;;  %v3685_v46 = vor.u32 %v3965_v4, %v3684_v51  ;;  %v3973_v61 = vld [vmem:[%s6388_s9 + $0x58] sm:$0xf0]  ;;  %v1110_v51 = vpack.c.bf16 %v4366_v23, %v4366_v23  ;;  %s6529_s1 = smov 121  }
 0x15b   : > { %v897_v20 = vpop.permute.xlu0 %896  ;;  %v903_v22 = vpop.permute.xlu1 %902  ;;  %v3721_v1 = vor.u32 %v3973_v61, %v3720_v60 }
 0x15c   : > { %v926_v17 = vmul.f32 %v4590_v19, %v903_v22  ;;  %v1119_v31 = vpop.permute.xlu2 %1118  ;;  %2045 = vmatpush.bf16.msra.mxu1 %v1343_v52  ;;  %2096 = vmatpush.bf16.msra.mxu2 %v1379_v59  ;;  %v923_v38 = vmul.f32 %v4590_v19, %v897_v20  ;;  %v3714_v59 = vld [vmem:[%s6388_s9 + $0x54] sm:$0xf0]  ;;  %v1646_v22 = vld [vmem:[%s6389_s10 + $0x30] sm:$0xff] }
 0x15d   : > { %2146 = vmatpush.bf16.msra.mxu3 %v1416_v18  ;;  %v1142_v54 = vmul.f32 %v4721_v41, %v1119_v31  ;;  %v3717_v16 = vor.u32 %v3969_v8, %v3714_v59  ;;  %v1641_v59 = vld [vmem:[%s6389_s10 + $0x8] sm:$0xff] }
 0x15e   : > { %v938_v35 = vpack.c.bf16 %v926_v17, %v926_v17  ;;  %v935_v37 = vpack.c.bf16 %v923_v38, %v923_v38  ;;  %v1249_v17 = vmul.f32 %v4692_v12, %v4682_v0 }
 0x15f   : > { %v1154_v39 = vpack.c.bf16 %v1142_v54, %v1142_v54 }
 0x160   : > { %v1331_v30 = vunpack.c.l.b16 %v938_v35  ;;  %2046 = vmatpush.bf16.msra.mxu1 %v1342_v36  ;;  %2097 = vmatpush.bf16.msra.mxu2 %v1378_v5  ;;  %v1328_v47 = vunpack.c.l.b16 %v935_v37  ;;  %v1261_v36 = vpack.c.bf16 %v1249_v17, %v1249_v17  ;;  %v4824_v17 = vld [vmem:[%s6457_s7 + $0x8] ss:$0 sm:$0xff] }
 0x161   : > { %1181 = vrot.lane.b32.xlu0 %v4391_v29, %s6426_s3  ;;  %1126 = vrot.lane.b32.xlu1 %v4368_v24, %s6458_s24  ;;  %v1511_v31 = vunpack.c.l.b16 %v1154_v39  ;;  %v1640_v39 = vld [vmem:[%s6389_s10] sm:$0xff] }
 0x162   : > { %1179 = vrot.lane.b32.xlu2 %v4379_v26, %s6426_s3  ;;  %v1341_v14 = vpack.c.b16 %v1331_v30, %v1330_v9  ;;  %2147 = vmatmul.bf16.vlgmr.msra.gmra.mxu3 %v3693_v13 }
 0x163   : > { %v1237_v50 = vpop.permute.xlu0 %1236  ;;  %v899_v55 = vpop.permute.xlu1 %898  ;;  %2098 = vmatmul.bf16.vlgmr.msra.gmra.mxu2 %v3689_v7 }
 0x164   : > { %v1252_v43 = vmul.f32 %v4692_v12, %v1237_v50  ;;  %v924_v44 = vmul.f32 %v4590_v19, %v899_v55  ;;  %v1115_v45 = vpop.permute.xlu2 %1114  ;;  %2047 = vmatpush.bf16.msra.mxu1 %v1341_v14  ;;  %v4741_v19 = vld [vmem:[%s6457_s7 + $0x6] ss:$0 sm:$0xff]  ;;  %v1588_v50 = vunpack.c.l.b16 %v1261_v36 }
 0x165   : > { %v1644_v14 = vld [vmem:[%s6389_s10 + $0x20] sm:$0xff]  ;;  %v1140_v55 = vmul.f32 %v4721_v41, %v1115_v45  ;;  %v3748_v45 = vld [vmem:[%s6388_s9 + $0x78] sm:$0xf] }
 0x166   : > { %v1264_v63 = vpack.c.bf16 %v1252_v43, %v1252_v43  ;;  %v936_v10 = vpack.c.bf16 %v924_v44, %v924_v44  ;;  %v3712_v44 = vld [vmem:[%s6388_s9 + $0x38] sm:$0xf] }
 0x167   : > { %v1152_v4 = vpack.c.bf16 %v1140_v55, %v1140_v55 }
 0x168   : > { %v1591_v15 = vunpack.c.l.b16 %v1264_v63  ;;  %v1329_v49 = vunpack.c.l.b16 %v936_v10 }
 0x169   : > { %1120 = vrot.lane.b32.xlu0 %v4383_v28, %s6458_s24  ;;  %1265 = vrot.lane.b32.xlu1 %v4431_v42, %s6459_s2 }
 0x16a   : > { %1267 = vrot.lane.b32.xlu2 %v4439_v48, %s6459_s2  ;;  %v1340_v53 = vpack.c.b16 %v1329_v49, %v1328_v47  ;;  %v1597_v57 = vpack.c.b16 %v1591_v15, %v1590_v6  ;;  %v3972_v6 = vld [vmem:[%s6388_s9 + $0x50] sm:$0xf0] }
 0x16b   : > { %v1176_v58 = vpop.permute.xlu0 %1175  ;;  %v1117_v3 = vpop.permute.xlu1 %1116  ;;  %v3713_v15 = vor.u32 %v3972_v6, %v3712_v44  ;;  %v3980_v49 = vld [vmem:[%s6388_s9 + $0x90] sm:$0xf0]  ;;  %v3740_v6 = vld [vmem:[%s6388_s9 + $0x70] sm:$0xf] }
 0x16c   : > { %v1141_v52 = vmul.f32 %v4721_v41, %v1117_v3  ;;  %v1227_v62 = vpop.permute.xlu2 %1226  ;;  %2048 = vmatpush.bf16.msra.mxu1 %v1340_v53  ;;  %2286 = vmatpush.bf16.msrb.mxu2 %v1597_v57  ;;  %v1196_v18 = vmul.f32 %v4741_v19, %v1176_v58  ;;  %v3976_v58 = vld [vmem:[%s6388_s9 + $0x74] sm:$0xf]  ;;  %v3742_v3 = vld [vmem:[%s6388_s9 + $0x8c] sm:$0xf0]  ;;  %v3749_v8 = vor.u32 %v3980_v49, %v3748_v45 }
 0x16d   : > { %v1247_v23 = vmul.f32 %v4692_v12, %v1227_v62  ;;  %v1108_v62 = vpack.c.bf16 %v4379_v26, %v4379_v26 }
 0x16e   : > { %v1153_v20 = vpack.c.bf16 %v1141_v52, %v1141_v52  ;;  %v1208_v32 = vpack.c.bf16 %v1196_v18, %v1196_v18  ;;  %v1642_v52 = vld [vmem:[%s6389_s10 + $0x10] sm:$0xff]  ;;  %v1109_v18 = vpack.c.bf16 %v4391_v29, %v4391_v29 }
 0x16f   : > { %2049 = vmatmul.bf16.vlgmr.msra.gmra.mxu1 %v3685_v46  ;;  %v1111_v46 = vpack.c.bf16 %v4371_v25, %v4371_v25  ;;  %v3745_v25 = vor.u32 %v3976_v58, %v3742_v3  ;;  %v1480_v29 = vunpack.c.l.b16 %v1108_v62  ;;  %v3776_v58 = vld [vmem:[%s6388_s9 + $0xb0] sm:$0xf]  ;;  %v3987_v3 = vld [vmem:[%s6388_s9 + $0xc8] sm:$0xf0] }
 0x170   : > { %v1510_v5 = vunpack.c.l.b16 %v1153_v20  ;;  %v1550_v0 = vunpack.c.l.b16 %v1208_v32  ;;  %v1509_v20 = vunpack.c.l.b16 %v1152_v4 }
 0x171   : > { %1688 = vperm.xlu0 %4041, %v1646_v22   ;;  %1122 = vrot.lane.b32.xlu1 %v4381_v27, %s6458_s24  ;;  %v1643_v27 = vld [vmem:[%s6389_s10 + $0x18] sm:$0xff] }
 0x172   : > { %1693 = vperm.xlu2 %4043, %v1647_v2   ;;  %v1521_v33 = vpack.c.b16 %v1511_v31, %v1510_v5  ;;  %2152 = vmatmul.bf16.gmra.mxu3 %v3721_v1  ;;  %v1482_v1 = vunpack.c.l.b16 %v1110_v51  ;;  %v1483_v2 = vunpack.c.l.b16 %v1111_v46 }
 0x173   : > { %v1233_v34 = vpop.permute.xlu0 %1232  ;;  %v1178_v35 = vpop.permute.xlu1 %1177  ;;  %2103 = vmatmul.bf16.gmra.mxu2 %v3717_v16  ;;  %v1259_v16 = vpack.c.bf16 %v1247_v23, %v1247_v23  ;;  %v3983_v23 = vld [vmem:[%s6388_s9 + $0xac] sm:$0xf] }
 0x174   : > { %v1250_v13 = vmul.f32 %v4692_v12, %v1233_v34  ;;  %v1197_v7 = vmul.f32 %v4741_v19, %v1178_v35  ;;  %v4769_v9 = vpop.permute.xlu2 %1287  ;;  %2188 = vmatpush.bf16.msrb.mxu0 %v1521_v33  ;;  %v1481_v33 = vunpack.c.l.b16 %v1109_v18  ;;  %v1106_v34 = vpack.c.bf16 %v4359_v21, %v4359_v21  ;;  %v1650_v21 = vld [vmem:[%s6389_s10 + $0x50] sm:$0xff]  ;;  %v2387_v18 = vld [vmem:[%s6460_s12 + $0x18] sm:$0xff] }
 0x175   : > { %v1107_v35 = vpack.c.bf16 %v4368_v24, %v4368_v24  ;;  %v1648_v24 = vld [vmem:[%s6389_s10 + $0x40] sm:$0xff] }
 0x176   : > { %v1262_v38 = vpack.c.bf16 %v1250_v13, %v1250_v13  ;;  %v1209_v30 = vpack.c.bf16 %v1197_v7, %v1197_v7  ;;  %v1488_v55 = vpack.c.b16 %v1481_v33, %v1480_v29 }
 0x178   : > { %v1589_v37 = vunpack.c.l.b16 %v1262_v38  ;;  %v1551_v43 = vunpack.c.l.b16 %v1209_v30  ;;  %v1586_v38 = vunpack.c.l.b16 %v1259_v16  ;;  %v1303_v30 = vmul.f32 %v4824_v17, %v4769_v9 }
 0x179   : > { %1673 = vperm.xlu0 %4041, %v1643_v27   ;;  %1683 = vperm.xlu1 %4042, %v1645_v40  }
 0x17a   : > { %1678 = vperm.xlu2 %4043, %v1644_v14   ;;  %v1559_v63 = vpack.c.b16 %v1551_v43, %v1550_v0  ;;  %v1596_v10 = vpack.c.b16 %v1589_v37, %v1588_v50  ;;  %v1489_v0 = vpack.c.b16 %v1483_v2, %v1482_v1  ;;  %v1649_v50 = vld [vmem:[%s6389_s10 + $0x48] sm:$0xff]  ;;  %v1478_v37 = vunpack.c.l.b16 %v1106_v34 }
 0x17b   : > { %v1172_v47 = vpop.permute.xlu0 %1171  ;;  %v1113_v54 = vpop.permute.xlu1 %1112  ;;  %v1479_v43 = vunpack.c.l.b16 %v1107_v35 }
 0x17c   : > { %v1139_v53 = vmul.f32 %v4721_v41, %v1113_v54  ;;  %v4796_v57 = vpop.permute.xlu2 %1222  ;;  %2237 = vmatpush.bf16.msrb.mxu1 %v1559_v63  ;;  %2287 = vmatpush.bf16.msrb.mxu2 %v1596_v10  ;;  %v1194_v60 = vmul.f32 %v4741_v19, %v1172_v47  ;;  %v3979_v63 = vld [vmem:[%s6388_s9 + $0x88] sm:$0xf0]  ;;  %v1104_v10 = vpack.c.bf16 %v4383_v28, %v4383_v28  ;;  %v4124_v47 = vld [vmem:[#allocation2] sm:$0xff] }
 0x17d   : > { %v1105_v54 = vpack.c.bf16 %v4124_v47, %v4124_v47  ;;  %v1487_v46 = vpack.c.b16 %v1479_v43, %v1478_v37 }
 0x17e   : > { %v1151_v61 = vpack.c.bf16 %v1139_v53, %v1139_v53  ;;  %v1206_v31 = vpack.c.bf16 %v1194_v60, %v1194_v60  ;;  %v3741_v53 = vor.u32 %v3979_v63, %v3740_v6  ;;  %v3770_v60 = vld [vmem:[%s6388_s9 + $0xc4] sm:$0xf0]  ;;  %v3963_v6 = vld [vmem:[%s6388_s9 + $0xc] sm:$0xf] }
 0x17f   : > { %2054 = vmatmul.bf16.gmra.mxu1 %v3713_v15  ;;  %v1315_v15 = vpack.c.bf16 %v1303_v30, %v1303_v30  ;;  %v3773_v1 = vor.u32 %v3983_v23, %v3770_v60  ;;  %v3694_v63 = vld [vmem:[%s6388_s9 + $0x24] sm:$0xf0] }
 0x180   : > { %v1508_v22 = vunpack.c.l.b16 %v1151_v61  ;;  %v1548_v27 = vunpack.c.l.b16 %v1206_v31  ;;  %v1476_v61 = vunpack.c.l.b16 %v1104_v10 }
 0x181   : > { %1658 = vperm.xlu0 %4041, %v1640_v39   ;;  %1668 = vperm.xlu1 %4042, %v1642_v52   ;;  %v1477_v39 = vunpack.c.l.b16 %v1105_v54  ;;  %v1103_v52 = vpack.c.bf16 %v4473_v11, %v4473_v11  ;;  %v2386_v11 = vld [vmem:[%s6460_s12 + $0x10] sm:$0xff] }
 0x182   : > { %1663 = vperm.xlu2 %4043, %v1641_v59   ;;  %v1520_v5 = vpack.c.b16 %v1509_v20, %v1508_v22  ;;  %2157 = vmatmul.bf16.gmra.mxu3 %v3749_v8  ;;  %v1627_v8 = vunpack.c.l.b16 %v1315_v15  ;;  %v1245_v59 = vmul.f32 %v4692_v12, %v4796_v57  ;;  %v1651_v20 = vld [vmem:[%s6389_s10 + $0x58] sm:$0xff]  ;;  %v3777_v22 = vor.u32 %v3987_v3, %v3776_v58  ;;  %v3994_v58 = vld [vmem:[%s6388_s9 + $0x100] sm:$0xf0] }
 0x183   : > { %v1229_v26 = vpop.permute.xlu0 %1228  ;;  %v1174_v32 = vpop.permute.xlu1 %1173  ;;  %2108 = vmatmul.bf16.gmra.mxu2 %v3745_v25  ;;  %v1102_v57 = vpack.c.bf16 %v4457_v56, %v4457_v56  ;;  %v1486_v31 = vpack.c.b16 %v1477_v39, %v1476_v61  ;;  %v1100_v56 = vpack.c.bf16 %v4431_v42, %v4431_v42  ;;  %v2390_v42 = vld [vmem:[%s6460_s12 + $0x30] sm:$0xff]  ;;  %v2389_v61 = vld [vmem:[%s6460_s12 + $0x28] sm:$0xff] }
 0x184   : > { %v1248_v36 = vmul.f32 %v4692_v12, %v1229_v26  ;;  %v1195_v13 = vmul.f32 %v4741_v19, %v1174_v32  ;;  %v4832_v7 = vpop.permute.xlu2 %1283  ;;  %2189 = vmatpush.bf16.msrb.mxu0 %v1520_v5  ;;  %v1475_v5 = vunpack.c.l.b16 %v1103_v52  ;;  %v1101_v26 = vpack.c.bf16 %v4439_v48, %v4439_v48  ;;  %v2385_v39 = vld [vmem:[%s6460_s12 + $0x8] sm:$0xff] }
 0x185   : > { %v1257_v32 = vpack.c.bf16 %v1245_v59, %v1245_v59  ;;  %v1474_v35 = vunpack.c.l.b16 %v1102_v57 }
 0x186   : > { %v1260_v40 = vpack.c.bf16 %v1248_v36, %v1248_v36  ;;  %v1207_v14 = vpack.c.bf16 %v1195_v13, %v1195_v13  ;;  %v1473_v48 = vunpack.c.l.b16 %v1101_v26 }
 0x187   : > { %v1584_v30 = vunpack.c.l.b16 %v1257_v32 }
 0x188   : > { %v1587_v44 = vunpack.c.l.b16 %v1260_v40  ;;  %v1549_v9 = vunpack.c.l.b16 %v1207_v14  ;;  %2190 = vmatpush.bf16.msrb.mxu0 %v1489_v0 }
 0x189   : > { %1708 = vperm.xlu0 %4041, %v1650_v21   ;;  %1698 = vperm.xlu1 %4042, %v1648_v24   ;;  %v2384_v21 = vld [vmem:[%s6460_s12] sm:$0xff]  ;;  %v2391_v24 = vld [vmem:[%s6460_s12 + $0x38] sm:$0xff] }
 0x18a   : > { %1703 = vperm.xlu2 %4043, %v1649_v50   ;;  %v1558_v45 = vpack.c.b16 %v1549_v9, %v1548_v27  ;;  %v1595_v49 = vpack.c.b16 %v1587_v44, %v1586_v38  ;;  %v1485_v38 = vpack.c.b16 %v1475_v5, %v1474_v35  ;;  %v1301_v27 = vmul.f32 %v4824_v17, %v4832_v7  ;;  %v3768_v50 = vld [vmem:[%s6388_s9 + $0xa8] sm:$0xf]  ;;  %v3986_v9 = vld [vmem:[%s6388_s9 + $0xc0] sm:$0xf0]  ;;  %v3796_v35 = vld [vmem:[%s6388_s9 + $0xe0] sm:$0xf] }
 0x18b   : > { %v1168_v51 = vpop.permute.xlu0 %1167  ;;  %v1286_v4 = vpop.permute.xlu1 %1285  ;;  %v1472_v44 = vunpack.c.l.b16 %v1100_v56 }
 0x18c   : > { %v1302_v28 = vmul.f32 %v4824_v17, %v1286_v4  ;;  %2191 = vmatpush.bf16.msrb.mxu0 %v1488_v55  ;;  %2238 = vmatpush.bf16.msrb.mxu1 %v1558_v45  ;;  %v4870_v62 = vpop.permute.xlu2 %1218  ;;  %v1192_v2 = vmul.f32 %v4741_v19, %v1168_v51  ;;  %v1313_v10 = vpack.c.bf16 %v1301_v27, %v1301_v27 }
 0x18d   : > { %2288 = vmatpush.bf16.msrb.mxu2 %v1595_v49  ;;  %v1484_v47 = vpack.c.b16 %v1473_v48, %v1472_v44  ;;  %v3769_v51 = vor.u32 %v3986_v9, %v3768_v50  ;;  %v3697_v4 = vor.u32 %v3963_v6, %v3694_v63  ;;  %v3970_v48 = vld [vmem:[%s6388_s9 + $0x44] sm:$0xf]  ;;  %v3997_v44 = vld [vmem:[%s6388_s9 + $0x11c] sm:$0xf]  ;;  %v3826_v9 = vld [vmem:[%s6388_s9 + $0x134] sm:$0xf0] }
 0x18e   : > { %v1314_v25 = vpack.c.bf16 %v1302_v28, %v1302_v28  ;;  %v1204_v36 = vpack.c.bf16 %v1192_v2, %v1192_v2  ;;  %v3990_v28 = vld [vmem:[%s6388_s9 + $0xe4] sm:$0xf]  ;;  %v1625_v23 = vunpack.c.l.b16 %v1313_v10 }
 0x18f   : > { %2059 = vmatmul.bf16.gmra.mxu1 %v3741_v53  ;;  %v3804_v53 = vld [vmem:[%s6388_s9 + $0xe8] sm:$0xf] }
 0x190   : > { %v1626_v16 = vunpack.c.l.b16 %v1314_v25  ;;  %2192 = vmatpush.bf16.msrb.mxu0 %v1487_v46  ;;  %v1546_v55 = vunpack.c.l.b16 %v1204_v36  ;;  %v3798_v46 = vld [vmem:[%s6388_s9 + $0xfc] sm:$0xf0]  ;;  %v3805_v52 = vor.u32 %v3994_v58, %v3804_v53  ;;  %v1243_v25 = vmul.f32 %v4692_v12, %v4870_v62 }
 0x191   : > { %2726 = vperm.xlu0 %4041, %v2387_v18   ;;  %1713 = vperm.xlu1 %4042, %v1651_v20   ;;  %v3801_v59 = vor.u32 %v3990_v28, %v3798_v46 }
 0x192   : > { %2721 = vperm.xlu2 %4043, %v2386_v11   ;;  %v1633_v29 = vpack.c.b16 %v1627_v8, %v1626_v16  ;;  %2162 = vmatmul.bf16.gmra.mxu3 %v3777_v22  ;;  %v2388_v8 = vld [vmem:[%s6460_s12 + $0x20] sm:$0xff]  ;;  %v1255_v2 = vpack.c.bf16 %v1243_v25, %v1243_v25  ;;  %s6480_s12 = sld [smem:[#allocation34_spill]] }
 0x193   : > { %v1225_v33 = vpop.permute.xlu0 %1224  ;;  %v1170_v34 = vpop.permute.xlu1 %1169  ;;  %2113 = vmatmul.bf16.gmra.mxu2 %v3773_v1  ;;  %v2396_v25 = vld [vmem:[%s6392_s13 + $0x20] sm:$0xff] }
 0x194   : > { %v1246_v13 = vmul.f32 %v4692_v12, %v1225_v33  ;;  %v1193_v0 = vmul.f32 %v4741_v19, %v1170_v34  ;;  %2193 = vmatpush.bf16.msrb.mxu0 %v1486_v31  ;;  %2337 = vmatpush.bf16.msrb.mxu3 %v1633_v29  ;;  %v1280_v43 = vpop.permute.xlu2 %1279  ;;  %v2398_v29 = vld [vmem:[%s6392_s13 + $0x30] sm:$0xff]  ;;  %v2395_v34 = vld [vmem:[%s6392_s13 + $0x18] sm:$0xff]  ;;  %v1582_v56 = vunpack.c.l.b16 %v1255_v2 }
 0x195   : > { %v1299_v62 = vmul.f32 %v4824_v17, %v1280_v43  ;;  %v2394_v33 = vld [vmem:[%s6392_s13 + $0x10] sm:$0xff]  ;;  %v3977_v2 = vld [vmem:[%s6388_s9 + $0x7c] sm:$0xf] }
 0x196   : > { %v1258_v40 = vpack.c.bf16 %v1246_v13, %v1246_v13  ;;  %v1205_v14 = vpack.c.bf16 %v1193_v0, %v1193_v0 }
 0x197   : > { %v1311_v27 = vpack.c.bf16 %v1299_v62, %v1299_v62 }
 0x198   : > { %v1585_v7 = vunpack.c.l.b16 %v1258_v40  ;;  %v1547_v37 = vunpack.c.l.b16 %v1205_v14  ;;  %2194 = vmatpush.bf16.msrb.mxu0 %v1485_v38  ;;  %v3993_v38 = vld [vmem:[%s6388_s9 + $0xf8] sm:$0xf0] }
 0x199   : > { %2711 = vperm.xlu0 %4041, %v2384_v21   ;;  %2741 = vperm.xlu1 %4042, %v2390_v42   ;;  %v1623_v6 = vunpack.c.l.b16 %v1311_v27 }
 0x19a   : > { %2746 = vperm.xlu2 %4043, %v2391_v24   ;;  %v1557_v54 = vpack.c.b16 %v1547_v37, %v1546_v55  ;;  %v1594_v15 = vpack.c.b16 %v1585_v7, %v1584_v30  ;;  %v3722_v30 = vld [vmem:[%s6388_s9 + $0x5c] sm:$0xf0]  ;;  %v3797_v24 = vor.u32 %v3993_v38, %v3796_v35  ;;  %v4001_v7 = vld [vmem:[%s6388_s9 + $0x138] sm:$0xf0] }
 0x19b   : > { %v1164_v45 = vpop.permute.xlu0 %1163  ;;  %v1282_v49 = vpop.permute.xlu1 %1281  ;;  %v3725_v50 = vor.u32 %v3970_v48, %v3722_v30  ;;  %v3832_v55 = vld [vmem:[%s6388_s9 + $0x120] sm:$0xf] }
 0x19c   : > { %v1300_v3 = vmul.f32 %v4824_v17, %v1282_v49  ;;  %2195 = vmatpush.bf16.msrb.mxu0 %v1484_v47  ;;  %2239 = vmatpush.bf16.msrb.mxu1 %v1557_v54  ;;  %v1190_v18 = vmul.f32 %v4741_v19, %v1164_v45  ;;  %v1215_v22 = vpop.permute.xlu2 %1214  ;;  %v2848_v47 = vld [vmem:[%s6395_s16 + $0x18] sm:$0xff]  ;;  %v2847_v45 = vld [vmem:[%s6395_s16 + $0x10] sm:$0xff]  ;;  %v3829_v49 = vor.u32 %v3997_v44, %v3826_v9 }
 0x19d   : > { %2289 = vmatpush.bf16.msrb.mxu2 %v1594_v15  ;;  %v2399_v54 = vld [vmem:[%s6392_s13 + $0x38] sm:$0xff]  ;;  %v3833_v15 = vor.u32 %v4001_v7, %v3832_v55 }
 0x19e   : > { %v1312_v60 = vpack.c.bf16 %v1300_v3, %v1300_v3  ;;  %v1202_v16 = vpack.c.bf16 %v1190_v18, %v1190_v18  ;;  %v2392_v18 = vld [vmem:[%s6392_s13] sm:$0xff] }
 0x19f   : > { %2064 = vmatmul.bf16.gmra.mxu1 %v3769_v51  ;;  %2196 = vmatmul.bf16.vlgmr.msrb.gmra.mxu0 %v3697_v4  ;;  %v1241_v51 = vmul.f32 %v4692_v12, %v1215_v22 }
 0x1a0   : > { %v1624_v20 = vunpack.c.l.b16 %v1312_v60  ;;  %v1544_v36 = vunpack.c.l.b16 %v1202_v16  ;;  %v3750_v16 = vld [vmem:[%s6388_s9 + $0x94] sm:$0xf0] }
 0x1a1   : > { %2736 = vperm.xlu0 %4041, %v2389_v61   ;;  %2716 = vperm.xlu1 %4042, %v2385_v39   ;;  %v1253_v46 = vpack.c.bf16 %v1241_v51, %v1241_v51  ;;  %v3753_v35 = vor.u32 %v3977_v2, %v3750_v16  ;;  %v3852_v51 = vld [vmem:[%s6388_s9 + $0x150] sm:$0xf]  ;;  %v2850_v16 = vld [vmem:[%s6396_s17 + $0x8] sm:$0xff] }
 0x1a2   : > { %2731 = vperm.xlu2 %4043, %v2388_v8   ;;  %v1632_v11 = vpack.c.b16 %v1625_v23, %v1624_v20  ;;  %2167 = vmatmul.bf16.gmra.mxu3 %v3805_v52  ;;  %v3824_v20 = vld [vmem:[%s6388_s9 + $0x118] sm:$0xf] }
 0x1a3   : > { %v1221_v1 = vpop.permute.xlu0 %1220  ;;  %v1166_v57 = vpop.permute.xlu1 %1165  ;;  %2118 = vmatmul.bf16.gmra.mxu2 %v3801_v59  ;;  %v1580_v22 = vunpack.c.l.b16 %v1253_v46  ;;  %v3778_v46 = vld [vmem:[%s6388_s9 + $0xcc] sm:$0xf0] }
 0x1a4   : > { %v1244_v31 = vmul.f32 %v4692_v12, %v1221_v1  ;;  %v1191_v5 = vmul.f32 %v4741_v19, %v1166_v57  ;;  %2338 = vmatpush.bf16.msrb.mxu3 %v1632_v11  ;;  %v1276_v37 = vpop.permute.xlu2 %1275  ;;  %v4000_v57 = vld [vmem:[%s6388_s9 + $0x130] sm:$0xf0] }
 0x1a5   : > { %v1297_v61 = vmul.f32 %v4824_v17, %v1276_v37 }
 0x1a6   : > { %v1256_v26 = vpack.c.bf16 %v1244_v31, %v1244_v31  ;;  %v1203_v32 = vpack.c.bf16 %v1191_v5, %v1191_v5 }
 0x1a7   : > { %v1309_v31 = vpack.c.bf16 %v1297_v61, %v1297_v61 }
 0x1a8   : > { %v1583_v13 = vunpack.c.l.b16 %v1256_v26  ;;  %v1545_v0 = vunpack.c.l.b16 %v1203_v32  ;;  %v3860_v26 = vld [vmem:[%s6388_s9 + $0x158] sm:$0xf]  ;;  %v4008_v32 = vld [vmem:[%s6388_s9 + $0x170] sm:$0xf0] }
 0x1a9   : > { %2797 = vperm.xlu0 %4041, %v2398_v29   ;;  %2777 = vperm.xlu1 %4042, %v2394_v33   ;;  %v1621_v38 = vunpack.c.l.b16 %v1309_v31 }
 0x1aa   : > { %2782 = vperm.xlu2 %4043, %v2395_v34   ;;  %v1556_v40 = vpack.c.b16 %v1545_v0, %v1544_v36  ;;  %v1593_v14 = vpack.c.b16 %v1583_v13, %v1582_v56  ;;  %v3825_v34 = vor.u32 %v4000_v57, %v3824_v20  ;;  %v4004_v36 = vld [vmem:[%s6388_s9 + $0x154] sm:$0xf]  ;;  %v3854_v13 = vld [vmem:[%s6388_s9 + $0x16c] sm:$0xf0]  ;;  %v3861_v0 = vor.u32 %v4008_v32, %v3860_v26 }
 0x1ab   : > { %v1133_v21 = vpop.permute.xlu0 %1132  ;;  %v1278_v42 = vpop.permute.xlu1 %1277 }
 0x1ac   : > { %v1298_v43 = vmul.f32 %v4824_v17, %v1278_v42  ;;  %2240 = vmatpush.bf16.msrb.mxu1 %v1556_v40  ;;  %2290 = vmatpush.bf16.msrb.mxu2 %v1593_v14  ;;  %v1149_v63 = vmul.f32 %v4721_v41, %v1133_v21  ;;  %v1184_v52 = vpop.permute.xlu2 %1183  ;;  %v2846_v40 = vld [vmem:[%s6395_s16 + $0x8] sm:$0xff]  ;;  %v2845_v21 = vld [vmem:[%s6395_s16] sm:$0xff]  ;;  %v3857_v42 = vor.u32 %v4004_v36, %v3854_v13 }
 0x1ad   : > { %v1200_v48 = vmul.f32 %v4741_v19, %v1184_v52  ;;  %v2397_v14 = vld [vmem:[%s6392_s13 + $0x28] sm:$0xff] }
 0x1ae   : > { %v1310_v10 = vpack.c.bf16 %v1298_v43, %v1298_v43  ;;  %v1161_v53 = vpack.c.bf16 %v1149_v63, %v1149_v63 }
 0x1af   : > { %2069 = vmatmul.bf16.gmra.mxu1 %v3797_v24  ;;  %2201 = vmatmul.bf16.gmra.mxu0 %v3725_v50  ;;  %v1212_v55 = vpack.c.bf16 %v1200_v48, %v1200_v48 }
 0x1b0   : > { %v1622_v4 = vunpack.c.l.b16 %v1310_v10  ;;  %v1518_v39 = vunpack.c.l.b16 %v1161_v53 }
 0x1b1   : > { %2984 = vperm.xlu0 %4041, %v2848_v47   ;;  %2802 = vperm.xlu1 %4042, %v2399_v54   ;;  %v1554_v63 = vunpack.c.l.b16 %v1212_v55 }
 0x1b2   : > { %2979 = vperm.xlu2 %4043, %v2847_v45   ;;  %v1631_v58 = vpack.c.b16 %v1623_v6, %v1622_v4  ;;  %2172 = vmatmul.bf16.gmra.mxu3 %v3833_v15  ;;  %v2849_v15 = vld [vmem:[%s6396_s17] sm:$0xff]  ;;  %v2851_v45 = vld [vmem:[%s6396_s17 + $0x10] sm:$0xff] }
 0x1b3   : > { %v1217_v3 = vpop.permute.xlu0 %1216  ;;  %v1135_v28 = vpop.permute.xlu1 %1134  ;;  %2123 = vmatmul.bf16.gmra.mxu2 %v3829_v49  ;;  %v2852_v49 = vld [vmem:[%s6396_s17 + $0x18] sm:$0xff] }
 0x1b4   : > { %v1242_v23 = vmul.f32 %v4692_v12, %v1217_v3  ;;  %v1150_v60 = vmul.f32 %v4721_v41, %v1135_v28  ;;  %2339 = vmatpush.bf16.msrb.mxu3 %v1631_v58  ;;  %v2393_v12 = vld [vmem:[%s6392_s13 + $0x8] sm:$0xff]  ;;  %v1272_v24 = vpop.permute.xlu2 %1271  ;;  %v3984_v28 = vld [vmem:[%s6388_s9 + $0xb4] sm:$0xf] }
 0x1b5   : > { %v1295_v4 = vmul.f32 %v4824_v17, %v1272_v24  ;;  %v4007_v3 = vld [vmem:[%s6388_s9 + $0x168] sm:$0xf0]  ;;  %v3806_v24 = vld [vmem:[%s6388_s9 + $0x104] sm:$0xf0] }
 0x1b6   : > { %v1254_v8 = vpack.c.bf16 %v1242_v23, %v1242_v23  ;;  %v1162_v59 = vpack.c.bf16 %v1150_v60, %v1150_v60 }
 0x1b8   : > { %v1581_v11 = vunpack.c.l.b16 %v1254_v8  ;;  %v1519_v1 = vunpack.c.l.b16 %v1162_v59  ;;  %v3853_v8 = vor.u32 %v4007_v3, %v3852_v51  ;;  %v3781_v59 = vor.u32 %v3984_v28, %v3778_v46  ;;  %v3708_v51 = vld [vmem:[%s6388_s9 + $0x18] sm:$0xf] }
 0x1b9   : > { %2787 = vperm.xlu0 %4041, %v2396_v25   ;;  %2767 = vperm.xlu1 %4042, %v2392_v18   ;;  %v3888_v25 = vld [vmem:[%s6388_s9 + $0x190] sm:$0xf]  ;;  %v4015_v18 = vld [vmem:[%s6388_s9 + $0x1a8] sm:$0xf0] }
 0x1ba   : > { %2772 = vperm.xlu2 %4043, %v2393_v12   ;;  %v1525_v5 = vpack.c.b16 %v1519_v1, %v1518_v39  ;;  %v1592_v62 = vpack.c.b16 %v1581_v11, %v1580_v22  ;;  %v1307_v12 = vpack.c.bf16 %v1295_v4, %v1295_v4  ;;  %v4011_v22 = vld [vmem:[%s6388_s9 + $0x18c] sm:$0xf]  ;;  %v3882_v11 = vld [vmem:[%s6388_s9 + $0x1a4] sm:$0xf0]  ;;  %v3889_v31 = vor.u32 %v4015_v18, %v3888_v25  ;;  %v3968_v4 = vld [vmem:[%s6388_s9 + $0x30] sm:$0xf0] }
 0x1bb   : > { %v1129_v29 = vpop.permute.xlu0 %1128  ;;  %v1274_v33 = vpop.permute.xlu1 %1273  ;;  %v3709_v46 = vor.u32 %v3968_v4, %v3708_v51  ;;  %v3834_v25 = vld [vmem:[%s6388_s9 + $0x13c] sm:$0xf0]  ;;  %v3967_v18 = vld [vmem:[%s6388_s9 + $0x28] sm:$0xf0] }
 0x1bc   : > { %v1296_v56 = vmul.f32 %v4824_v17, %v1274_v33  ;;  %2241 = vmatpush.bf16.msrb.mxu1 %v1525_v5  ;;  %2291 = vmatpush.bf16.msrb.mxu2 %v1592_v62  ;;  %v1147_v30 = vmul.f32 %v4721_v41, %v1129_v29  ;;  %v1180_v23 = vpop.permute.xlu2 %1179  ;;  %v3885_v5 = vor.u32 %v4011_v22, %v3882_v11  ;;  %v1619_v62 = vunpack.c.l.b16 %v1307_v12  ;;  %v3756_v4 = vld [vmem:[%s6388_s9 + $0x80] sm:$0xf] }
 0x1bd   : > { %v1198_v1 = vmul.f32 %v4741_v19, %v1180_v23 }
 0x1be   : > { %v1308_v27 = vpack.c.bf16 %v1296_v56, %v1296_v56  ;;  %v1159_v7 = vpack.c.bf16 %v1147_v30, %v1147_v30 }
 0x1bf   : > { %2074 = vmatmul.bf16.gmra.mxu1 %v3825_v34  ;;  %2206 = vmatmul.bf16.gmra.mxu0 %v3753_v35  ;;  %v1210_v32 = vpack.c.bf16 %v1198_v1, %v1198_v1 }
 0x1c0   : > { %v1620_v50 = vunpack.c.l.b16 %v1308_v27  ;;  %v1516_v10 = vunpack.c.l.b16 %v1159_v7  ;;  %v3880_v27 = vld [vmem:[%s6388_s9 + $0x188] sm:$0xf] }
 0x1c1   : > { %2974 = vperm.xlu0 %4041, %v2846_v40   ;;  %2792 = vperm.xlu1 %4042, %v2397_v14  }
 0x1c2   : > { %2969 = vperm.xlu2 %4043, %v2845_v21   ;;  %v1630_v37 = vpack.c.b16 %v1621_v38, %v1620_v50  ;;  %2177 = vmatmul.bf16.gmra.mxu3 %v3861_v0  ;;  %v1552_v0 = vunpack.c.l.b16 %v1210_v32  ;;  %v3975_v32 = vld [vmem:[%s6388_s9 + $0x68] sm:$0xf0] }
 0x1c3   : > { %v1186_v43 = vpop.permute.xlu0 %1185  ;;  %v1131_v44 = vpop.permute.xlu1 %1130  ;;  %2128 = vmatmul.bf16.gmra.mxu2 %v3857_v42  ;;  %v3991_v42 = vld [vmem:[%s6388_s9 + $0xec] sm:$0xf] }
 0x1c4   : > { %v1201_v9 = vmul.f32 %v4741_v19, %v1186_v43  ;;  %v1148_v6 = vmul.f32 %v4721_v41, %v1131_v44  ;;  %2340 = vmatpush.bf16.msrb.mxu3 %v1630_v37  ;;  %v1268_v13 = vpop.permute.xlu2 %1267  ;;  %v3809_v44 = vor.u32 %v3991_v42, %v3806_v24 }
 0x1c5   : > { %v1293_v40 = vmul.f32 %v4824_v17, %v1268_v13 }
 0x1c6   : > { %v1213_v47 = vpack.c.bf16 %v1201_v9, %v1201_v9  ;;  %v1160_v54 = vpack.c.bf16 %v1148_v6, %v1148_v6 }
 0x1c7   : > { %v1305_v9 = vpack.c.bf16 %v1293_v40, %v1293_v40  ;;  %v3974_v40 = vld [vmem:[%s6388_s9 + $0x60] sm:$0xf0] }
 0x1c8   : > { %v1555_v53 = vunpack.c.l.b16 %v1213_v47  ;;  %v1517_v58 = vunpack.c.l.b16 %v1160_v54 }
 0x1c9   : > { %2997 = vperm.xlu0 %4041, %v2849_v15   ;;  %3007 = vperm.xlu1 %4042, %v2851_v45   ;;  %v1617_v45 = vunpack.c.l.b16 %v1305_v9 }
 0x1ca   : > { %3012 = vperm.xlu2 %4043, %v2852_v49   ;;  %v1524_v60 = vpack.c.b16 %v1517_v58, %v1516_v10  ;;  %v1561_v61 = vpack.c.b16 %v1555_v53, %v1554_v63  ;;  %v3964_v63 = vld [vmem:[%s6388_s9 + $0x14] sm:$0xf]  ;;  %v3702_v10 = vld [vmem:[%s6388_s9 + $0x2c] sm:$0xf0] }
 0x1cb   : > { %v1125_v39 = vpop.permute.xlu0 %1124  ;;  %v1270_v52 = vpop.permute.xlu1 %1269  ;;  %v3705_v15 = vor.u32 %v3964_v63, %v3702_v10  ;;  %v3982_v63 = vld [vmem:[%s6388_s9 + $0xa0] sm:$0xf0] }
 0x1cc   : > { %v1294_v20 = vmul.f32 %v4824_v17, %v1270_v52  ;;  %2242 = vmatpush.bf16.msrb.mxu1 %v1524_v60  ;;  %2292 = vmatpush.bf16.msrb.mxu2 %v1561_v61  ;;  %v1145_v57 = vmul.f32 %v4721_v41, %v1125_v39  ;;  %v5099_v49 = vpop.permute.xlu2 %1693 }
 0x1ce   : > { %v1306_v2 = vpack.c.bf16 %v1294_v20, %v1294_v20  ;;  %v1157_v29 = vpack.c.bf16 %v1145_v57, %v1145_v57 }
 0x1cf   : > { %2079 = vmatmul.bf16.gmra.mxu1 %v3853_v8  ;;  %2211 = vmatmul.bf16.gmra.mxu0 %v3781_v59  ;;  %v3998_v8 = vld [vmem:[%s6388_s9 + $0x124] sm:$0xf] }
 0x1d0   : > { %v1618_v26 = vunpack.c.l.b16 %v1306_v2  ;;  %v1514_v38 = vunpack.c.l.b16 %v1157_v29  ;;  %v3837_v11 = vor.u32 %v3998_v8, %v3834_v25  ;;  %v3971_v2 = vld [vmem:[%s6388_s9 + $0x4c] sm:$0xf]  ;;  %v3792_v25 = vld [vmem:[%s6388_s9 + $0xc0] sm:$0xf] }
 0x1d1   : > { %3002 = vperm.xlu1 %4042, %v2850_v16   ;;  %v3730_v16 = vld [vmem:[%s6388_s9 + $0x64] sm:$0xf0] }
 0x1d2   : > { %v1629_v33 = vpack.c.b16 %v1619_v62, %v1618_v26  ;;  %2182 = vmatmul.bf16.gmra.mxu3 %v3889_v31  ;;  %v3733_v62 = vor.u32 %v3971_v2, %v3730_v16  ;;  %v3736_v26 = vld [vmem:[%s6388_s9 + $0x50] sm:$0xf] }
 0x1d3   : > { %v1182_v34 = vpop.permute.xlu0 %1181  ;;  %v1127_v35 = vpop.permute.xlu1 %1126  ;;  %2133 = vmatmul.bf16.gmra.mxu2 %v3885_v5 }
 0x1d4   : > { %v1199_v56 = vmul.f32 %v4741_v19, %v1182_v34  ;;  %v1146_v36 = vmul.f32 %v4721_v41, %v1127_v35  ;;  %2341 = vmatpush.bf16.msrb.mxu3 %v1629_v33  ;;  %v4014_v19 = vld [vmem:[%s6388_s9 + $0x1a0] sm:$0xf0]  ;;  %v1679_v12 = vpop.permute.xlu2 %1678  ;;  %v3737_v34 = vor.u32 %v3975_v32, %v3736_v26 }
 0x1d5   : > { %v3881_v43 = vor.u32 %v4014_v19, %v3880_v27  ;;  %v3728_v27 = vld [vmem:[%s6388_s9 + $0x48] sm:$0xf] }
 0x1d6   : > { %v1211_v48 = vpack.c.bf16 %v1199_v56, %v1199_v56  ;;  %v1158_v30 = vpack.c.bf16 %v1146_v36, %v1146_v36  ;;  %v3729_v19 = vor.u32 %v3974_v40, %v3728_v27 }
 0x1d8   : > { %v1553_v14 = vunpack.c.l.b16 %v1211_v48  ;;  %v1515_v21 = vunpack.c.l.b16 %v1158_v30 }
 0x1da   : > { %v1523_v50 = vpack.c.b16 %v1515_v21, %v1514_v38  ;;  %v1560_v55 = vpack.c.b16 %v1553_v14, %v1552_v0 }
 0x1db   : > { %v1121_v7 = vpop.permute.xlu0 %1120  ;;  %v1266_v37 = vpop.permute.xlu1 %1265 }
 0x1dc   : > { %v1292_v6 = vmul.f32 %v4824_v17, %v1266_v37  ;;  %2243 = vmatpush.bf16.msrb.mxu1 %v1523_v50  ;;  %2293 = vmatpush.bf16.msrb.mxu2 %v1560_v55  ;;  %v1143_v47 = vmul.f32 %v4721_v41, %v1121_v7  ;;  %v1664_v35 = vpop.permute.xlu2 %1663  ;;  %v3978_v50 = vld [vmem:[%s6388_s9 + $0x84] sm:$0xf]  ;;  %v3758_v55 = vld [vmem:[%s6388_s9 + $0x9c] sm:$0xf0] }
 0x1dd   : > { %v3761_v9 = vor.u32 %v3978_v50, %v3758_v55 }
 0x1de   : > { %v1304_v54 = vpack.c.bf16 %v1292_v6, %v1292_v6  ;;  %v1155_v53 = vpack.c.bf16 %v1143_v47, %v1143_v47  ;;  %v3764_v6 = vld [vmem:[%s6388_s9 + $0x88] sm:$0xf] }
 0x1df   : > { %2084 = vmatmul.bf16.gmra.mxu1 %v3881_v43  ;;  %2216 = vmatmul.bf16.gmra.mxu0 %v3809_v44  ;;  %v3765_v47 = vor.u32 %v3982_v63, %v3764_v6  ;;  %v3840_v63 = vld [vmem:[%s6388_s9 + $0x128] sm:$0xf] }
 0x1e0   : > { %v1616_v17 = vunpack.c.l.b16 %v1304_v54  ;;  %v1512_v61 = vunpack.c.l.b16 %v1155_v53  ;;  %v3981_v53 = vld [vmem:[%s6388_s9 + $0x98] sm:$0xf0] }
 0x1e2   : > { %v1628_v58 = vpack.c.b16 %v1617_v45, %v1616_v17 }
 0x1e3   : > { %v5107_v3 = vpop.permute.xlu0 %1688  ;;  %v1123_v28 = vpop.permute.xlu1 %1122  ;;  %2294 = vmatmul.bf16.vlgmr.msrb.gmra.mxu2 %v3705_v15 }
 0x1e4   : > { %v1144_v23 = vmul.f32 %v4721_v41, %v1123_v28  ;;  %2342 = vmatpush.bf16.msrb.mxu3 %v1628_v58  ;;  %v3700_v41 = vld [vmem:[%s6388_s9 + $0x10] sm:$0xf]  ;;  %v3757_v28 = vor.u32 %v3981_v53, %v3756_v4 }
 0x1e5   : > { %v2148_v60 = vpop.f32.mrf.mxu3  ;;  %v3701_v1 = vor.u32 %v3967_v18, %v3700_v41  ;;  %v3989_v41 = vld [vmem:[%s6388_s9 + $0xd8] sm:$0xf0] }
 0x1e6   : > { %v1156_v39 = vpack.c.bf16 %v1144_v23, %v1144_v23  ;;  %v2099_v52 = vpop.f32.mrf.mxu2  ;;  %v3985_v23 = vld [vmem:[%s6388_s9 + $0xbc] sm:$0xf] }
 0x1e7   : > { %3906 = vmatmul.msk.bf16.vlgmr.msrb.gmra.mxu3 %vm2016_vm2, %v3709_v46 }
 0x1e8   : > { %v1513_v59 = vunpack.c.l.b16 %v1156_v39 }
 0x1ea   : > { %v1522_v20 = vpack.c.b16 %v1513_v59, %v1512_v61 }
 0x1eb   : > { %v1674_v22 = vpop.permute.xlu0 %1673  ;;  %v5135_v29 = vpop.permute.xlu1 %1683 }
 0x1ec   : > { %v2050_v57 = vpop.f32.mrf.mxu1  ;;  %2244 = vmatpush.bf16.msrb.mxu1 %v1522_v20  ;;  %v3793_v20 = vor.u32 %v3989_v41, %v3792_v25 }
 0x1ed   : > { %v2150_v31 = vpop.f32.mrf.mxu3 }
 0x1ee   : > { %v2101_v5 = vpop.f32.mrf.mxu2 }
 0x1ef   : > { %2221 = vmatmul.bf16.gmra.mxu0 %v3837_v11  ;;  %2245 = vmatmul.bf16.vlgmr.msrb.gmra.mxu1 %v3701_v1  ;;  %v3784_v1 = vld [vmem:[%s6388_s9 + $0xb8] sm:$0xf] }
 0x1f3   : > { %v1659_v33 = vpop.permute.xlu0 %1658  ;;  %2299 = vmatmul.bf16.gmra.mxu2 %v3733_v62  ;;  %v1669_v42 = vpop.permute.xlu1 %1668 }
 0x1f4   : > { %v2051_v56 = vadd.f32 %v2050_v57, %v1659_v33  ;;  %v2052_v36 = vpop.f32.mrf.mxu1  ;;  %v3988_v57 = vld [vmem:[%s6388_s9 + $0xd0] sm:$0xf0] }
 0x1f5   : > { %v2053_v13 = vadd.f32 %v2052_v36, %v1664_v35  ;;  %v2153_v0 = vpop.f32.mrf.mxu3  ;;  %v3785_v2 = vor.u32 %v3988_v57, %v3784_v1  ;;  %v3820_v35 = vld [vmem:[%s6388_s9 + $0xf8] sm:$0xf] }
 0x1f6   : > { %v2100_v38 = vadd.f32 %v2099_v52, %v2051_v56  ;;  %v2104_v48 = vpop.f32.mrf.mxu2  ;;  %v3996_v56 = vld [vmem:[%s6388_s9 + $0x110] sm:$0xf0] }
 0x1f7   : > { %v2102_v30 = vadd.f32 %v2101_v5, %v2053_v13  ;;  %3907 = vmatmul.msk.bf16.gmra.mxu3 %vm2016_vm2, %v3737_v34  ;;  %v3814_v5 = vld [vmem:[%s6388_s9 + $0x10c] sm:$0xf0]  ;;  %v3821_v13 = vor.u32 %v3996_v56, %v3820_v35 }
 0x1f8   : > { %v5144_v14 = vadd.f32 %v2148_v60, %v2100_v38  ;;  %v3786_v60 = vld [vmem:[%s6388_s9 + $0xd4] sm:$0xf0] }
 0x1f9   : > { %v5146_v21 = vadd.f32 %v2150_v31, %v2102_v30  ;;  %v3789_v59 = vor.u32 %v3985_v23, %v3786_v60  ;;  %v3992_v31 = vld [vmem:[%s6388_s9 + $0xf4] sm:$0xf]  ;;  %v3995_v30 = vld [vmem:[%s6388_s9 + $0x108] sm:$0xf0] }
 0x1fa   : > { %v3817_v34 = vor.u32 %v3992_v31, %v3814_v5 }
 0x1fc   : > { %v2055_v24 = vpop.f32.mrf.mxu1 }
 0x1fd   : > { %v2056_v7 = vadd.f32 %v2055_v24, %v1669_v42  ;;  %v2155_v37 = vpop.f32.mrf.mxu3  ;;  %v3842_v42 = vld [vmem:[%s6388_s9 + $0x144] sm:$0xf0] }
 0x1fe   : > { %v2106_v43 = vpop.f32.mrf.mxu2 }
 0x1ff   : > { %v2105_v44 = vadd.f32 %v2104_v48, %v2056_v7  ;;  %2250 = vmatmul.bf16.gmra.mxu1 %v3729_v19  ;;  %v3812_v48 = vld [vmem:[%s6388_s9 + $0xf0] sm:$0xf]  ;;  %v3999_v19 = vld [vmem:[%s6388_s9 + $0x12c] sm:$0xf] }
 0x200   : > { %v3813_v27 = vor.u32 %v3995_v30, %v3812_v48  ;;  %v3845_v55 = vor.u32 %v3999_v19, %v3842_v42  ;;  %v3848_v7 = vld [vmem:[%s6388_s9 + $0x130] sm:$0xf]  ;;  %v5328_v19 = vld [vmem:[%s6480_s12 + $0x78] sm:$0xff] }
 0x201   : > { %v5160_v10 = vadd.f32 %v2153_v0, %v2105_v44  ;;  %6481 = vst [vmem:[#allocation23_spill] sm:$0xff] %v5328_v19  ;;  %2853 = vmatpush.msra.mxu3 %v5328_v19  ;;  %2572 = vmatpush.msra.mxu2 %v5328_v19 }
 0x203   : > { %2304 = vmatmul.bf16.gmra.mxu2 %v3761_v9 }
 0x204   : > { %v2057_v54 = vpop.f32.mrf.mxu1 }
 0x205   : > { %v2058_v15 = vadd.f32 %v2057_v54, %v1674_v22  ;;  %v2158_v45 = vpop.f32.mrf.mxu3 }
 0x206   : > { %v2109_v17 = vpop.f32.mrf.mxu2 }
 0x207   : > { %v2107_v51 = vadd.f32 %v2106_v43, %v2058_v15  ;;  %3908 = vmatmul.msk.bf16.gmra.mxu3 %vm2016_vm2, %v3765_v47  ;;  %v4002_v47 = vld [vmem:[%s6388_s9 + $0x140] sm:$0xf0] }
 0x208   : > { %v3841_v54 = vor.u32 %v4002_v47, %v3840_v63  ;;  %v5355_v63 = vld [vmem:[%s6480_s12 + $0x60] sm:$0xff] }
 0x209   : > { %v5169_v58 = vadd.f32 %v2155_v37, %v2107_v51  ;;  %v4003_v37 = vld [vmem:[%s6388_s9 + $0x148] sm:$0xf0]  ;;  %6485 = vst [vmem:[#allocation27_spill] sm:$0xff] %v5355_v63 }
 0x20a   : > { %v3849_v43 = vor.u32 %v4003_v37, %v3848_v7  ;;  %v5343_v7 = vld [vmem:[%s6480_s12 + $0x68] sm:$0xff] }
 0x20b   : > { %6483 = vst [vmem:[#allocation25_spill] sm:$0xff] %v5343_v7 }
 0x20c   : > { %v2060_v46 = vpop.f32.mrf.mxu1 }
 0x20d   : > { %v2061_v61 = vadd.f32 %v2060_v46, %v1679_v12  ;;  %v5177_v39 = vpop.f32.mrf.mxu3 }
 0x20e   : > { %v5179_v52 = vpop.f32.mrf.mxu2 }
 0x20f   : > { %v2110_v8 = vadd.f32 %v2109_v17, %v2061_v61  ;;  %2255 = vmatmul.bf16.gmra.mxu1 %v3757_v28 }
 0x211   : > { %v5187_v18 = vadd.f32 %v2158_v45, %v2110_v8 }
 0x213   : > { %2309 = vmatmul.bf16.gmra.mxu2 %v3789_v59 }
 0x214   : > { %v5189_v12 = vpop.f32.mrf.mxu1 }
 0x215   : > { %v2163_v22 = vpop.f32.mrf.mxu3 }
 0x216   : > { %v2114_v11 = vpop.f32.mrf.mxu2 }
 0x217   : > { %3909 = vmatmul.msk.bf16.gmra.mxu3 %vm2016_vm2, %v3793_v20 }
 0x21c   : > { %v2065_v16 = vpop.f32.mrf.mxu1  ;;  %v2197_v60 = vpop.f32.mrf.mxu0 }
 0x21d   : > { %v2066_v62 = vadd.f32 %v2065_v16, %v5107_v3  ;;  %v5205_v26 = vpop.f32.mrf.mxu3  ;;  %v2198_v16 = vadd.f32 %v2197_v60, %v5144_v14  ;;  %v3876_v14 = vld [vmem:[%s6388_s9 + $0x168] sm:$0xf] }
 0x21e   : > { %v5207_v32 = vpop.f32.mrf.mxu2 }
 0x21f   : > { %v2115_v33 = vadd.f32 %v2114_v11, %v2066_v62  ;;  %2260 = vmatmul.bf16.gmra.mxu1 %v3785_v2 }
 0x221   : > { %v5215_v36 = vadd.f32 %v2163_v22, %v2115_v33  ;;  %v4005_v33 = vld [vmem:[%s6388_s9 + $0x15c] sm:$0xf] }
 0x223   : > { %2314 = vmatmul.bf16.gmra.mxu2 %v3817_v34  ;;  %v3862_v34 = vld [vmem:[%s6388_s9 + $0x174] sm:$0xf0] }
 0x224   : > { %v5217_v3 = vpop.f32.mrf.mxu1  ;;  %v5285_v25 = vpop.f32.mrf.mxu0  ;;  %v3865_v56 = vor.u32 %v4005_v33, %v3862_v34  ;;  %v4012_v33 = vld [vmem:[%s6388_s9 + $0x194] sm:$0xf]  ;;  %v3890_v34 = vld [vmem:[%s6388_s9 + $0x1ac] sm:$0xf0] }
 0x225   : > { %v5219_v0 = vpop.f32.mrf.mxu3 }
 0x226   : > { %v5221_v38 = vpop.f32.mrf.mxu2  ;;  %2226 = vmatmul.bf16.gmra.mxu0 %v3865_v56  ;;  %v3893_v56 = vor.u32 %v4012_v33, %v3890_v34 }
 0x227   : > { %3910 = vmatmul.msk.bf16.gmra.mxu3 %vm2016_vm2, %v3821_v13  ;;  %v4010_v13 = vld [vmem:[%s6388_s9 + $0x180] sm:$0xf0] }
 0x228   : > { %v3877_v30 = vor.u32 %v4010_v13, %v3876_v14  ;;  %v3904_v14 = vld [vmem:[%s6388_s9 + $0x1a0] sm:$0xf]  ;;  %v4017_v13 = vld [vmem:[%s6388_s9 + $0x1b8] sm:$0xf0] }
 0x229   : > { %v3905_v33 = vor.u32 %v4017_v13, %v3904_v14  ;;  %v5420_v14 = vld [vmem:[%s6480_s12 + $0x30] sm:$0xff]  ;;  %v5427_v13 = vld [vmem:[%s6480_s12 + $0x28] sm:$0xff] }
 0x22c   : > { %v5230_v40 = vpop.f32.mrf.mxu1  ;;  %v5295_v1 = vpop.f32.mrf.mxu0 }
 0x22d   : > { %v5238_v24 = vpop.f32.mrf.mxu3 }
 0x22e   : > { %v5240_v50 = vpop.f32.mrf.mxu2 }
 0x22f   : > { %2265 = vmatmul.bf16.gmra.mxu1 %v3813_v27 }
 0x233   : > { %2319 = vmatmul.bf16.gmra.mxu2 %v3845_v55  ;;  %v5337_v55 = vld [vmem:[%s6480_s12 + $0x70] sm:$0xff] }
 0x234   : > { %v5248_v44 = vpop.f32.mrf.mxu1  ;;  %v5312_v35 = vpop.f32.mrf.mxu0  ;;  %6482 = vst [vmem:[#allocation24_spill] sm:$0xff] %v5337_v55  ;;  %2854 = vmatpush.msra.mxu3 %v5337_v55  ;;  %2573 = vmatpush.msra.mxu2 %v5337_v55 }
 0x235   : > { %v5250_v9 = vpop.f32.mrf.mxu3 }
 0x236   : > { %6461 = vst [vmem:[#allocation4_spill] sm:$0xff] %v5250_v9  ;;  %v5252_v6 = vpop.f32.mrf.mxu2  ;;  %2855 = vmatpush.msra.mxu3 %v5343_v7  ;;  %2574 = vmatpush.msra.mxu2 %v5343_v7 }
 0x237   : > { %6462 = vst [vmem:[#allocation5_spill] sm:$0xff] %v5252_v6  ;;  %3911 = vmatmul.msk.bf16.gmra.mxu3 %vm2016_vm2, %v3849_v43  ;;  %2231 = vmatmul.bf16.gmra.mxu0 %v3893_v56 }
 0x238   : > { %2856 = vmatpush.msra.mxu3 %v5355_v63  ;;  %2575 = vmatpush.msra.mxu2 %v5355_v63 }
 0x23c   : > { %v5261_v15 = vpop.f32.mrf.mxu1  ;;  %v5348_v37 = vpop.f32.mrf.mxu0 }
 0x23d   : > { %v5263_v45 = vpop.f32.mrf.mxu3 }
 0x23e   : > { %6463 = vst [vmem:[#allocation6_spill] sm:$0xff] %v5263_v45  ;;  %v5265_v17 = vpop.f32.mrf.mxu2 }
 0x23f   : > { %6464 = vst [vmem:[#allocation7_spill] sm:$0xff] %v5265_v17  ;;  %2270 = vmatmul.bf16.gmra.mxu1 %v3841_v54  ;;  %v5364_v54 = vld [vmem:[%s6480_s12 + $0x58] sm:$0xff] }
 0x240   : > { %6486 = vst [vmem:[#allocation28_spill] sm:$0xff] %v5364_v54  ;;  %2857 = vmatpush.msra.mxu3 %v5364_v54  ;;  %2576 = vmatpush.msra.mxu2 %v5364_v54 }
 0x244   : > { %v5267_v51 = vpop.f32.mrf.mxu1  ;;  %v2209_v34 = vpop.f32.mrf.mxu0 }
 0x245   : > { %6465 = vst [vmem:[#allocation8_spill] sm:$0xff] %v5267_v51  ;;  %v5269_v4 = vpop.f32.mrf.mxu3  ;;  %v2063_v51 = vadd.f32 %v5189_v12, %v5135_v29 }
 0x246   : > { %6466 = vst [vmem:[#allocation9_spill] sm:$0xff] %v5269_v4  ;;  %v5271_v53 = vpop.f32.mrf.mxu2  ;;  %v5450_v4 = vld [vmem:[%s6480_s12 + $0x10] sm:$0xff] }
 0x247   : > { %6467 = vst [vmem:[#allocation10_spill] sm:$0xff] %v5271_v53  ;;  %3912 = vmatmul.msk.bf16.gmra.mxu3 %vm2016_vm2, %v3877_v30  ;;  %v5463_v53 = vld [vmem:[%s6480_s12] sm:$0xff] }
 0x24c   : > { %v5273_v28 = vpop.f32.mrf.mxu1 }
 0x24d   : > { %6468 = vst [vmem:[#allocation11_spill] sm:$0xff] %v5273_v28  ;;  %v5277_v23 = vpop.f32.mrf.mxu3 }
 0x24e   : > { %v5275_v46 = vpop.f32.mrf.mxu2  ;;  %6470 = vst [vmem:[#allocation13_spill] sm:$0xff] %v5277_v23  ;;  %v2212_v23 = vpop.f32.mrf.mxu0 }
 0x24f   : > { %6469 = vst [vmem:[#allocation12_spill] sm:$0xff] %v5275_v46  ;;  %v2213_v12 = vadd.f32 %v2212_v23, %v5215_v36  ;;  %v2205_v23 = vadd.f32 %v5312_v35, %v5169_v58  ;;  %v2200_v58 = vadd.f32 %v5285_v25, %v5146_v21 }
 0x254   : > { %v5279_v61 = vpop.f32.mrf.mxu1 }
 0x255   : > { %6471 = vst [vmem:[#allocation14_spill] sm:$0xff] %v5279_v61  ;;  %v5283_v59 = vpop.f32.mrf.mxu3  ;;  %v5457_v61 = vld [vmem:[%s6480_s12 + $0x8] sm:$0xff] }
 0x256   : > { %v5281_v8 = vpop.f32.mrf.mxu2  ;;  %6473 = vst [vmem:[#allocation16_spill] sm:$0xff] %v5283_v59  ;;  %v5411_v59 = vld [vmem:[%s6480_s12 + $0x38] sm:$0xff]  ;;  %v2214_v9 = vpop.f32.mrf.mxu0 }
 0x257   : > { %6472 = vst [vmem:[#allocation15_spill] sm:$0xff] %v5281_v8  ;;  %3913 = vmatmul.msk.bf16.gmra.mxu3 %vm2016_vm2, %v3905_v33  ;;  %v5433_v33 = vld [vmem:[%s6480_s12 + $0x20] sm:$0xff] }
 0x25c   : > { %v5287_v41 = vpop.f32.mrf.mxu1 }
 0x25d   : > { %6474 = vst [vmem:[#allocation17_spill] sm:$0xff] %v5287_v41  ;;  %v5291_v22 = vpop.f32.mrf.mxu3  ;;  %v5443_v41 = vld [vmem:[%s6480_s12 + $0x18] sm:$0xff] }
 0x25e   : > { %v5289_v20 = vpop.f32.mrf.mxu2  ;;  %6476 = vst [vmem:[#allocation19_spill] sm:$0xff] %v5291_v22  ;;  %v5401_v22 = vld [vmem:[%s6480_s12 + $0x40] sm:$0xff] }
 0x25f   : > { %6475 = vst [vmem:[#allocation18_spill] sm:$0xff] %v5289_v20 }
 0x264   : > { %v5293_v11 = vpop.f32.mrf.mxu1 }
 0x265   : > { %6477 = vst [vmem:[#allocation20_spill] sm:$0xff] %v5293_v11 }
 0x266   : > { %v5297_v57 = vpop.f32.mrf.mxu2 }
 0x26a   : > { %v5299_v2 = vpop.f32.mrf.mxu3 }
 0x26b   : > { %6478 = vst [vmem:[#allocation21_spill] sm:$0xff] %v5299_v2  ;;  %v2068_v2 = vadd.f32 %v5217_v3, %v5099_v49 }
 0x26c   : > { %v2246_v31 = vpop.f32.mrf.mxu1 }
 0x26d   : > { %v5302_v5 = vadd.f32 %v2246_v31, %v2198_v16  ;;  %v5373_v16 = vld [vmem:[%s6480_s12 + $0x50] sm:$0xff]  ;;  %v5379_v31 = vld [vmem:[%s6480_s12 + $0x48] sm:$0xff] }
 0x26e   : > { %v5304_v62 = vpop.f32.mrf.mxu2  ;;  %2858 = vmatpush.msra.mxu3 %v5373_v16  ;;  %6487 = vst [vmem:[#allocation29_spill] sm:$0xff] %v5379_v31  ;;  %2577 = vmatpush.msra.mxu2 %v5373_v16 }
 0x270   : > { %2859 = vmatpush.msra.mxu3 %v5379_v31  ;;  %2578 = vmatpush.msra.mxu2 %v5379_v31 }
 0x272   : > { %v5320_v48 = vpop.f32.mrf.mxu3  ;;  %2860 = vmatpush.msra.mxu3 %v5401_v22  ;;  %2579 = vmatpush.msra.mxu2 %v5401_v22 }
 0x273   : > { %6479 = vst [vmem:[#allocation22_spill] sm:$0xff] %v5320_v48 }
 0x274   : > { %v5322_v27 = vpop.f32.mrf.mxu1  ;;  %2861 = vmatpush.msra.mxu3 %v5411_v59  ;;  %2580 = vmatpush.msra.mxu2 %v5411_v59 }
 0x275   : > { %v2249_v21 = vadd.f32 %v5322_v27, %v2200_v58  ;;  %v6497_v58 = vld [vmem:[#allocation24_spill] sm:$0xff] }
 0x276   : > { %v5332_v42 = vpop.f32.mrf.mxu2  ;;  %2862 = vmatpush.msra.mxu3 %v5420_v14  ;;  %2581 = vmatpush.msra.mxu2 %v5420_v14 }
 0x278   : > { %2863 = vmatpush.msra.mxu3 %v5427_v13  ;;  %2582 = vmatpush.msra.mxu2 %v5427_v13 }
 0x27a   : > { %v5350_v43 = vpop.f32.mrf.mxu3  ;;  %2864 = vmatpush.msra.mxu3 %v5433_v33  ;;  %2583 = vmatpush.msra.mxu2 %v5433_v33 }
 0x27b   : > { %6484 = vst [vmem:[#allocation26_spill] sm:$0xff] %v5350_v43  ;;  %v2117_v43 = vadd.f32 %v5207_v32, %v2068_v2 }
 0x27c   : > { %v5359_v47 = vpop.f32.mrf.mxu1  ;;  %2865 = vmatpush.msra.mxu3 %v5443_v41  ;;  %2584 = vmatpush.msra.mxu2 %v5443_v41 }
 0x27d   : > { %v2166_v3 = vadd.f32 %v5205_v26, %v2117_v43  ;;  %v1704_v26 = vpop.permute.xlu2 %1703  ;;  %v2203_v43 = vadd.f32 %v5295_v1, %v5160_v10 }
 0x27e   : > { %v5368_v60 = vpop.f32.mrf.mxu2  ;;  %2866 = vmatpush.msra.mxu3 %v5450_v4  ;;  %2585 = vmatpush.msra.mxu2 %v5450_v4 }
 0x27f   : > { %v2215_v32 = vadd.f32 %v2214_v9, %v2166_v3  ;;  %v2252_v10 = vadd.f32 %v5359_v47, %v2203_v43  ;;  %v1709_v47 = vpop.permute.xlu0 %1708 }
 0x280   : > { %2867 = vmatpush.msra.mxu3 %v5457_v61  ;;  %2586 = vmatpush.msra.mxu2 %v5457_v61 }
 0x282   : > { %v5396_v30 = vpop.f32.mrf.mxu3  ;;  %2868 = vmatpush.msra.mxu3 %v5463_v53  ;;  %2587 = vmatpush.msra.mxu2 %v5463_v53 }
 0x284   : > { %v5405_v20 = vpop.f32.mrf.mxu1  ;;  %3389 = vmatpush.msrb.mxu2 %v5328_v19  ;;  %v2112_v19 = vadd.f32 %v5179_v52, %v2063_v51 }
 0x286   : > { %v5415_v56 = vpop.f32.mrf.mxu2  ;;  %3390 = vmatpush.msrb.mxu2 %v5337_v55  ;;  %v2161_v49 = vadd.f32 %v5177_v39, %v2112_v19 }
 0x288   : > { %3391 = vmatpush.msrb.mxu2 %v5343_v7  ;;  %v1699_v7 = vpop.permute.xlu1 %1698  ;;  %v2210_v52 = vadd.f32 %v2209_v34, %v2161_v49  ;;  %v6489_v49 = vld [vmem:[#allocation5_spill] sm:$0xff] }
 0x289   : > { %v2071_v29 = vadd.f32 %v5230_v40, %v1699_v7  ;;  %v2208_v40 = vadd.f32 %v5348_v37, %v5187_v18 }
 0x28a   : > { %v5436_v11 = vpop.f32.mrf.mxu3  ;;  %3392 = vmatpush.msrb.mxu2 %v5355_v63  ;;  %v2217_v63 = vpop.f32.mrf.mxu0 }
 0x28c   : > { %v2256_v8 = vpop.f32.mrf.mxu1  ;;  %3393 = vmatpush.msrb.mxu2 %v5364_v54 }
 0x28d   : > { %v2257_v7 = vadd.f32 %v2256_v8, %v2208_v40 }
 0x28e   : > { %v2307_v46 = vpop.f32.mrf.mxu2  ;;  %3394 = vmatpush.msrb.mxu2 %v5373_v16 }
 0x290   : > { %3395 = vmatpush.msrb.mxu2 %v5379_v31  ;;  %v2120_v31 = vadd.f32 %v5221_v38, %v2071_v29  ;;  %v2073_v38 = vadd.f32 %v5248_v44, %v1704_v26  ;;  %v2306_v44 = vadd.f32 %v5415_v56, %v2257_v7  ;;  %v1714_v40 = vpop.permute.xlu1 %1713 }
 0x292   : > { %v5466_v28 = vpop.f32.mrf.mxu3  ;;  %3396 = vmatpush.msrb.mxu2 %v5401_v22  ;;  %v2169_v18 = vadd.f32 %v5219_v0, %v2120_v31  ;;  %v2122_v0 = vadd.f32 %v5240_v50, %v2073_v38  ;;  %v5523_v50 = vadd.f32 %v5436_v11, %v2306_v44 }
 0x294   : > { %v2258_v45 = vpop.f32.mrf.mxu1  ;;  %3397 = vmatpush.msrb.mxu2 %v5411_v59  ;;  %v2171_v27 = vadd.f32 %v5238_v24, %v2122_v0  ;;  %v2296_v24 = vadd.f32 %v5297_v57, %v5302_v5  ;;  %v6491_v57 = vld [vmem:[#allocation21_spill] sm:$0xff]  ;;  %v6499_v0 = vld [vmem:[#allocation6_spill] sm:$0xff] }
 0x295   : > { %v2259_v39 = vadd.f32 %v2258_v45, %v2210_v52  ;;  %v2254_v45 = vadd.f32 %v5405_v20, %v2205_v23 }
 0x296   : > { %v2310_v17 = vpop.f32.mrf.mxu2  ;;  %3398 = vmatpush.msrb.mxu2 %v5420_v14  ;;  %v5550_v5 = vadd.f32 %v6491_v57, %v2296_v24  ;;  %v5611_v24 = vld [vmem:[%s6492_s8 + $0x20] sm:$0xff] }
 0x297   : > { %v2308_v37 = vadd.f32 %v2307_v46, %v2259_v39  ;;  %v2219_v46 = vpop.f32.mrf.mxu0  ;;  %v2303_v25 = vadd.f32 %v5368_v60, %v2254_v45  ;;  %v2076_v60 = vadd.f32 %v5261_v15, %v1709_v47  ;;  %v6488_v15 = vld [vmem:[#allocation26_spill] sm:$0xff]  ;;  %v6493_v39 = vld [vmem:[#allocation8_spill] sm:$0xff] }
 0x298   : > { %3399 = vmatpush.msrb.mxu2 %v5427_v13  ;;  %v2220_v11 = vadd.f32 %v2219_v46, %v2171_v27 }
 0x29a   : > { %v2359_v48 = vpop.f32.mrf.mxu3  ;;  %3400 = vmatpush.msrb.mxu2 %v5433_v33 }
 0x29c   : > { %v2261_v6 = vpop.f32.mrf.mxu1  ;;  %3401 = vmatpush.msrb.mxu2 %v5443_v41 }
 0x29d   : > { %v2262_v51 = vadd.f32 %v2261_v6, %v2213_v12  ;;  %v2125_v12 = vadd.f32 %v6489_v49, %v2076_v60  ;;  %v5586_v60 = vld [vmem:[%s6492_s8 + $0x10] sm:$0xff] }
 0x29e   : > { %v2312_v55 = vpop.f32.mrf.mxu2  ;;  %3402 = vmatpush.msrb.mxu2 %v5450_v4 }
 0x29f   : > { %v2311_v9 = vadd.f32 %v2310_v17, %v2262_v51  ;;  %v2218_v17 = vadd.f32 %v2217_v63, %v2169_v18  ;;  %v6496_v18 = vld [vmem:[#allocation7_spill] sm:$0xff] }
 0x2a0   : > { %3403 = vmatpush.msrb.mxu2 %v5457_v61 }
 0x2a1   : > { %v5509_v1 = vadd.f32 %v2359_v48, %v2311_v9  ;;  %v2301_v48 = vadd.f32 %v5332_v42, %v2252_v10  ;;  %v5533_v42 = vadd.f32 %v5396_v30, %v2303_v25  ;;  %v6490_v30 = vld [vmem:[#allocation22_spill] sm:$0xff]  ;;  %v6498_v10 = vld [vmem:[#allocation25_spill] sm:$0xff] }
 0x2a2   : > { %v2361_v54 = vpop.f32.mrf.mxu3  ;;  %3404 = vmatpush.msrb.mxu2 %v5463_v53 }
 0x2a4   : > { %v2263_v2 = vpop.f32.mrf.mxu1 }
 0x2a5   : > { %v2264_v19 = vadd.f32 %v2263_v2, %v2215_v32  ;;  %v2222_v32 = vpop.f32.mrf.mxu0  ;;  %v5555_v2 = vld [vmem:[%s6492_s8] sm:$0xff] }
 0x2a6   : > { %v2315_v36 = vpop.f32.mrf.mxu2 }
 0x2a7   : > { %v2313_v6 = vadd.f32 %v2312_v55, %v2264_v19  ;;  %v5517_v55 = vadd.f32 %v5466_v28, %v2308_v37  ;;  %v2298_v28 = vadd.f32 %v5304_v62, %v2249_v21  ;;  %v5541_v62 = vadd.f32 %v6488_v15, %v2301_v48  ;;  %v6500_v21 = vld [vmem:[#allocation27_spill] sm:$0xff]  ;;  %v5622_v15 = vld [vmem:[%s6492_s8 + $0x28] sm:$0xff] }
 0x2a8   : > { %v2078_v19 = vadd.f32 %v6493_v39, %v1714_v40 }
 0x2a9   : > { %v5501_v34 = vadd.f32 %v2361_v54, %v2313_v6  ;;  %v5546_v52 = vadd.f32 %v6490_v30, %v2298_v28  ;;  %v6495_v6 = vld [vmem:[#allocation23_spill] sm:$0xff]  ;;  %v6502_v28 = vld [vmem:[#allocation29_spill] sm:$0xff] }
 0x2aa   : > { %v2364_v8 = vpop.f32.mrf.mxu3  ;;  %v2127_v45 = vadd.f32 %v6496_v18, %v2078_v19 }
 0x2ab   : > { %2441 = vmatpush.msra.mxu0 %v5501_v34 }
 0x2ac   : > { %v2266_v20 = vpop.f32.mrf.mxu1  ;;  %v2176_v46 = vadd.f32 %v6499_v0, %v2127_v45  ;;  %v3868_v45 = vld [vmem:[%s6388_s9 + $0x160] sm:$0xf]  ;;  %v4016_v0 = vld [vmem:[%s6388_s9 + $0x1b0] sm:$0xf0] }
 0x2ad   : > { %v2267_v35 = vadd.f32 %v2266_v20, %v2218_v17  ;;  %2442 = vmatpush.msra.mxu0 %v5509_v1  ;;  %v5571_v17 = vld [vmem:[%s6492_s8 + $0x8] sm:$0xff]  ;;  %v2224_v44 = vpop.f32.mrf.mxu0 }
 0x2ae   : > { %v2317_v54 = vpop.f32.mrf.mxu2  ;;  %v2225_v25 = vadd.f32 %v2224_v44, %v2176_v46  ;;  %v3896_v44 = vld [vmem:[%s6388_s9 + $0x198] sm:$0xf] }
 0x2af   : > { %v2316_v63 = vadd.f32 %v2315_v36, %v2267_v35  ;;  %2443 = vmatpush.msra.mxu0 %v5517_v55  ;;  %v6494_v36 = vld [vmem:[#allocation4_spill] sm:$0xff]  ;;  %v3897_v46 = vor.u32 %v4016_v0, %v3896_v44 }
 0x2b0   : > { %v2174_v26 = vadd.f32 %v6494_v36, %v2125_v12  ;;  %v6501_v35 = vld [vmem:[#allocation28_spill] sm:$0xff] }
 0x2b1   : > { %v5529_v31 = vadd.f32 %v2364_v8, %v2316_v63  ;;  %2444 = vmatpush.msra.mxu0 %v5523_v50 }
 0x2b2   : > { %v2366_v56 = vpop.f32.mrf.mxu3  ;;  %v2223_v9 = vadd.f32 %v2222_v32, %v2174_v26 }
 0x2b3   : > { %2445 = vmatpush.msra.mxu0 %v5533_v42  ;;  %2869 = vmatmul.f32.vlgmr.msra.gmra.mxu3 %v5529_v31 }
 0x2b4   : > { %v2268_v29 = vpop.f32.mrf.mxu1 }
 0x2b5   : > { %v2269_v3 = vadd.f32 %v2268_v29, %v2220_v11  ;;  %2446 = vmatpush.msra.mxu0 %v5541_v62  ;;  %v5600_v11 = vld [vmem:[%s6492_s8 + $0x18] sm:$0xff]  ;;  %v5633_v29 = vld [vmem:[%s6492_s8 + $0x30] sm:$0xff] }
 0x2b6   : > { %v2320_v7 = vpop.f32.mrf.mxu2 }
 0x2b7   : > { %v2318_v51 = vadd.f32 %v2317_v54, %v2269_v3  ;;  %2447 = vmatpush.msra.mxu0 %v5546_v52 }
 0x2b9   : > { %v5559_v23 = vadd.f32 %v2366_v56, %v2318_v51  ;;  %2448 = vmatpush.msra.mxu0 %v5550_v5 }
 0x2ba   : > { %3914 = vmatmul.msk.f32.vlgmr.msra.gmra.mxu0 %vm2408_vm3, %v5555_v2  ;;  %v2369_v38 = vpop.f32.mrf.mxu3 }
 0x2bb   : > { %2872 = vmatmul.f32.gmra.mxu3 %v5559_v23  ;;  %2474 = vmatpush.msrb.mxu0 %v6495_v6 }
 0x2bc   : > { %v2271_v43 = vpop.f32.mrf.mxu1 }
 0x2bd   : > { %v2272_v37 = vadd.f32 %v2271_v43, %v2223_v9  ;;  %2475 = vmatpush.msrb.mxu0 %v6497_v58 }
 0x2be   : > { %v2322_v63 = vpop.f32.mrf.mxu2 }
 0x2bf   : > { %v2321_v8 = vadd.f32 %v2320_v7, %v2272_v37  ;;  %2476 = vmatpush.msrb.mxu0 %v6498_v10  ;;  %v4009_v37 = vld [vmem:[%s6388_s9 + $0x178] sm:$0xf0] }
 0x2c1   : > { %v5575_v20 = vadd.f32 %v2369_v38, %v2321_v8  ;;  %2477 = vmatpush.msrb.mxu0 %v6500_v21 }
 0x2c2   : > { %3915 = vmatmul.msk.f32.gmra.mxu0 %vm2408_vm3, %v5571_v17  ;;  %v2371_v27 = vpop.f32.mrf.mxu3 }
 0x2c3   : > { %2875 = vmatmul.f32.gmra.mxu3 %v5575_v20  ;;  %2478 = vmatpush.msrb.mxu0 %v6501_v35 }
 0x2c4   : > { %v2273_v48 = vpop.f32.mrf.mxu1 }
 0x2c5   : > { %v2274_v47 = vadd.f32 %v2273_v48, %v2225_v25  ;;  %2479 = vmatpush.msrb.mxu0 %v5373_v16 }
 0x2c7   : > { %v2323_v54 = vadd.f32 %v2322_v63, %v2274_v47  ;;  %2480 = vmatpush.msrb.mxu0 %v6502_v28 }
 0x2c9   : > { %v5589_v56 = vadd.f32 %v2371_v27, %v2323_v54  ;;  %2481 = vmatpush.msrb.mxu0 %v5401_v22 }
 0x2ca   : > { %3916 = vmatmul.msk.f32.gmra.mxu0 %vm2408_vm3, %v5586_v60  ;;  %v5662_v12 = vpop.f32.mrf.mxu3 }
 0x2cb   : > { %2878 = vmatmul.f32.gmra.mxu3 %v5589_v56  ;;  %2482 = vmatpush.msrb.mxu0 %v5411_v59  ;;  %6505 = vst [vmem:[#allocation22_spill] sm:$0xff] %v5662_v12 }
 0x2cd   : > { %2483 = vmatpush.msrb.mxu0 %v5420_v14 }
 0x2cf   : > { %2484 = vmatpush.msrb.mxu0 %v5427_v13 }
 0x2d1   : > { %2485 = vmatpush.msrb.mxu0 %v5433_v33 }
 0x2d2   : > { %3917 = vmatmul.msk.f32.gmra.mxu0 %vm2408_vm3, %v5600_v11 }
 0x2d3   : > { %2486 = vmatpush.msrb.mxu0 %v5443_v41 }
 0x2d5   : > { %2487 = vmatpush.msrb.mxu0 %v5450_v4 }
 0x2d7   : > { %2488 = vmatpush.msrb.mxu0 %v5457_v61 }
 0x2d9   : > { %2489 = vmatpush.msrb.mxu0 %v5463_v53 }
 0x2da   : > { %3918 = vmatmul.msk.f32.gmra.mxu0 %vm2408_vm3, %v5611_v24 }
 0x2db   : > { %2890 = vmatpush.msra.mxu0 %v6495_v6 }
 0x2dd   : > { %2891 = vmatpush.msra.mxu0 %v6497_v58  ;;  %v3869_v58 = vor.u32 %v4009_v37, %v3868_v45 }
 0x2df   : > { %2892 = vmatpush.msra.mxu0 %v6498_v10  ;;  %2275 = vmatmul.bf16.gmra.mxu1 %v3869_v58  ;;  %v5792_v58 = vpop.permute.xlu1 %2741 }
 0x2e1   : > { %2893 = vmatpush.msra.mxu0 %v6500_v21 }
 0x2e2   : > { %3919 = vmatmul.msk.f32.gmra.mxu0 %vm2408_vm3, %v5622_v15 }
 0x2e3   : > { %2894 = vmatpush.msra.mxu0 %v6501_v35 }
 0x2e5   : > { %2895 = vmatpush.msra.mxu0 %v5373_v16  ;;  %v5644_v16 = vld [vmem:[%s6492_s8 + $0x38] sm:$0xff] }
 0x2e7   : > { %2896 = vmatpush.msra.mxu0 %v6502_v28 }
 0x2e9   : > { %2897 = vmatpush.msra.mxu0 %v5401_v22 }
 0x2ea   : > { %3920 = vmatmul.msk.f32.gmra.mxu0 %vm2408_vm3, %v5633_v29 }
 0x2eb   : > { %2898 = vmatpush.msra.mxu0 %v5411_v59  ;;  %v5654_v59 = vpop.f32.mrf.mxu0 }
 0x2ed   : > { %2899 = vmatpush.msra.mxu0 %v5420_v14 }
 0x2ef   : > { %2900 = vmatpush.msra.mxu0 %v5427_v13  ;;  %2280 = vmatmul.bf16.gmra.mxu1 %v3897_v46 }
 0x2f1   : > { %2901 = vmatpush.msra.mxu0 %v5433_v33 }
 0x2f2   : > { %3921 = vmatmul.msk.f32.gmra.mxu0 %vm2408_vm3, %v5644_v16 }
 0x2f3   : > { %2902 = vmatpush.msra.mxu0 %v5443_v41  ;;  %v5656_v22 = vpop.f32.mrf.mxu0 }
 0x2f5   : > { %2903 = vmatpush.msra.mxu0 %v5450_v4  ;;  %v5664_v4 = vpop.f32.mrf.mxu3 }
 0x2f6   : > { %6506 = vst [vmem:[#allocation21_spill] sm:$0xff] %v5664_v4 }
 0x2f7   : > { %2904 = vmatpush.msra.mxu0 %v5457_v61 }
 0x2f9   : > { %2905 = vmatpush.msra.mxu0 %v5463_v53 }
 0x2fb   : > { %v5658_v14 = vpop.f32.mrf.mxu0 }
 0x2fc   : > { %6503 = vst [vmem:[#allocation26_spill] sm:$0xff] %v5658_v14 }
 0x2fd   : > { %v5666_v53 = vpop.f32.mrf.mxu3 }
 0x2fe   : > { %6507 = vst [vmem:[#allocation8_spill] sm:$0xff] %v5666_v53 }
 0x303   : > { %v5660_v13 = vpop.f32.mrf.mxu0 }
 0x304   : > { %6504 = vst [vmem:[#allocation5_spill] sm:$0xff] %v5660_v13 }
 0x305   : > { %v5668_v30 = vpop.f32.mrf.mxu3 }
 0x306   : > { %6508 = vst [vmem:[#allocation4_spill] sm:$0xff] %v5668_v30 }
 0x336   : > { %v2870_v57 = vpop.f32.mrf.mxu3 }
 0x337   : > { %v2450_v33 = vpop.f32.mrf.mxu0  ;;  %v5671_v39 = vsub.f32 %v5529_v31, %v2870_v57 }
 0x338   : > { %2490 = vmatmul.f32.vlgmr.msrb.gmra.mxu0 %v2450_v33 }
 0x339   : > { %v2886_v36 = vmul.f32 %v5671_v39, %v5671_v39 }
 0x33e   : > { %v2873_v19 = vpop.f32.mrf.mxu3 }
 0x33f   : > { %v2453_v49 = vpop.f32.mrf.mxu0  ;;  %v5676_v26 = vsub.f32 %v5559_v23, %v2873_v19 }
 0x340   : > { %2493 = vmatmul.f32.gmra.mxu0 %v2453_v49 }
 0x341   : > { %v2887_v9 = vmul.f32 %v5676_v26, %v5676_v26 }
 0x346   : > { %v2876_v7 = vpop.f32.mrf.mxu3 }
 0x347   : > { %v2456_v41 = vpop.f32.mrf.mxu0  ;;  %v5681_v6 = vsub.f32 %v5575_v20, %v2876_v7 }
 0x348   : > { %2496 = vmatmul.f32.gmra.mxu0 %v2456_v41 }
 0x349   : > { %v2888_v31 = vmul.f32 %v5681_v6, %v5681_v6 }
 0x34e   : > { %v2879_v43 = vpop.f32.mrf.mxu3 }
 0x34f   : > { %v2459_v61 = vpop.f32.mrf.mxu0  ;;  %v5686_v38 = vsub.f32 %v5589_v56, %v2879_v43 }
 0x350   : > { %2499 = vmatmul.f32.gmra.mxu0 %v2459_v61 }
 0x351   : > { %v2889_v23 = vmul.f32 %v5686_v38, %v5686_v38 }
 0x357   : > { %v2462_v3 = vpop.f32.mrf.mxu0 }
 0x358   : > { %2502 = vmatmul.f32.gmra.mxu0 %v2462_v3 }
 0x35f   : > { %v2465_v32 = vpop.f32.mrf.mxu0 }
 0x360   : > { %2505 = vmatmul.f32.gmra.mxu0 %v2465_v32 }
 0x367   : > { %v2468_v51 = vpop.f32.mrf.mxu0 }
 0x368   : > { %2508 = vmatmul.f32.gmra.mxu0 %v2468_v51 }
 0x36f   : > { %v2471_v40 = vpop.f32.mrf.mxu0 }
 0x370   : > { %2511 = vmatmul.f32.gmra.mxu0 %v2471_v40 }
 0x378   : > { %2906 = vmatmul.f32.vlgmr.msra.gmra.mxu0 %v2886_v36 }
 0x380   : > { %2909 = vmatmul.f32.gmra.mxu0 %v2887_v9 }
 0x388   : > { %2912 = vmatmul.f32.gmra.mxu0 %v2888_v31 }
 0x390   : > { %2915 = vmatmul.f32.gmra.mxu0 %v2889_v23  ;;  %v5784_v23 = vpop.permute.xlu2 %2721 }
 0x398   : > { %v5790_v37 = vpop.permute.xlu2 %2746 }
 0x3b5   : > { %v2491_v18 = vpop.f32.mrf.mxu0 }
 0x3bd   : > { %v2494_v8 = vpop.f32.mrf.mxu0 }
 0x3c5   : > { %v2497_v10 = vpop.f32.mrf.mxu0 }
 0x3cd   : > { %v2500_v20 = vpop.f32.mrf.mxu0 }
 0x3ce   : > { %v5719_v33 = vsub.f32 %v5533_v42, %v2500_v20  ;;  %v5734_v42 = vsub.f32 %v5550_v5, %v2491_v18  ;;  %v3870_v5 = vld [vmem:[%s6388_s9 + $0x17c] sm:$0xf0]  ;;  %v5786_v18 = vpop.permute.xlu0 %2726  ;;  %v5796_v20 = vpop.permute.xlu2 %2731 }
 0x3d0   : > { %v2526_v49 = vmul.f32 %v5719_v33, %v5719_v33  ;;  %v2523_v61 = vmul.f32 %v5734_v42, %v5734_v42 }
 0x3d5   : > { %v2503_v21 = vpop.f32.mrf.mxu0 }
 0x3d6   : > { %v5714_v28 = vsub.f32 %v5523_v50, %v2503_v21  ;;  %v5729_v50 = vsub.f32 %v5546_v52, %v2494_v8  ;;  %v4006_v52 = vld [vmem:[%s6388_s9 + $0x164] sm:$0xf]  ;;  %v5794_v8 = vpop.permute.xlu0 %2711 }
 0x3d7   : > { %v3873_v3 = vor.u32 %v4006_v52, %v3870_v5  ;;  %v5808_v5 = vpop.permute.xlu2 %2782 }
 0x3d9   : > { %2324 = vmatmul.bf16.gmra.mxu2 %v3873_v3 }
 0x3dd   : > { %v2506_v25 = vpop.f32.mrf.mxu0 }
 0x3de   : > { %v5709_v27 = vsub.f32 %v5517_v55, %v2506_v25  ;;  %v2527_v55 = vmul.f32 %v5714_v28, %v5714_v28  ;;  %v5798_v25 = vpop.permute.xlu1 %2716 }
 0x3e5   : > { %v2509_v35 = vpop.f32.mrf.mxu0 }
 0x3e6   : > { %v5703_v63 = vsub.f32 %v5509_v1, %v2509_v35  ;;  %v5724_v1 = vsub.f32 %v5541_v62, %v2497_v10  ;;  %v2524_v62 = vmul.f32 %v5729_v50, %v5729_v50  ;;  %v5810_v3 = vpop.permute.xlu1 %2777 }
 0x3e8   : > { %v2529_v56 = vmul.f32 %v5703_v63, %v5703_v63  ;;  %v2525_v41 = vmul.f32 %v5724_v1, %v5724_v1 }
 0x3ed   : > { %v2512_v48 = vpop.f32.mrf.mxu0 }
 0x3ee   : > { %v5706_v47 = vsub.f32 %v5501_v34, %v2512_v48  ;;  %v2528_v34 = vmul.f32 %v5709_v27, %v5709_v27 }
 0x3f0   : > { %v2530_v54 = vmul.f32 %v5706_v47, %v5706_v47 }
 0x3f2   : > { %2539 = vmatpush.msra.mxu1 %v2530_v54  ;;  %v5800_v54 = vpop.permute.xlu0 %2736 }
 0x3f4   : > { %2540 = vmatpush.msra.mxu1 %v2529_v56 }
 0x3f5   : > { %v2907_v0 = vpop.f32.mrf.mxu0 }
 0x3f6   : > { %2541 = vmatpush.msra.mxu1 %v2528_v34  ;;  %v2919_v35 = vmax.f32 %v2907_v0, 0.0 }
 0x3f8   : > { %2542 = vmatpush.msra.mxu1 %v2527_v55  ;;  %v5804_v55 = vadd.f32 1e-05, %v2919_v35 }
 0x3fa   : > { %2543 = vmatpush.msra.mxu1 %v2526_v49  ;;  %vm2933_vm10 = vweird.f32 %v5804_v55 }
 0x3fc   : > { %2544 = vmatpush.msra.mxu1 %v2525_v41 }
 0x3fd   : > { %v2910_v49 = vpop.f32.mrf.mxu0 }
 0x3fe   : > { %2545 = vmatpush.msra.mxu1 %v2524_v62  ;;  %v2920_v41 = vmax.f32 %v2910_v49, 0.0 }
 0x400   : > { %2546 = vmatpush.msra.mxu1 %v2523_v61 }
 0x401   : > { %3922 = vmatmul.msk.f32.vlgmr.msra.gmra.mxu1 %vm2408_vm3, %v5555_v2  ;;  %v4013_v2 = vld [vmem:[%s6388_s9 + $0x19c] sm:$0xf] }
 0x409   : > { %3923 = vmatmul.msk.f32.gmra.mxu1 %vm2408_vm3, %v5571_v17  ;;  %v3898_v17 = vld [vmem:[%s6388_s9 + $0x1b4] sm:$0xf0] }
 0x411   : > { %3924 = vmatmul.msk.f32.gmra.mxu1 %vm2408_vm3, %v5586_v60  ;;  %v3901_v60 = vor.u32 %v4013_v2, %v3898_v17  ;;  %v5812_v2 = vpop.permute.xlu0 %2797  ;;  %v5814_v17 = vadd.f32 1e-05, %v2920_v41 }
 0x413   : > { %2329 = vmatmul.bf16.gmra.mxu2 %v3901_v60 }
 0x419   : > { %3925 = vmatmul.msk.f32.gmra.mxu1 %vm2408_vm3, %v5600_v11  ;;  %v5770_v11 = vpop.f32.mrf.mxu1  ;;  %v5837_v41 = vpop.permute.xlu0 %2984 }
 0x421   : > { %3926 = vmatmul.msk.f32.gmra.mxu1 %vm2408_vm3, %v5611_v24  ;;  %v5772_v24 = vpop.f32.mrf.mxu1 }
 0x429   : > { %3927 = vmatmul.msk.f32.gmra.mxu1 %vm2408_vm3, %v5622_v15  ;;  %v5774_v32 = vpop.f32.mrf.mxu1 }
 0x42a   : > { %6509 = vst [vmem:[#allocation23_spill] sm:$0xff] %v5774_v32  ;;  %v5860_v32 = vpop.permute.xlu0 %2787 }
 0x431   : > { %3928 = vmatmul.msk.f32.gmra.mxu1 %vm2408_vm3, %v5633_v29  ;;  %v5776_v51 = vpop.f32.mrf.mxu1 }
 0x432   : > { %6510 = vst [vmem:[#allocation7_spill] sm:$0xff] %v5776_v51 }
 0x439   : > { %3929 = vmatmul.msk.f32.gmra.mxu1 %vm2408_vm3, %v5644_v16  ;;  %vm2943_vm3 = vweird.f32 %v5814_v17 }
 0x45c   : > { %v5778_v9 = vpop.f32.mrf.mxu2 }
 0x464   : > { %v5780_v31 = vpop.f32.mrf.mxu2 }
 0x465   : > { %6511 = vst [vmem:[#allocation24_spill] sm:$0xff] %v5780_v31 }
 0x47e   : > { %v2548_v57 = vpop.f32.mrf.mxu1 }
 0x47f   : > { %2588 = vmatmul.f32.vlgmr.msra.gmra.mxu2 %v2548_v57 }
 0x486   : > { %v2551_v40 = vpop.f32.mrf.mxu1 }
 0x487   : > { %2591 = vmatmul.f32.gmra.mxu2 %v2551_v40 }
 0x48e   : > { %v2554_v15 = vpop.f32.mrf.mxu1 }
 0x48f   : > { %2594 = vmatmul.f32.gmra.mxu2 %v2554_v15 }
 0x496   : > { %v2557_v19 = vpop.f32.mrf.mxu1  ;;  %v5782_v43 = vpop.f32.mrf.mxu2 }
 0x497   : > { %2597 = vmatmul.f32.gmra.mxu2 %v2557_v19  ;;  %6512 = vst [vmem:[#allocation25_spill] sm:$0xff] %v5782_v43 }
 0x49e   : > { %v2560_v29 = vpop.f32.mrf.mxu1  ;;  %v5788_v45 = vpop.f32.mrf.mxu2 }
 0x49f   : > { %2600 = vmatmul.f32.gmra.mxu2 %v2560_v29  ;;  %6513 = vst [vmem:[#allocation6_spill] sm:$0xff] %v5788_v45 }
 0x4a6   : > { %v2563_v36 = vpop.f32.mrf.mxu1 }
 0x4a7   : > { %2603 = vmatmul.f32.gmra.mxu2 %v2563_v36 }
 0x4ae   : > { %v2566_v16 = vpop.f32.mrf.mxu1 }
 0x4af   : > { %2606 = vmatmul.f32.gmra.mxu2 %v2566_v16 }
 0x4b6   : > { %v2569_v7 = vpop.f32.mrf.mxu1 }
 0x4b7   : > { %2609 = vmatmul.f32.gmra.mxu2 %v2569_v7 }
 0x502   : > { %v2589_v10 = vpop.f32.mrf.mxu2 }
 0x503   : > { %v2613_v44 = vmax.f32 %v2589_v10, 0.0  ;;  %v2913_v10 = vpop.f32.mrf.mxu0 }
 0x505   : > { %v2621_v46 = vadd.f32 1e-05, %v2613_v44  ;;  %v5828_v44 = vpop.permute.xlu2 %2979 }
 0x507   : > { %4052 = vrsqrt.f32 %v2621_v46  ;;  %vm2635_vm5 = vweird.f32 %v2621_v46 }
 0x50a   : > { %v2592_v21 = vpop.f32.mrf.mxu2 }
 0x50b   : > { %v2614_v48 = vmax.f32 %v2592_v21, 0.0  ;;  %v5830_v21 = vpop.permute.xlu1 %2802 }
 0x50d   : > { %v5802_v56 = vadd.f32 1e-05, %v2614_v48  ;;  %v4053_v34 = vpop.eup %4052 }
 0x50e   : > { %v2630_v62 = vmul.f32 %v4053_v34, %v2621_v46  ;;  %vm2636_vm4 = vweird.f32 %v4053_v34 }
 0x50f   : > { %4054 = vrsqrt.f32 %v5802_v56  ;;  %vm2637_vm6 = vmor %vm2635_vm5, %vm2636_vm4  ;;  %vm2645_vm9 = vweird.f32 %v5802_v56 }
 0x510   : > { %4056 = vrsqrt.f32 %v5804_v55  ;;  %v2631_v60 = vmul.f32 %v4053_v34, %v2630_v62 }
 0x511   : > { %4058 = vrsqrt.f32 %v5814_v17 }
 0x512   : > { %v2595_v61 = vpop.f32.mrf.mxu2  ;;  %v2632_v19 = vmul.f32 0.5, %v2631_v60 }
 0x513   : > { %v2615_v52 = vmax.f32 %v2595_v61, 0.0  ;;  %v2921_v61 = vmax.f32 %v2913_v10, 0.0 }
 0x514   : > { %v2633_v0 = vsub.f32 1.5, %v2632_v19 }
 0x515   : > { %v5816_v57 = vadd.f32 1e-05, %v2615_v52  ;;  %v5818_v40 = vpop.eup %4054  ;;  %v5845_v45 = vadd.f32 1e-05, %v2921_v61  ;;  %v2768_v61 = vpop.permute.xlu1 %2767 }
 0x516   : > { %v5820_v15 = vpop.eup %4056  ;;  %v2640_v36 = vmul.f32 %v5818_v40, %v5802_v56  ;;  %v2634_v60 = vmul.f32 %v4053_v34, %v2633_v0  ;;  %v2916_v0 = vpop.f32.mrf.mxu0  ;;  %vm2646_vm7 = vweird.f32 %v5818_v40 }
 0x517   : > { %4060 = vrsqrt.f32 %v5816_v57  ;;  %v2928_v7 = vmul.f32 %v5820_v15, %v5804_v55  ;;  %v5835_v49 = vpop.eup %4058  ;;  %v2922_v13 = vmax.f32 %v2916_v0, 0.0  ;;  %vm2934_vm8 = vweird.f32 %v5820_v15  ;;  %vm2647_vm11 = vmor %vm2645_vm9, %vm2646_vm7 }
 0x518   : > { %v2641_v35 = vmul.f32 %v5818_v40, %v2640_v36  ;;  %v2938_v19 = vmul.f32 %v5835_v49, %v5814_v17  ;;  %v2638_v51 = vsel %vm2637_vm6, %v4053_v34, %v2634_v60  ;;  %vm5878_vm12 = vmor %vm2933_vm10, %vm2934_vm8  ;;  %vm2944_vm13 = vweird.f32 %v5835_v49 }
 0x519   : > { %v2929_v62 = vmul.f32 %v5820_v15, %v2928_v7  ;;  %v5868_v31 = vadd.f32 1e-05, %v2922_v13  ;;  %vm2655_vm0 = vweird.f32 %v5816_v57  ;;  %vm5925_vm5 = vmor %vm2943_vm3, %vm2944_vm13  ;;  %vm2953_vm6 = vweird.f32 %v5845_v45 }
 0x51a   : > { %v2598_v29 = vpop.f32.mrf.mxu2  ;;  %v2642_v30 = vmul.f32 0.5, %v2641_v35  ;;  %v2939_v53 = vmul.f32 %v5835_v49, %v2938_v19  ;;  %v5853_v35 = vpop.permute.xlu2 %2772 }
 0x51b   : > { %v2616_v16 = vmax.f32 %v2598_v29, 0.0 }
 0x51c   : > { %v2643_v43 = vsub.f32 1.5, %v2642_v30  ;;  %v2940_v60 = vmul.f32 0.5, %v2939_v53 }
 0x51d   : > { %v5833_v48 = vadd.f32 1e-05, %v2616_v16  ;;  %v5840_v52 = vpop.eup %4060  ;;  %v2930_v16 = vmul.f32 0.5, %v2929_v62  ;;  %v5893_v12 = vpop.permute.xlu1 %2792 }
 0x51e   : > { %v2650_v7 = vmul.f32 %v5840_v52, %v5816_v57  ;;  %v2644_v30 = vmul.f32 %v5818_v40, %v2643_v43  ;;  %vm2656_vm14 = vweird.f32 %v5840_v52 }
 0x51f   : > { %4062 = vrsqrt.f32 %v5833_v48  ;;  %vm5907_vm1 = vmor %vm2655_vm0, %vm2656_vm14  ;;  %vm2665_vm10 = vweird.f32 %v5833_v48 }
 0x520   : > { %v2651_v46 = vmul.f32 %v5840_v52, %v2650_v7  ;;  %v2648_v13 = vsel %vm2647_vm11, %v5818_v40, %v2644_v30 }
 0x521   : > { %v2750_v40 = vmul.f32 %v5798_v25, %v2648_v13 }
 0x522   : > { %v2601_v29 = vpop.f32.mrf.mxu2  ;;  %v2652_v7 = vmul.f32 0.5, %v2651_v46  ;;  %v2941_v46 = vsub.f32 1.5, %v2940_v60  ;;  %v2970_v14 = vpop.permute.xlu2 %2969 }
 0x523   : > { %v2617_v36 = vmax.f32 %v2601_v29, 0.0  ;;  %v2931_v29 = vsub.f32 1.5, %v2930_v16 }
 0x524   : > { %v2653_v56 = vsub.f32 1.5, %v2652_v7  ;;  %v2975_v7 = vpop.permute.xlu0 %2974 }
 0x525   : > { %v5849_v10 = vadd.f32 1e-05, %v2617_v36  ;;  %v5857_v62 = vpop.eup %4062  ;;  %v2749_v36 = vmul.f32 %v5794_v8, %v2638_v51  ;;  %v2932_v16 = vmul.f32 %v5820_v15, %v2931_v29 }
 0x526   : > { %v2660_v4 = vmul.f32 %v5857_v62, %v5833_v48  ;;  %vm2666_vm7 = vweird.f32 %v5857_v62 }
 0x527   : > { %4064 = vrsqrt.f32 %v5849_v10  ;;  %v2757_v51 = vmul.f32 %v2749_v36, %v5734_v42  ;;  %v2936_v42 = vsel %vm5878_vm12, %v5820_v15, %v2932_v16  ;;  %v5896_v16 = vmul.f32 %v5835_v49, %v2941_v46  ;;  %vm5955_vm11 = vmor %vm2665_vm10, %vm2666_vm7 }
 0x528   : > { %4066 = vrsqrt.f32 %v5845_v45  ;;  %v2661_v36 = vmul.f32 %v5857_v62, %v2660_v4  ;;  %v2987_v15 = vmul.f32 %v2970_v14, %v2936_v42  ;;  %v2758_v46 = vmul.f32 %v2750_v40, %v5729_v50 }
 0x529   : > { %vm2675_vm2 = vweird.f32 %v5849_v10 }
 0x52a   : > { %v2604_v34 = vpop.f32.mrf.mxu2 }
 0x52b   : > { %v2618_v19 = vmax.f32 %v2604_v34, 0.0 }
 0x52d   : > { %v4065_v0 = vpop.eup %4064  ;;  %v5872_v53 = vadd.f32 1e-05, %v2618_v19  ;;  %v2805_v19 = vadd.f32 %v2768_v61, %v2757_v51  ;;  %v2662_v61 = vmul.f32 0.5, %v2661_v36 }
 0x52e   : > { %v5874_v43 = vpop.eup %4066  ;;  %v2670_v8 = vmul.f32 %v4065_v0, %v5849_v10  ;;  %vm2676_vm15 = vweird.f32 %v4065_v0  ;;  %v2991_v10 = vmul.f32 %v2987_v15, %v5671_v39  ;;  %v2806_v39 = vadd.f32 %v5853_v35, %v2758_v46  ;;  %v5946_v35 = vpop.permute.xlu1 %3007 }
 0x52f   : > { %4068 = vrsqrt.f32 %v5872_v53  ;;  %v2948_v34 = vmul.f32 %v5874_v43, %v5845_v45  ;;  %v2813_v13 = vmul.f32 0.5, %v2805_v19  ;;  %vm2677_vm4 = vmor %vm2675_vm2, %vm2676_vm15  ;;  %v2663_v57 = vsub.f32 1.5, %v2662_v61 }
 0x530   : > { %v2671_v55 = vmul.f32 %v4065_v0, %v2670_v8  ;;  %4070 = vrsqrt.f32 %v5868_v31  ;;  %v2654_v8 = vmul.f32 %v5840_v52, %v2653_v56  ;;  %vm2685_vm8 = vweird.f32 %v5872_v53 }
 0x531   : > { %v2949_v25 = vmul.f32 %v5874_v43, %v2948_v34  ;;  %v2664_v61 = vmul.f32 %v5857_v62, %v2663_v57  ;;  %v2814_v46 = vmul.f32 0.5, %v2806_v39  ;;  %vm2954_vm13 = vweird.f32 %v5874_v43  ;;  %v4126_v39 = vld [vmem:[#allocation3 + $0x18] sm:$0xff] }
 0x532   : > { %v2672_v60 = vmul.f32 0.5, %v2671_v55  ;;  %v2607_v30 = vpop.f32.mrf.mxu2  ;;  %v2658_v50 = vsel %vm5907_vm1, %v5840_v52, %v2654_v8  ;;  %v2946_v52 = vsel %vm5925_vm5, %v5835_v49, %v5896_v16  ;;  %vm5982_vm14 = vmor %vm2953_vm6, %vm2954_vm13  ;;  %vm2963_vm1 = vweird.f32 %v5868_v31 }
 0x533   : > { %v2619_v4 = vmax.f32 %v2607_v30, 0.0  ;;  %v2950_v17 = vmul.f32 0.5, %v2949_v25 }
 0x534   : > { %v2673_v51 = vsub.f32 1.5, %v2672_v60 }
 0x535   : > { %v5900_v29 = vpop.eup %4068  ;;  %v5904_v14 = vadd.f32 1e-05, %v2619_v4  ;;  %v2751_v4 = vmul.f32 %v5784_v23, %v2658_v50  ;;  %v2951_v16 = vsub.f32 1.5, %v2950_v17 }
 0x536   : > { %v2674_v55 = vmul.f32 %v4065_v0, %v2673_v51  ;;  %v2680_v56 = vmul.f32 %v5900_v29, %v5872_v53  ;;  %v5914_v36 = vpop.eup %4070  ;;  %vm2686_vm9 = vweird.f32 %v5900_v29 }
 0x537   : > { %4072 = vrsqrt.f32 %v5904_v14  ;;  %vm2687_vm12 = vmor %vm2685_vm8, %vm2686_vm9  ;;  %vm2695_vm15 = vweird.f32 %v5904_v14  ;;  %vm2964_vm3 = vweird.f32 %v5914_v36  ;;  %vm3313_vm8 = vcmask 261120  }
 0x538   : > { %v2678_v34 = vsel %vm2677_vm4, %v4065_v0, %v2674_v55  ;;  %v2681_v19 = vmul.f32 %v5900_v29, %v2680_v56  ;;  %4074 = vtanh.f32 %v2813_v13  ;;  %v2958_v0 = vmul.f32 %v5914_v36, %v5868_v31  ;;  %vm6011_vm6 = vmor %vm2963_vm1, %vm2964_vm3 }
 0x539   : > { %v2753_v60 = vmul.f32 %v5796_v20, %v2678_v34  ;;  %v2988_v34 = vmul.f32 %v2975_v7, %v2946_v52 }
 0x53a   : > { %v2682_v30 = vmul.f32 0.5, %v2681_v19  ;;  %v2610_v15 = vpop.f32.mrf.mxu2  ;;  %v2959_v13 = vmul.f32 %v5914_v36, %v2958_v0  ;;  %v2668_v19 = vsel %vm5955_vm11, %v5857_v62, %v2664_v61 }
 0x53b   : > { %v2761_v20 = vmul.f32 %v2753_v60, %v5714_v28  ;;  %v2620_v8 = vmax.f32 %v2610_v15, 0.0  ;;  %v2998_v28 = vpop.permute.xlu0 %2997  ;;  %v2752_v62 = vmul.f32 %v5786_v18, %v2668_v19  ;;  %v2992_v52 = vmul.f32 %v2988_v34, %v5676_v26 }
 0x53c   : > { %v2683_v51 = vsub.f32 1.5, %v2682_v30  ;;  %v3015_v50 = vadd.f32 %v2998_v28, %v2991_v10  ;;  %v2952_v10 = vmul.f32 %v5874_v43, %v2951_v16  ;;  %v2960_v53 = vmul.f32 0.5, %v2959_v13 }
 0x53d   : > { %v5944_v49 = vpop.eup %4072  ;;  %v2809_v23 = vadd.f32 %v5860_v32, %v2761_v20  ;;  %v5950_v25 = vadd.f32 1e-05, %v2620_v8  ;;  %v2759_v32 = vmul.f32 %v2751_v4, %v5724_v1  ;;  %v3003_v20 = vpop.permute.xlu1 %3002  ;;  %v2760_v61 = vmul.f32 %v2752_v62, %v5719_v33 }
 0x53e   : > { %v2684_v55 = vmul.f32 %v5900_v29, %v2683_v51  ;;  %v2690_v56 = vmul.f32 %v5944_v49, %v5904_v14  ;;  %v4075_v48 = vpop.eup %4074  ;;  %vm2696_vm0 = vweird.f32 %v5944_v49  ;;  %v2956_v18 = vsel %vm5982_vm14, %v5874_v43, %v2952_v10 }
 0x53f   : > { %v2829_v57 = vmul.f32 0.5, %v2809_v23  ;;  %4076 = vrsqrt.f32 %v5950_v25  ;;  %v2821_v60 = vadd.f32 1.0, %v4075_v48  ;;  %v2807_v7 = vadd.f32 %v5810_v3, %v2759_v32  ;;  %vm2697_vm2 = vmor %vm2695_vm15, %vm2696_vm0  ;;  %v4125_v32 = vld [vmem:[#allocation3] sm:$0xff] }
 0x540   : > { %v2688_v40 = vsel %vm2687_vm12, %v5900_v29, %v2684_v55  ;;  %v2691_v17 = vmul.f32 %v5944_v49, %v2690_v56  ;;  %v2961_v3 = vsub.f32 1.5, %v2960_v53  ;;  %v3016_v16 = vadd.f32 %v3003_v20, %v2992_v52  ;;  %v4127_v20 = vld [vmem:[#allocation3 + $0x8] sm:$0xff] }
 0x541   : > { %4078 = vtanh.f32 %v2829_v57  ;;  %v2754_v1 = vmul.f32 %v5800_v54, %v2688_v40  ;;  %v2825_v26 = vmul.f32 0.5, %v2821_v60  ;;  %v2815_v8 = vmul.f32 0.5, %v2807_v7 }
 0x542   : > { %4080 = vtanh.f32 %v2814_v46  ;;  %v2692_v0 = vmul.f32 0.5, %v2691_v17  ;;  %v2989_v46 = vmul.f32 %v5828_v44, %v2956_v18  ;;  %v2962_v33 = vmul.f32 %v5914_v36, %v2961_v3  ;;  %v3384_v44 = vld [vmem:[%s6393_s14 + $0x18] sm:$0xff] }
 0x543   : > { %4082 = vtanh.f32 %v3015_v50  ;;  %v2762_v29 = vmul.f32 %v2754_v1, %v5709_v27  ;;  %v2808_v50 = vadd.f32 %v5808_v5, %v2760_v61  ;;  %vm2705_vm4 = vweird.f32 %v5950_v25 }
 0x544   : > { %v2693_v54 = vsub.f32 1.5, %v2692_v0 }
 0x545   : > { %v4077_v30 = vpop.eup %4076  ;;  %v2810_v27 = vadd.f32 %v5893_v12, %v2762_v29  ;;  %v2816_v17 = vmul.f32 0.5, %v2808_v50  ;;  %v1652_v50 = vld [vmem:[%s6389_s10 + $0x60] sm:$0xff] }
 0x546   : > { %v2694_v45 = vmul.f32 %v5944_v49, %v2693_v54  ;;  %v2700_v15 = vmul.f32 %v4077_v30, %v5950_v25  ;;  %vm2706_vm5 = vweird.f32 %v4077_v30 }
 0x547   : > { %v4079_v4 = vpop.eup %4078  ;;  %v2830_v51 = vmul.f32 0.5, %v2810_v27  ;;  %vm2707_vm7 = vmor %vm2705_vm4, %vm2706_vm5  ;;  %v3013_v27 = vpop.permute.xlu2 %3012 }
 0x548   : > { %v4081_v43 = vpop.eup %4080  ;;  %v2837_v12 = vadd.f32 1.0, %v4079_v4  ;;  %v2698_v23 = vsel %vm2697_vm2, %v5944_v49, %v2694_v45  ;;  %v2701_v28 = vmul.f32 %v4077_v30, %v2700_v15 }
 0x549   : > { %v4083_v13 = vpop.eup %4082  ;;  %4084 = vtanh.f32 %v2830_v51  ;;  %v2755_v42 = vmul.f32 %v5792_v58, %v2698_v23  ;;  %v2822_v48 = vadd.f32 1.0, %v4081_v43  ;;  %v2993_v58 = vmul.f32 %v2989_v46, %v5681_v6 }
 0x54a   : > { %v3027_v55 = vmul.f32 %v4083_v13, %v2825_v26  ;;  %v2841_v56 = vmul.f32 0.5, %v2837_v12  ;;  %v2702_v14 = vmul.f32 0.5, %v2701_v28  ;;  %4086 = vtanh.f32 %v2815_v8  ;;  %v4128_v13 = vld [vmem:[#allocation3 + $0x10] sm:$0xff] }
 0x54b   : > { %v2763_v49 = vmul.f32 %v2755_v42, %v5703_v63  ;;  %4088 = vtanh.f32 %v3016_v16  ;;  %v2966_v63 = vsel %vm6011_vm6, %v5914_v36, %v2962_v33  ;;  %v2826_v10 = vmul.f32 0.5, %v2822_v48 }
 0x54c   : > { %v3023_v57 = vmul.f32 %v4125_v32, %v2841_v56  ;;  %v2703_v34 = vsub.f32 1.5, %v2702_v14  ;;  %v3017_v36 = vadd.f32 %v5946_v35, %v2993_v58  ;;  %v2990_v53 = vmul.f32 %v5837_v41, %v2966_v63  ;;  %v1654_v32 = vld [vmem:[%s6389_s10 + $0x70] sm:$0xff] }
 0x54d   : > { %v2811_v5 = vadd.f32 %v5812_v2, %v2763_v49  ;;  %v1653_v49 = vld [vmem:[%s6389_s10 + $0x68] sm:$0xff]  ;;  %v3383_v58 = vld [vmem:[%s6393_s14 + $0x10] sm:$0xff] }
 0x54e   : > { %v6019_v19 = vadd.f32 %v3027_v55, %v3023_v57  ;;  %v2704_v25 = vmul.f32 %v4077_v30, %v2703_v34  ;;  %v2994_v35 = vmul.f32 %v2990_v53, %v5686_v38  ;;  %v1655_v57 = vld [vmem:[%s6389_s10 + $0x78] sm:$0xff] }
 0x54f   : > { %v4085_v40 = vpop.eup %4084  ;;  %v2831_v6 = vmul.f32 0.5, %v2811_v5  ;;  %v3381_v5 = vld [vmem:[%s6393_s14] sm:$0xff] }
 0x550   : > { %3619 = vst [vmem:[#allocation3] sm:$0xff] %v6019_v19  ;;  %v2838_v31 = vadd.f32 1.0, %v4085_v40  ;;  %v2708_v1 = vsel %vm2707_vm7, %v4077_v30, %v2704_v25  ;;  %3059 = vrot.lane.b32.xlu2 %v6019_v19, %s6526_s6  ;;  %3075 = vrot.lane.b32.xlu0 %v6019_v19, %s6527_s27  ;;  %v4087_v2 = vpop.eup %4086  ;;  %v3018_v45 = vadd.f32 %v3013_v27, %v2994_v35  ;;  %v3382_v25 = vld [vmem:[%s6393_s14 + $0x8] sm:$0xff]  ;;  %v3387_v40 = vld [vmem:[%s6394_s15 + $0x10] sm:$0xff] }
 0x551   : > { %4090 = vtanh.f32 %v2831_v6  ;;  %v2756_v60 = vmul.f32 %v5790_v37, %v2708_v1  ;;  %3091 = vrot.lane.b32.xlu1 %v6019_v19, %s6528_s25  ;;  %v4089_v7 = vpop.eup %4088  ;;  %v2823_v52 = vadd.f32 1.0, %v4087_v2  ;;  %v3598_v1 = vld [vmem:[%s6398_s19] sm:$0xff] }
 0x552   : > { %v2842_v0 = vmul.f32 0.5, %v2838_v31  ;;  %4092 = vtanh.f32 %v2816_v17  ;;  %v3028_v29 = vmul.f32 %v4089_v7, %v2826_v10  ;;  %v3388_v17 = vld [vmem:[%s6394_s15 + $0x18] sm:$0xff]  ;;  %v3385_v10 = vld [vmem:[%s6394_s15] sm:$0xff]  ;;  %v3386_v31 = vld [vmem:[%s6394_s15 + $0x8] sm:$0xff] }
 0x553   : > { %v2764_v62 = vmul.f32 %v2756_v60, %v5706_v47  ;;  %4094 = vtanh.f32 %v3017_v36  ;;  %v2827_v3 = vmul.f32 0.5, %v2823_v52  ;;  %v3605_v60 = vld [vmem:[%s6399_s20] sm:$0xff] }
 0x554   : > { %v3024_v54 = vmul.f32 %v4126_v39, %v2842_v0 }
 0x555   : > { %v2812_v41 = vadd.f32 %v5830_v21, %v2764_v62 }
 0x556   : > { %v6034_v30 = vadd.f32 %v3028_v29, %v3024_v54 }
 0x557   : > { %v4091_v37 = vpop.eup %4090  ;;  %v2832_v18 = vmul.f32 0.5, %v2812_v41  ;;  %v4129_v41 = vld [vmem:[%s6457_s7 + $0x3] ss:$0 sm:$0xff] }
 0x558   : > { %3620 = vst [vmem:[#allocation3 + $0x18] sm:$0xff] %v6034_v30  ;;  %v2839_v26 = vadd.f32 1.0, %v4091_v37  ;;  %3127 = vrot.lane.b32.xlu0 %v6019_v19, %s6529_s1  ;;  %3093 = vrot.lane.b32.xlu2 %v6034_v30, %s6528_s25  ;;  %v4093_v47 = vpop.eup %4092 }
 0x559   : > { %4096 = vtanh.f32 %v2832_v18  ;;  %3143 = vrot.lane.b32.xlu1 %v6019_v19, %s6530_s0  ;;  %v4095_v21 = vpop.eup %4094  ;;  %v2824_v4 = vadd.f32 1.0, %v4093_v47 }
 0x55a   : > { %v2843_v38 = vmul.f32 0.5, %v2839_v26  ;;  %v3029_v15 = vmul.f32 %v4095_v21, %v2827_v3  ;;  %4098 = vtanh.f32 %v3018_v45 }
 0x55b   : > { %v2828_v43 = vmul.f32 0.5, %v2824_v4 }
 0x55c   : > { %v3025_v8 = vmul.f32 %v4127_v20, %v2843_v38 }
 0x55e   : > { %v6043_v61 = vadd.f32 %v3029_v15, %v3025_v8 }
 0x55f   : > { %v4097_v51 = vpop.eup %4096 }
 0x560   : > { %3621 = vst [vmem:[#allocation3 + $0x8] sm:$0xff] %v6043_v61  ;;  %v2840_v16 = vadd.f32 1.0, %v4097_v51  ;;  %3061 = vrot.lane.b32.xlu0 %v6034_v30, %s6526_s6  ;;  %3145 = vrot.lane.b32.xlu2 %v6034_v30, %s6530_s0  ;;  %v4099_v23 = vpop.eup %4098  ;;  %v3109_v33 = vpack.c.bf16 %v6043_v61, %v6043_v61  ;;  %v4130_v51 = vld [vmem:[%s6457_s7 + $0x7] ss:$0 sm:$0xff] }
 0x561   : > { %3077 = vrot.lane.b32.xlu1 %v6034_v30, %s6527_s27  ;;  %v3030_v28 = vmul.f32 %v4099_v23, %v2828_v43 }
 0x562   : > { %v2844_v12 = vmul.f32 0.5, %v2840_v16  ;;  %v6065_v56 = vunpack.c.l.b16 %v3109_v33 }
 0x564   : > { %v3026_v46 = vmul.f32 %v4128_v13, %v2844_v12 }
 0x566   : > { %v6052_v42 = vadd.f32 %v3030_v28, %v3026_v46 }
 0x568   : > { %3622 = vst [vmem:[#allocation3 + $0x10] sm:$0xff] %v6052_v42  ;;  %3147 = vrot.lane.b32.xlu0 %v6043_v61, %s6530_s0  ;;  %3095 = vrot.lane.b32.xlu2 %v6043_v61, %s6528_s25  ;;  %v3110_v55 = vpack.c.bf16 %v6052_v42, %v6052_v42 }
 0x569   : > { %3129 = vrot.lane.b32.xlu1 %v6034_v30, %s6529_s1 }
 0x56a   : > { %v6067_v14 = vunpack.c.l.b16 %v3110_v55 }
 0x56c   : > { %v3232_v48 = vpack.c.b16 %v6067_v14, %v6065_v56  ;;  %v4139_v14 = vld [vmem:[%s6480_s12 + $0x68] sm:$0xff] }
 0x570   : > { %3079 = vrot.lane.b32.xlu2 %v6043_v61, %s6527_s27  ;;  %3097 = vrot.lane.b32.xlu0 %v6052_v42, %s6528_s25 }
 0x571   : > { %3063 = vrot.lane.b32.xlu1 %v6043_v61, %s6526_s6 }
 0x578   : > { %3131 = vrot.lane.b32.xlu2 %v6043_v61, %s6529_s1  ;;  %3047 = vrot.lane.b32.xlu0 %v6043_v61, %s6531_s5 }
 0x579   : > { %3149 = vrot.lane.b32.xlu1 %v6052_v42, %s6530_s0 }
 0x580   : > { %3111 = vrot.lane.b32.xlu2 %v6019_v19, %s6458_s24  ;;  %3081 = vrot.lane.b32.xlu0 %v6052_v42, %s6527_s27 }
 0x581   : > { %3115 = vrot.lane.b32.xlu1 %v6043_v61, %s6458_s24 }
 0x588   : > { %3065 = vrot.lane.b32.xlu2 %v6052_v42, %s6526_s6  ;;  %3133 = vrot.lane.b32.xlu0 %v6052_v42, %s6529_s1 }
 0x589   : > { %3043 = vrot.lane.b32.xlu1 %v6019_v19, %s6531_s5 }
 0x590   : > { %3117 = vrot.lane.b32.xlu2 %v6052_v42, %s6458_s24  ;;  %3113 = vrot.lane.b32.xlu0 %v6034_v30, %s6458_s24  ;;  %s6555_s24 = sshll.u32 %s4296_s30, 3 }
 0x591   : > { %3049 = vrot.lane.b32.xlu1 %v6052_v42, %s6531_s5  ;;  %s3613_s25 = scalar_lea.vmem %s6400_s21, %s6555_s24 }
 0x598   : > { %3045 = vrot.lane.b32.xlu2 %v6034_v30, %s6531_s5  ;;  %3163 = vrot.lane.b32.xlu0 %v6043_v61, %s6459_s2 }
 0x599   : > { %3165 = vrot.lane.b32.xlu1 %v6052_v42, %s6459_s2 }
 0x5a0   : > { %3159 = vrot.lane.b32.xlu2 %v6019_v19, %s6459_s2  ;;  %3161 = vrot.lane.b32.xlu0 %v6034_v30, %s6459_s2 }
 0x5a1   : > { %1718 = vperm.xlu1 %4042, %v1652_v50  }
 0x5a8   : > { %1723 = vperm.xlu2 %4043, %v1653_v49   ;;  %1728 = vperm.xlu0 %4041, %v1654_v32  }
 0x5a9   : > { %1733 = vperm.xlu1 %4042, %v1655_v57  }
 0x5aa   : > { %v6123_v34 = vpop.permute.xlu2 %3059 }
 0x5b0   : > { %3515 = vperm.xlu2 %4043, %v3383_v58   ;;  %3520 = vperm.xlu0 %4041, %v3384_v44   ;;  %v4131_v44 = vld [vmem:[%s6457_s7 + $0x2] ss:$0 sm:$0xff] }
 0x5b1   : > { %3505 = vperm.xlu1 %4042, %v3381_v5  }
 0x5b2   : > { %v3094_v63 = vpop.permute.xlu2 %3093 }
 0x5b3   : > { %v3100_v3 = vmul.f32 %v4129_v41, %v3094_v63 }
 0x5b5   : > { %v3104_v4 = vpack.c.bf16 %v3100_v3, %v3100_v3 }
 0x5b7   : > { %v3216_v13 = vunpack.c.l.b16 %v3104_v4 }
 0x5b8   : > { %3510 = vperm.xlu2 %4043, %v3382_v25   ;;  %3543 = vperm.xlu0 %4041, %v3387_v40  }
 0x5b9   : > { %3548 = vperm.xlu1 %4042, %v3388_v17  }
 0x5ba   : > { %v3146_v6 = vpop.permute.xlu2 %3145 }
 0x5bb   : > { %v3152_v33 = vmul.f32 %v4130_v51, %v3146_v6 }
 0x5bd   : > { %v3156_v63 = vpack.c.bf16 %v3152_v33, %v3152_v33 }
 0x5c0   : > { %3533 = vperm.xlu2 %4043, %v3385_v10   ;;  %3538 = vperm.xlu0 %4041, %v3386_v31  }
 0x5c1   : > { %3601 = vperm.xlu1 %4042, %v3598_v1  }
 0x5c2   : > { %v3076_v2 = vpop.permute.xlu0 %3075  ;;  %v3096_v53 = vpop.permute.xlu2 %3095 }
 0x5c3   : > { %v3092_v36 = vpop.permute.xlu1 %3091  ;;  %v3101_v37 = vmul.f32 %v4129_v41, %v3096_v53  ;;  %v3083_v10 = vmul.f32 %v4131_v44, %v3076_v2  ;;  %v4133_v2 = vld [vmem:[%s6457_s7 + $0x6] ss:$0 sm:$0xff] }
 0x5c4   : > { %v3099_v18 = vmul.f32 %v4129_v41, %v3092_v36 }
 0x5c5   : > { %v3105_v26 = vpack.c.bf16 %v3101_v37, %v3101_v37 }
 0x5c6   : > { %v3103_v21 = vpack.c.bf16 %v3099_v18, %v3099_v18 }
 0x5c7   : > { %v3217_v20 = vunpack.c.l.b16 %v3105_v26 }
 0x5c8   : > { %3608 = vperm.xlu2 %4043, %v3605_v60   ;;  %v3215_v16 = vunpack.c.l.b16 %v3103_v21 }
 0x5ca   : > { %v6155_v0 = vpop.permute.xlu0 %3127  ;;  %v3080_v62 = vpop.permute.xlu2 %3079  ;;  %v3219_v49 = vpack.c.b16 %v3216_v13, %v3215_v16 }
 0x5cb   : > { %v3144_v7 = vpop.permute.xlu1 %3143  ;;  %v3085_v5 = vmul.f32 %v4131_v44, %v3080_v62 }
 0x5cc   : > { %v3151_v23 = vmul.f32 %v4130_v51, %v3144_v7  ;;  %v3264_v7 = vunpack.c.l.b16 %v3156_v63 }
 0x5cd   : > { %v3089_v36 = vpack.c.bf16 %v3085_v5, %v3085_v5 }
 0x5ce   : > { %v3155_v57 = vpack.c.bf16 %v3151_v23, %v3151_v23  ;;  %v3135_v23 = vmul.f32 %v4133_v2, %v6155_v0 }
 0x5cf   : > { %v3205_v3 = vunpack.c.l.b16 %v3089_v36 }
 0x5d0   : > { %v3263_v31 = vunpack.c.l.b16 %v3155_v57 }
 0x5d2   : > { %v6157_v29 = vpop.permute.xlu0 %3061  ;;  %v3132_v39 = vpop.permute.xlu2 %3131 }
 0x5d3   : > { %v3078_v52 = vpop.permute.xlu1 %3077  ;;  %v3137_v26 = vmul.f32 %v4133_v2, %v3132_v39 }
 0x5d4   : > { %v3084_v25 = vmul.f32 %v4131_v44, %v3078_v52  ;;  %v3087_v52 = vpack.c.bf16 %v3083_v10, %v3083_v10 }
 0x5d5   : > { %v3141_v13 = vpack.c.bf16 %v3137_v26, %v3137_v26 }
 0x5d6   : > { %v3203_v16 = vunpack.c.l.b16 %v3087_v52 }
 0x5da   : > { %v3148_v54 = vpop.permute.xlu0 %3147  ;;  %v6162_v47 = vpop.permute.xlu2 %3111 }
 0x5db   : > { %v3130_v35 = vpop.permute.xlu1 %3129  ;;  %v3153_v43 = vmul.f32 %v4130_v51, %v3148_v54  ;;  %v3088_v54 = vpack.c.bf16 %v3084_v25, %v3084_v25  ;;  %v4135_v25 = vld [vmem:[%s6457_s7] ss:$0 sm:$0xff] }
 0x5dd   : > { %v3157_v55 = vpack.c.bf16 %v3153_v43, %v3153_v43  ;;  %v3204_v4 = vunpack.c.l.b16 %v3088_v54 }
 0x5df   : > { %v3265_v40 = vunpack.c.l.b16 %v3157_v55  ;;  %v3207_v55 = vpack.c.b16 %v3204_v4, %v3203_v16 }
 0x5e2   : > { %v3098_v27 = vpop.permute.xlu0 %3097  ;;  %v3066_v32 = vpop.permute.xlu2 %3065 }
 0x5e3   : > { %v3064_v45 = vpop.permute.xlu1 %3063  ;;  %v3102_v38 = vmul.f32 %v4129_v41, %v3098_v27  ;;  %v4132_v41 = vld [vmem:[%s6457_s7 + $0x1] ss:$0 sm:$0xff]  ;;  %v3267_v27 = vpack.c.b16 %v3264_v7, %v3263_v31 }
 0x5e4   : > { %v3069_v62 = vmul.f32 %v4132_v41, %v3064_v45  ;;  %v3070_v37 = vmul.f32 %v4132_v41, %v3066_v32  ;;  %v3067_v43 = vmul.f32 %v4132_v41, %v6123_v34 }
 0x5e5   : > { %v3106_v15 = vpack.c.bf16 %v3102_v38, %v3102_v38 }
 0x5e6   : > { %v3071_v34 = vpack.c.bf16 %v3067_v43, %v3067_v43 }
 0x5e7   : > { %v3218_v8 = vunpack.c.l.b16 %v3106_v15  ;;  %v3068_v15 = vmul.f32 %v4132_v41, %v6157_v29 }
 0x5e8   : > { %v3191_v36 = vunpack.c.l.b16 %v3071_v34 }
 0x5e9   : > { %v3220_v12 = vpack.c.b16 %v3218_v8, %v3217_v20  ;;  %v3136_v20 = vmul.f32 %v4133_v2, %v3130_v35  ;;  %v3073_v8 = vpack.c.bf16 %v3069_v62, %v3069_v62  ;;  %v3072_v39 = vpack.c.bf16 %v3068_v15, %v3068_v15  ;;  %v4134_v35 = vld [vmem:[%s6457_s7 + $0x5] ss:$0 sm:$0xff] }
 0x5ea   : > { %v6167_v28 = vpop.permute.xlu0 %3047  ;;  %v3118_v38 = vpop.permute.xlu2 %3117  ;;  %v3119_v54 = vmul.f32 %v4134_v35, %v6162_v47 }
 0x5eb   : > { %v3150_v46 = vpop.permute.xlu1 %3149  ;;  %3320 = vmatpush.bf16.msrb.mxu3 %v3220_v12  ;;  %v3193_v29 = vunpack.c.l.b16 %v3073_v8  ;;  %v3122_v5 = vmul.f32 %v4134_v35, %v3118_v38  ;;  %v3192_v63 = vunpack.c.l.b16 %v3072_v39 }
 0x5ec   : > { %v3154_v50 = vmul.f32 %v4130_v51, %v3150_v46  ;;  %v3074_v51 = vpack.c.bf16 %v3070_v37, %v3070_v37  ;;  %v3123_v15 = vpack.c.bf16 %v3119_v54, %v3119_v54 }
 0x5ed   : > { %v3126_v41 = vpack.c.bf16 %v3122_v5, %v3122_v5 }
 0x5ee   : > { %v3158_v58 = vpack.c.bf16 %v3154_v50, %v3154_v50  ;;  %v3140_v50 = vpack.c.bf16 %v3136_v20, %v3136_v20 }
 0x5ef   : > { %3321 = vmatpush.bf16.msrb.mxu3 %v3219_v49  ;;  %v3194_v49 = vunpack.c.l.b16 %v3074_v51  ;;  %v3242_v4 = vunpack.c.l.b16 %v3126_v41 }
 0x5f0   : > { %v3266_v17 = vunpack.c.l.b16 %v3158_v58  ;;  %v3139_v58 = vpack.c.bf16 %v3135_v23, %v3135_v23  ;;  %v3239_v23 = vunpack.c.l.b16 %v3123_v15 }
 0x5f1   : > { %v3196_v10 = vpack.c.b16 %v3194_v49, %v3193_v29  ;;  %v3932_v29 = vld [vmem:[%s6390_s11] sm:$0xf]  ;;  %v4019_v49 = vld [vmem:[%s6390_s11 + $0x8] sm:$0xf0] }
 0x5f2   : > { %v3268_v1 = vpack.c.b16 %v3266_v17, %v3265_v40  ;;  %v3082_v6 = vpop.permute.xlu0 %3081  ;;  %v3053_v40 = vmul.f32 %v4135_v25, %v6167_v28  ;;  %v3252_v17 = vunpack.c.l.b16 %v3140_v50  ;;  %v3046_v31 = vpop.permute.xlu2 %3045  ;;  %v3251_v7 = vunpack.c.l.b16 %v3139_v58 }
 0x5f3   : > { %v3116_v53 = vpop.permute.xlu1 %3115  ;;  %v3086_v60 = vmul.f32 %v4131_v44, %v3082_v6  ;;  %v3253_v44 = vunpack.c.l.b16 %v3141_v13  ;;  %v3052_v52 = vmul.f32 %v4135_v25, %v3046_v31  ;;  %v3195_v28 = vpack.c.b16 %v3192_v63, %v3191_v36 }
 0x5f4   : > { %3339 = vmatpush.bf16.msrb.mxu0 %v3268_v1  ;;  %v3121_v32 = vmul.f32 %v4134_v35, %v3116_v53  ;;  %v3107_v63 = vpack.c.bf16 %v6019_v19, %v6019_v19 }
 0x5f5   : > { %v3090_v18 = vpack.c.bf16 %v3086_v60, %v3086_v60  ;;  %v3056_v47 = vpack.c.bf16 %v3052_v52, %v3052_v52  ;;  %v4140_v52 = vld [vmem:[%s6480_s12 + $0x60] sm:$0xff] }
 0x5f6   : > { %v3125_v1 = vpack.c.bf16 %v3121_v32, %v3121_v32  ;;  %v3227_v36 = vunpack.c.l.b16 %v3107_v63 }
 0x5f7   : > { %v3206_v21 = vunpack.c.l.b16 %v3090_v18  ;;  %v3057_v18 = vpack.c.bf16 %v3053_v40, %v3053_v40  ;;  %v3180_v39 = vunpack.c.l.b16 %v3056_v47  ;;  %v4021_v47 = vld [vmem:[%s6390_s11 + $0x1c] sm:$0xf] }
 0x5f8   : > { %3340 = vmatpush.bf16.msrb.mxu0 %v3267_v27 }
 0x5f9   : > { %v3208_v45 = vpack.c.b16 %v3206_v21, %v3205_v3  ;;  %v3255_v3 = vpack.c.b16 %v3252_v17, %v3251_v7  ;;  %v3181_v20 = vunpack.c.l.b16 %v3057_v18  ;;  %v4137_v17 = vld [vmem:[%s6480_s12 + $0x78] sm:$0xff]  ;;  %v4138_v7 = vld [vmem:[%s6480_s12 + $0x70] sm:$0xff] }
 0x5fa   : > { %v3134_v12 = vpop.permute.xlu0 %3133  ;;  %v4020_v18 = vld [vmem:[%s6390_s11 + $0x10] sm:$0xf0] }
 0x5fb   : > { %v3044_v46 = vpop.permute.xlu1 %3043  ;;  %v3138_v33 = vmul.f32 %v4133_v2, %v3134_v12  ;;  %3322 = vmatpush.bf16.msrb.mxu3 %v3208_v45  ;;  %v3241_v2 = vunpack.c.l.b16 %v3125_v1 }
 0x5fc   : > { %v3051_v53 = vmul.f32 %v4135_v25, %v3044_v46  ;;  %v4136_v46 = vld [vmem:[%s6457_s7 + $0x8] ss:$0 sm:$0xff] }
 0x5fd   : > { %v3142_v57 = vpack.c.bf16 %v3138_v33, %v3138_v33  ;;  %v3244_v51 = vpack.c.b16 %v3242_v4, %v3241_v2  ;;  %v3944_v2 = vld [vmem:[%s6390_s11 + $0x18] sm:$0xf]  ;;  %v4144_v4 = vld [vmem:[%s6480_s12 + $0x40] sm:$0xff] }
 0x5fe   : > { %v3055_v38 = vpack.c.bf16 %v3051_v53, %v3051_v53  ;;  %v4018_v53 = vld [vmem:[%s6390_s11 + $0x4] sm:$0xf] }
 0x5ff   : > { %v3254_v0 = vunpack.c.l.b16 %v3142_v57  ;;  %3323 = vmatpush.bf16.msrb.mxu3 %v3207_v55  ;;  %v3160_v55 = vpop.permute.xlu2 %3159  ;;  %v3108_v57 = vpack.c.bf16 %v6034_v30, %v6034_v30 }
 0x600   : > { %v3179_v43 = vunpack.c.l.b16 %v3055_v38  ;;  %v4142_v38 = vld [vmem:[%s6480_s12 + $0x50] sm:$0xff] }
 0x601   : > { %v3256_v6 = vpack.c.b16 %v3254_v0, %v3253_v44  ;;  %v3167_v44 = vmul.f32 %v4136_v46, %v3160_v55  ;;  %v3933_v0 = vor.u32 %v4019_v49, %v3932_v29  ;;  %v3228_v40 = vunpack.c.l.b16 %v3108_v57  ;;  %v4152_v55 = vld [vmem:[%s6480_s12] sm:$0xff]  ;;  %v6532_v29 = vld [vmem:[#allocation11_spill] sm:$0xff] }
 0x602   : > { %v3114_v60 = vpop.permute.xlu0 %3113  ;;  %v3183_v34 = vpack.c.b16 %v3180_v39, %v3179_v43  ;;  %v4147_v43 = vld [vmem:[%s6480_s12 + $0x28] sm:$0xff] }
 0x603   : > { %v3050_v62 = vpop.permute.xlu1 %3049  ;;  %v3120_v37 = vmul.f32 %v4134_v35, %v3114_v60  ;;  %3324 = vmatpush.bf16.msrb.mxu3 %v3196_v10  ;;  %3341 = vmatpush.bf16.msrb.mxu0 %v3256_v6  ;;  %v3171_v1 = vpack.c.bf16 %v3167_v44, %v3167_v44  ;;  %v3934_v60 = vld [vmem:[%s6390_s11 + $0xc] sm:$0xf0]  ;;  %v3231_v41 = vpack.c.b16 %v3228_v40, %v3227_v36  ;;  %v4151_v39 = vld [vmem:[%s6480_s12 + $0x8] sm:$0xff] }
 0x604   : > { %v3054_v27 = vmul.f32 %v4135_v25, %v3050_v62  ;;  %v3937_v56 = vor.u32 %v4018_v53, %v3934_v60  ;;  %v6535_v44 = vld [vmem:[#allocation9_spill] sm:$0xff] }
 0x605   : > { %v3124_v26 = vpack.c.bf16 %v3120_v37, %v3120_v37  ;;  %v3940_v37 = vld [vmem:[%s6390_s11 + $0x8] sm:$0xf] }
 0x606   : > { %v3058_v21 = vpack.c.bf16 %v3054_v27, %v3054_v27 }
 0x607   : > { %3325 = vmatpush.bf16.msrb.mxu3 %v3195_v28  ;;  %3342 = vmatpush.bf16.msrb.mxu0 %v3255_v3  ;;  %v3240_v45 = vunpack.c.l.b16 %v3124_v26  ;;  %v3941_v28 = vor.u32 %v4020_v18, %v3940_v37  ;;  %v4141_v3 = vld [vmem:[%s6480_s12 + $0x58] sm:$0xff]  ;;  %v4022_v26 = vld [vmem:[%s6390_s11 + $0x20] sm:$0xf0] }
 0x608   : > { %v3182_v8 = vunpack.c.l.b16 %v3058_v21  ;;  %v4143_v21 = vld [vmem:[%s6480_s12 + $0x48] sm:$0xff]  ;;  %v3945_v15 = vor.u32 %v4022_v26, %v3944_v2  ;;  %v6541_v18 = vld [vmem:[#allocation16_spill] sm:$0xff]  ;;  %v6543_v26 = vld [vmem:[#allocation18_spill] sm:$0xff] }
 0x609   : > { %v3243_v35 = vpack.c.b16 %v3240_v45, %v3239_v23  ;;  %v4148_v23 = vld [vmem:[%s6480_s12 + $0x20] sm:$0xff] }
 0x60a   : > { %v3184_v16 = vpack.c.b16 %v3182_v8, %v3181_v20  ;;  %v3164_v12 = vpop.permute.xlu0 %3163  ;;  %v4145_v20 = vld [vmem:[%s6480_s12 + $0x38] sm:$0xff]  ;;  %v3946_v8 = vld [vmem:[%s6390_s11 + $0x24] sm:$0xf0] }
 0x60b   : > { %v3166_v13 = vpop.permute.xlu1 %3165  ;;  %v3169_v33 = vmul.f32 %v4136_v46, %v3164_v12  ;;  %3343 = vmatpush.bf16.msrb.mxu0 %v3244_v51  ;;  %v4146_v51 = vld [vmem:[%s6480_s12 + $0x30] sm:$0xff]  ;;  %v3949_v45 = vor.u32 %v4021_v47, %v3946_v8  ;;  %v4023_v12 = vld [vmem:[%s6390_s11 + $0x28] sm:$0xf0] }
 0x60c   : > { %v3170_v50 = vmul.f32 %v4136_v46, %v3166_v13  ;;  %3326 = vmatpush.bf16.msrb.mxu3 %v3184_v16  ;;  %v3952_v16 = vld [vmem:[%s6390_s11 + $0x20] sm:$0xf] }
 0x60d   : > { %v3173_v32 = vpack.c.bf16 %v3169_v33, %v3169_v33  ;;  %v3953_v13 = vor.u32 %v4023_v12, %v3952_v16  ;;  %v4150_v33 = vld [vmem:[%s6480_s12 + $0x10] sm:$0xff]  ;;  %v6548_v16 = vld [vmem:[#allocation23_spill] sm:$0xff] }
 0x60e   : > { %v3174_v58 = vpack.c.bf16 %v3170_v50, %v3170_v50 }
 0x60f   : > { %v3277_v5 = vunpack.c.l.b16 %v3173_v32  ;;  %3344 = vmatpush.bf16.msrb.mxu0 %v3243_v35  ;;  %v1724_v35 = vpop.permute.xlu2 %1723  ;;  %v6533_v32 = vld [vmem:[#allocation10_spill] sm:$0xff] }
 0x610   : > { %v3278_v25 = vunpack.c.l.b16 %v3174_v58  ;;  %3327 = vmatpush.bf16.msrb.mxu3 %v3183_v34  ;;  %v6534_v34 = vld [vmem:[#allocation14_spill] sm:$0xff] }
 0x611   : > { %v2083_v58 = vadd.f32 %v6534_v34, %v1724_v35  ;;  %v6551_v35 = vld [vmem:[#allocation8_spill] sm:$0xff]  ;;  %v6552_v34 = vld [vmem:[#allocation7_spill] sm:$0xff] }
 0x612   : > { %v3280_v10 = vpack.c.b16 %v3278_v25, %v3277_v5  ;;  %v3162_v31 = vpop.permute.xlu0 %3161 }
 0x613   : > { %v3168_v6 = vmul.f32 %v4136_v46, %v3162_v31  ;;  %3345 = vmatpush.bf16.msrb.mxu0 %v3232_v48  ;;  %3328 = vmatmul.bf16.vlgmr.msrb.gmra.mxu3 %v3933_v0  ;;  %v3275_v48 = vunpack.c.l.b16 %v3171_v1  ;;  %v4149_v46 = vld [vmem:[%s6480_s12 + $0x18] sm:$0xff]  ;;  %v1719_v50 = vpop.permute.xlu1 %1718  ;;  %v6536_v0 = vld [vmem:[#allocation12_spill] sm:$0xff]  ;;  %v6538_v31 = vld [vmem:[#allocation17_spill] sm:$0xff] }
 0x614   : > { %3426 = vmatpush.msra.mxu3 %v4137_v17  ;;  %3364 = vmatpush.bf16.msrb.mxu1 %v3280_v10  ;;  %v2081_v49 = vadd.f32 %v6532_v29, %v1719_v50  ;;  %v2132_v63 = vadd.f32 %v6536_v0, %v2083_v58  ;;  %v6537_v17 = vld [vmem:[#allocation13_spill] sm:$0xff]  ;;  %v6553_v0 = vld [vmem:[#allocation6_spill] sm:$0xff] }
 0x615   : > { %v3172_v54 = vpack.c.bf16 %v3168_v6, %v3168_v6  ;;  %v6550_v50 = vld [vmem:[#allocation25_spill] sm:$0xff] }
 0x616   : > { %3427 = vmatpush.msra.mxu3 %v4138_v7  ;;  %v2130_v57 = vadd.f32 %v6533_v32, %v2081_v49  ;;  %v2181_v10 = vadd.f32 %v6537_v17, %v2132_v63  ;;  %v6539_v7 = vld [vmem:[#allocation15_spill] sm:$0xff] }
 0x617   : > { %v3276_v62 = vunpack.c.l.b16 %v3172_v54  ;;  %3346 = vmatpush.bf16.msrb.mxu0 %v3231_v41 }
 0x618   : > { %3428 = vmatpush.msra.mxu3 %v4139_v14  ;;  %v2179_v5 = vadd.f32 %v6535_v44, %v2130_v57  ;;  %v2230_v53 = vadd.f32 %v5656_v22, %v2181_v10  ;;  %v6554_v10 = vld [vmem:[#allocation4_spill] sm:$0xff] }
 0x619   : > { %v3279_v27 = vpack.c.b16 %v3276_v62, %v3275_v48  ;;  %v6540_v62 = vld [vmem:[#allocation20_spill] sm:$0xff] }
 0x61a   : > { %3429 = vmatpush.msra.mxu3 %v4140_v52  ;;  %3347 = vmatmul.bf16.vlgmr.msrb.gmra.mxu0 %v3937_v56  ;;  %v2228_v25 = vadd.f32 %v5654_v59, %v2179_v5  ;;  %v1729_v40 = vpop.permute.xlu0 %1728  ;;  %v2279_v59 = vadd.f32 %v5772_v24, %v2230_v53  ;;  %v6546_v24 = vld [vmem:[#allocation19_spill] sm:$0xff] }
 0x61b   : > { %3365 = vmatpush.bf16.msrb.mxu1 %v3279_v27  ;;  %v2086_v1 = vadd.f32 %v6538_v31, %v1729_v40  ;;  %v1734_v14 = vpop.permute.xlu1 %1733  ;;  %v6542_v27 = vld [vmem:[#allocation22_spill] sm:$0xff] }
 0x61c   : > { %3430 = vmatpush.msra.mxu3 %v4141_v3  ;;  %v2277_v6 = vadd.f32 %v5770_v11, %v2228_v25  ;;  %v2088_v37 = vadd.f32 %v6540_v62, %v1734_v14 }
 0x61d   : > { %v2135_v54 = vadd.f32 %v6539_v7, %v2086_v1 }
 0x61e   : > { %3431 = vmatpush.msra.mxu3 %v4142_v38  ;;  %3954 = vmatmul.msk.bf16.vlgmr.msrb.gmra.mxu1 %vm3313_vm8, %v3941_v28  ;;  %v2326_v56 = vadd.f32 %v5778_v9, %v2277_v6  ;;  %v2137_v38 = vadd.f32 %v6543_v26, %v2088_v37  ;;  %v6545_v9 = vld [vmem:[#allocation24_spill] sm:$0xff] }
 0x61f   : > { %v2184_v52 = vadd.f32 %v6541_v18, %v2135_v54 }
 0x620   : > { %3432 = vmatpush.msra.mxu3 %v4143_v21  ;;  %v2375_v28 = vadd.f32 %v6542_v27, %v2326_v56  ;;  %v6544_v21 = vld [vmem:[#allocation26_spill] sm:$0xff]  ;;  %v2186_v8 = vadd.f32 %v6546_v24, %v2137_v38 }
 0x622   : > { %3433 = vmatpush.msra.mxu3 %v4144_v4  ;;  %v2328_v4 = vadd.f32 %v6545_v9, %v2279_v59  ;;  %v6327_v38 = vpop.permute.xlu0 %3520 }
 0x623   : > { %3333 = vmatmul.bf16.gmra.mxu3 %v3945_v15  ;;  %v2233_v15 = vadd.f32 %v6544_v21, %v2184_v52 }
 0x624   : > { %3434 = vmatpush.msra.mxu3 %v4145_v20 }
 0x625   : > { %v2282_v12 = vadd.f32 %v6548_v16, %v2233_v15 }
 0x626   : > { %3435 = vmatpush.msra.mxu3 %v4146_v51  ;;  %v6547_v51 = vld [vmem:[#allocation21_spill] sm:$0xff] }
 0x627   : > { %v2331_v29 = vadd.f32 %v6550_v50, %v2282_v12 }
 0x628   : > { %3436 = vmatpush.msra.mxu3 %v4147_v43 }
 0x629   : > { %v2380_v32 = vadd.f32 %v6551_v35, %v2331_v29 }
 0x62a   : > { %3437 = vmatpush.msra.mxu3 %v4148_v23  ;;  %3352 = vmatmul.bf16.gmra.mxu0 %v3949_v45  ;;  %v2377_v45 = vadd.f32 %v6547_v51, %v2328_v4 }
 0x62c   : > { %3438 = vmatpush.msra.mxu3 %v4149_v46 }
 0x62e   : > { %3439 = vmatpush.msra.mxu3 %v4150_v33  ;;  %3955 = vmatmul.msk.bf16.gmra.mxu1 %vm3313_vm8, %v3953_v13  ;;  %v6549_v33 = vld [vmem:[#allocation5_spill] sm:$0xff] }
 0x630   : > { %3440 = vmatpush.msra.mxu3 %v4151_v39  ;;  %v2235_v39 = vadd.f32 %v6549_v33, %v2186_v8 }
 0x632   : > { %3441 = vmatpush.msra.mxu3 %v4152_v55  ;;  %v2284_v58 = vadd.f32 %v6552_v34, %v2235_v39 }
 0x634   : > { %v2333_v63 = vadd.f32 %v6553_v0, %v2284_v58 }
 0x636   : > { %v2382_v31 = vadd.f32 %v6554_v10, %v2333_v63 }
 0x696   : > { %v3329_v36 = vpop.f32.mrf.mxu3 }
 0x697   : > { %v3348_v60 = vpop.f32.mrf.mxu0 }
 0x698   : > { %v3349_v41 = vadd.f32 %v3348_v60, %v3329_v36 }
 0x69b   : > { %v3367_v48 = vpop.f32.mrf.mxu1 }
 0x69c   : > { %v3368_v11 = vadd.f32 %v3367_v48, %v3349_v41 }
 0x69e   : > { %v3377_v3 = vadd.f32 %v3368_v11, %v2375_v28  ;;  %v3331_v2 = vpop.f32.mrf.mxu3  ;;  %v6325_v28 = vpop.permute.xlu2 %3515 }
 0x69f   : > { %v3350_v22 = vpop.f32.mrf.mxu0 }
 0x6a0   : > { %3405 = vmatmul.f32.vlgmr.msrb.gmra.mxu2 %v3377_v3  ;;  %v3351_v20 = vadd.f32 %v3350_v22, %v3331_v2 }
 0x6a3   : > { %v3369_v47 = vpop.f32.mrf.mxu1 }
 0x6a4   : > { %v3370_v43 = vadd.f32 %v3369_v47, %v3351_v20 }
 0x6a6   : > { %v3378_v23 = vadd.f32 %v3370_v43, %v2377_v45  ;;  %v3334_v13 = vpop.f32.mrf.mxu3  ;;  %v3511_v15 = vpop.permute.xlu2 %3510 }
 0x6a7   : > { %v3353_v46 = vpop.f32.mrf.mxu0  ;;  %v3506_v43 = vpop.permute.xlu1 %3505 }
 0x6a8   : > { %3408 = vmatmul.f32.gmra.mxu2 %v3378_v23  ;;  %v3354_v55 = vadd.f32 %v3353_v46, %v3334_v13  ;;  %v3544_v13 = vpop.permute.xlu0 %3543 }
 0x6ab   : > { %v3372_v49 = vpop.f32.mrf.mxu1 }
 0x6ac   : > { %v3373_v57 = vadd.f32 %v3372_v49, %v3354_v55 }
 0x6ae   : > { %v3379_v44 = vadd.f32 %v3373_v57, %v2380_v32  ;;  %v3336_v25 = vpop.f32.mrf.mxu3  ;;  %v3534_v50 = vpop.permute.xlu2 %3533 }
 0x6af   : > { %v3355_v5 = vpop.f32.mrf.mxu0 }
 0x6b0   : > { %3411 = vmatmul.f32.gmra.mxu2 %v3379_v44  ;;  %v3356_v40 = vadd.f32 %v3355_v5, %v3336_v25 }
 0x6b3   : > { %v3374_v17 = vpop.f32.mrf.mxu1 }
 0x6b4   : > { %v3375_v1 = vadd.f32 %v3374_v17, %v3356_v40  ;;  %v3539_v40 = vpop.permute.xlu0 %3538 }
 0x6b6   : > { %v3380_v6 = vadd.f32 %v3375_v1, %v2382_v31 }
 0x6b8   : > { %3414 = vmatmul.f32.gmra.mxu2 %v3380_v6 }
 0x723   : > { %v3406_v36 = vpop.f32.mrf.mxu2 }
 0x724   : > { %v3418_v53 = vsub.f32 %v3377_v3, %v3406_v36 }
 0x726   : > { %v3422_v60 = vmul.f32 %v3418_v53, %v3418_v53 }
 0x728   : > { %3442 = vmatmul.f32.vlgmr.msra.gmra.mxu3 %v3422_v60 }
 0x72b   : > { %v3409_v7 = vpop.f32.mrf.mxu2 }
 0x72c   : > { %v6313_v54 = vsub.f32 %v3378_v23, %v3409_v7 }
 0x72e   : > { %v3423_v41 = vmul.f32 %v6313_v54, %v6313_v54 }
 0x730   : > { %3445 = vmatmul.f32.gmra.mxu3 %v3423_v41 }
 0x733   : > { %v3412_v56 = vpop.f32.mrf.mxu2 }
 0x734   : > { %v6317_v14 = vsub.f32 %v3379_v44, %v3412_v56 }
 0x736   : > { %v3424_v48 = vmul.f32 %v6317_v14, %v6317_v14 }
 0x738   : > { %3448 = vmatmul.f32.gmra.mxu3 %v3424_v48 }
 0x73b   : > { %v3415_v59 = vpop.f32.mrf.mxu2 }
 0x73c   : > { %v6321_v62 = vsub.f32 %v3380_v6, %v3415_v59 }
 0x73e   : > { %v3425_v37 = vmul.f32 %v6321_v62, %v6321_v62 }
 0x740   : > { %3451 = vmatmul.f32.gmra.mxu3 %v3425_v37 }
 0x7ab   : > { %v3443_v18 = vpop.f32.mrf.mxu3 }
 0x7ac   : > { %v3455_v52 = vmax.f32 %v3443_v18, 0.0 }
 0x7ae   : > { %v3459_v27 = vadd.f32 1e-05, %v3455_v52 }
 0x7b0   : > { %4100 = vrsqrt.f32 %v3459_v27  ;;  %vm3469_vm10 = vweird.f32 %v3459_v27 }
 0x7b3   : > { %v3446_v11 = vpop.f32.mrf.mxu3 }
 0x7b4   : > { %v3456_v3 = vmax.f32 %v3446_v11, 0.0 }
 0x7b6   : > { %v4101_v2 = vpop.eup %4100  ;;  %v3460_v22 = vadd.f32 1e-05, %v3456_v3 }
 0x7b7   : > { %v3464_v26 = vmul.f32 %v4101_v2, %v3459_v27  ;;  %vm3470_vm9 = vweird.f32 %v4101_v2 }
 0x7b8   : > { %4102 = vrsqrt.f32 %v3460_v22  ;;  %vm3471_vm11 = vmor %vm3469_vm10, %vm3470_vm9  ;;  %vm3479_vm13 = vweird.f32 %v3460_v22 }
 0x7b9   : > { %v3465_v21 = vmul.f32 %v4101_v2, %v3464_v26 }
 0x7bb   : > { %v3466_v9 = vmul.f32 0.5, %v3465_v21  ;;  %v3449_v4 = vpop.f32.mrf.mxu3 }
 0x7bc   : > { %v3457_v20 = vmax.f32 %v3449_v4, 0.0 }
 0x7bd   : > { %v3467_v47 = vsub.f32 1.5, %v3466_v9  ;;  %v3549_v9 = vpop.permute.xlu1 %3548 }
 0x7be   : > { %v4103_v24 = vpop.eup %4102  ;;  %v3461_v8 = vadd.f32 1e-05, %v3457_v20 }
 0x7bf   : > { %v3468_v51 = vmul.f32 %v4101_v2, %v3467_v47  ;;  %v3474_v45 = vmul.f32 %v4103_v24, %v3460_v22  ;;  %vm3480_vm12 = vweird.f32 %v4103_v24 }
 0x7c0   : > { %4104 = vrsqrt.f32 %v3461_v8  ;;  %vm3481_vm14 = vmor %vm3479_vm13, %vm3480_vm12  ;;  %vm3489_vm0 = vweird.f32 %v3461_v8 }
 0x7c1   : > { %v3472_v16 = vsel %vm3471_vm11, %v4101_v2, %v3468_v51  ;;  %v3475_v12 = vmul.f32 %v4103_v24, %v3474_v45 }
 0x7c2   : > { %v3523_v23 = vmul.f32 %v3506_v43, %v3472_v16 }
 0x7c3   : > { %v3476_v46 = vmul.f32 0.5, %v3475_v12  ;;  %v3452_v33 = vpop.f32.mrf.mxu3 }
 0x7c4   : > { %v3527_v39 = vmul.f32 %v3523_v23, %v3418_v53  ;;  %v3458_v55 = vmax.f32 %v3452_v33, 0.0  ;;  %v3579_v33 = vld [vmem:[%s6397_s18] sm:$0xf] }
 0x7c5   : > { %v3477_v29 = vsub.f32 1.5, %v3476_v46 }
 0x7c6   : > { %v4105_v49 = vpop.eup %4104  ;;  %v3462_v35 = vadd.f32 1e-05, %v3458_v55  ;;  %v3551_v32 = vadd.f32 %v3534_v50, %v3527_v39  ;;  %v3602_v39 = vpop.permute.xlu1 %3601 }
 0x7c7   : > { %v3478_v57 = vmul.f32 %v4103_v24, %v3477_v29  ;;  %v3484_v34 = vmul.f32 %v4105_v49, %v3461_v8  ;;  %vm3490_vm15 = vweird.f32 %v4105_v49  ;;  %v3609_v29 = vpop.permute.xlu2 %3608 }
 0x7c8   : > { %4106 = vrsqrt.f32 %v3462_v35  ;;  %v3555_v58 = vmul.f32 0.5, %v3551_v32  ;;  %vm3491_vm1 = vmor %vm3489_vm0, %vm3490_vm15  ;;  %vm3499_vm3 = vweird.f32 %v3462_v35 }
 0x7c9   : > { %v3482_v44 = vsel %vm3481_vm14, %v4103_v24, %v3478_v57  ;;  %v3485_v5 = vmul.f32 %v4105_v49, %v3484_v34 }
 0x7ca   : > { %v3524_v0 = vmul.f32 %v3511_v15, %v3482_v44  ;;  %4108 = vtanh.f32 %v3555_v58 }
 0x7cb   : > { %v3486_v63 = vmul.f32 0.5, %v3485_v5  ;;  %4110 = vtanh.f32 %v6019_v19 }
 0x7cc   : > { %v3528_v25 = vmul.f32 %v3524_v0, %v6313_v54 }
 0x7cd   : > { %v3487_v17 = vsub.f32 1.5, %v3486_v63 }
 0x7ce   : > { %v4107_v10 = vpop.eup %4106  ;;  %v3552_v31 = vadd.f32 %v3539_v40, %v3528_v25 }
 0x7cf   : > { %v3488_v1 = vmul.f32 %v4105_v49, %v3487_v17  ;;  %v3494_v6 = vmul.f32 %v4107_v10, %v3462_v35  ;;  %vm3500_vm2 = vweird.f32 %v4107_v10 }
 0x7d0   : > { %v4109_v36 = vpop.eup %4108  ;;  %v3556_v53 = vmul.f32 0.5, %v3552_v31  ;;  %vm3501_vm4 = vmor %vm3499_vm3, %vm3500_vm2 }
 0x7d1   : > { %v3492_v60 = vsel %vm3491_vm1, %v4105_v49, %v3488_v1  ;;  %v3495_v7 = vmul.f32 %v4107_v10, %v3494_v6  ;;  %v3563_v41 = vadd.f32 1.0, %v4109_v36  ;;  %v4111_v59 = vpop.eup %4110 }
 0x7d2   : > { %v3525_v56 = vmul.f32 %v6325_v28, %v3492_v60  ;;  %4112 = vtanh.f32 %v3556_v53 }
 0x7d3   : > { %v3496_v54 = vmul.f32 0.5, %v3495_v7  ;;  %v3567_v48 = vmul.f32 0.5, %v3563_v41  ;;  %4114 = vtanh.f32 %v6034_v30 }
 0x7d4   : > { %v3529_v37 = vmul.f32 %v3525_v56, %v6317_v14 }
 0x7d5   : > { %v3497_v18 = vsub.f32 1.5, %v3496_v54  ;;  %v3575_v52 = vmul.f32 %v4111_v59, %v3567_v48 }
 0x7d6   : > { %v3553_v27 = vadd.f32 %v3544_v13, %v3529_v37 }
 0x7d7   : > { %v3498_v11 = vmul.f32 %v4107_v10, %v3497_v18  ;;  %3615 = vst [vmem:[#allocation2 + $0x10] sm:$0xff] %v3575_v52 }
 0x7d8   : > { %v4113_v3 = vpop.eup %4112  ;;  %v3557_v2 = vmul.f32 0.5, %v3553_v27 }
 0x7d9   : > { %v3502_v22 = vsel %vm3501_vm4, %v4107_v10, %v3498_v11  ;;  %v3564_v28 = vadd.f32 1.0, %v4113_v3  ;;  %v4115_v15 = vpop.eup %4114 }
 0x7da   : > { %v3526_v26 = vmul.f32 %v6327_v38, %v3502_v22  ;;  %4116 = vtanh.f32 %v3557_v2 }
 0x7db   : > { %v3568_v21 = vmul.f32 0.5, %v3564_v28  ;;  %4118 = vtanh.f32 %v6043_v61 }
 0x7dc   : > { %v3530_v14 = vmul.f32 %v3526_v26, %v6321_v62 }
 0x7dd   : > { %v3576_v4 = vmul.f32 %v4115_v15, %v3568_v21 }
 0x7de   : > { %v3554_v20 = vadd.f32 %v3549_v9, %v3530_v14 }
 0x7df   : > { %3616 = vst [vmem:[#allocation2] sm:$0xff] %v3576_v4  ;;  %v3580_v46 = vpack.c.bf16 %v3576_v4, %v3575_v52 }
 0x7e0   : > { %v4117_v47 = vpop.eup %4116  ;;  %v3558_v24 = vmul.f32 0.5, %v3554_v20 }
 0x7e1   : > { %v3565_v8 = vadd.f32 1.0, %v4117_v47  ;;  %v4119_v45 = vpop.eup %4118 }
 0x7e2   : > { %4120 = vtanh.f32 %v3558_v24 }
 0x7e3   : > { %v3569_v51 = vmul.f32 0.5, %v3565_v8  ;;  %4122 = vtanh.f32 %v6052_v42 }
 0x7e5   : > { %v3577_v43 = vmul.f32 %v4119_v45, %v3569_v51 }
 0x7e7   : > { %3617 = vst [vmem:[#allocation2 + $0x18] sm:$0xff] %v3577_v43 }
 0x7e8   : > { %v4121_v38 = vpop.eup %4120 }
 0x7e9   : > { %v3566_v16 = vadd.f32 1.0, %v4121_v38  ;;  %v4123_v12 = vpop.eup %4122 }
 0x7eb   : > { %v3570_v62 = vmul.f32 0.5, %v3566_v16 }
 0x7ed   : > { %v3578_v23 = vmul.f32 %v4123_v12, %v3570_v62 }
 0x7ef   : > { %v3581_v13 = vpack.c.bf16 %v3578_v23, %v3577_v43  ;;  %3618 = vst [vmem:[#allocation2 + $0x8] sm:$0xff] %v3578_v23 }
 0x7f1   : > { %3591 = vmatpush.bf16.msra.mxu0 %v3581_v13 }
 0x7f5   : > { %3592 = vmatpush.bf16.msra.mxu0 %v3580_v46 }
 0x7f8   : > { %3956 = vmatmul.msk.bf16.vlgmr.msra.gmra.mxu0 %vm3313_vm8, %v3579_v33 }
 0x875   : > { %v3594_v55 = vpop.f32.mrf.mxu0 }
 0x876   : > { %v3604_v50 = vmul.f32 %v3602_v39, %v3594_v55 }
 0x878   : > { %v3611_v49 = vadd.f32 %v3609_v29, %v3604_v50 }
 0x879   : > { %3626 = sbr.rel (%p3957_p4) target bundleno = 2182 (0x886), region = 112 }
 0x87a   : > { %v3612_v35 = vmax.f32 %v3611_v49, 0.0 }
 0x87c   : > { %3614 = vst [vmem:[%s3613_s25] sm:$0xff] %v3612_v35 }
 0x87d   : > { %v3596_v32 = vpop.f32.mrf.mxu0 }
 0x87e   : > { %3627 = vst [vmem:[%s6401_s22] sm:$0xff] %v3575_v52 }
 0x87f   : > { %3628 = vst [vmem:[%s6401_s22 + $0x8] sm:$0xff] %v3576_v4 }
 0x880   : > { %3629 = vst [vmem:[%s6401_s22 + $0x10] sm:$0xff] %v3577_v43 }
 0x881   : > { %3630 = vst [vmem:[%s6401_s22 + $0x18] sm:$0xff] %v3578_v23 }
 0x882   : > { %3631 = vst [vmem:[%s6402_s23] sm:$0xff] %v6019_v19 }
 0x883   : > { %3632 = vst [vmem:[%s6402_s23 + $0x8] sm:$0xff] %v6034_v30 }
 0x884   : > { %3633 = vst [vmem:[%s6402_s23 + $0x10] sm:$0xff] %v6043_v61 }
 0x885   : > { %3634 = vst [vmem:[%s6402_s23 + $0x18] sm:$0xff] %v6052_v42 }
 0x886 PF: > { %s34_s4 = sadd.s32 1, %s4159_s4  }
 0x887   : > { %p31_p5 = scmp.ge.s32.totalorder %s34_s4, 6  }
 0x889   :  { %33 = sbr.rel (!%p31_p5) target bundleno = 11 (0xb), region = 153 }

</bundles_post_ra>
